<compile_context>
chip_gen: v5e
topology: v5e:2x2
jax: 0.10.0
libtpu: 0.0.40
codegen_flags: <defaults>
</compile_context>

<pallas_src>
import math
import functools

import jax
import jax.numpy as jnp
from jax.experimental import pallas as pl
from jax.experimental.pallas import tpu as pltpu

LANES = 128
OUT_DIM = 9


def _round_up(n, m):
    return ((n + m - 1) // m) * m


# ---------------------------------------------------------------------------
# Pallas kernel: whole forward chain on one (TB, *) batch tile.
# Channel layout inside the 128-lane activation slabs:
#   z1  : cols 0:58   = x @ zx_w1            (h path, pre-act)
#         cols 58:119 = x @ yx_wx            (g path, pre-act, bias added later)
#   h*  : cols 0:{58,38,18} valid, rest garbage (killed by zero-padded weight rows)
#   zmu : cols 58:119 = h3 @ (zx_w4[:, :3] @ W_mu)
#   g1  : cols 58:119 valid; g2/g3/logits: cols 0:{41,21,9} valid
# Only the first 9 lanes of the final sigmoid are stored.
# ---------------------------------------------------------------------------
def _cvae1_kernel(x_ref, w_first_ref, w_rest_ref, b_ref, out_ref):
    x = x_ref[...]            # (TB, 78) f32
    wf = w_first_ref[...]     # (78, 128) bf16
    b = b_ref[...]            # (8, 128) f32

    def softplus(v):
        # torch.nn.Softplus(beta=1, threshold=20); inf on the untaken branch is discarded.
        return jnp.where(v > 20.0, v, jnp.log1p(jnp.exp(v)))

    def dot(a, w):
        # bf16 MXU inputs, f32 accumulation.
        return jnp.dot(a.astype(w.dtype), w, preferred_element_type=jnp.float32)

    # Fused first layer: both K=78 matmuls that share x, in one MXU pass.
    z1 = dot(x, wf)                                     # (TB, 128)

    # ---- l_z_x hidden chain (layer 4 is folded into the g path) ----
    h = softplus(z1 + b[0:1, :])                        # h1: cols 0:58
    h = softplus(dot(h, w_rest_ref[0]) + b[1:2, :])     # h2: cols 0:38
    h = softplus(dot(h, w_rest_ref[1]) + b[2:3, :])     # h3: cols 0:18

    # ---- l_y_xz on cat(x, mu): mu matmul folded into h3 @ W_mu' (placed at cols 58:119) ----
    zmu = dot(h, w_rest_ref[2])                         # (TB, 128), cols 58:119 valid
    g = softplus(z1 + zmu + b[3:4, :])                  # g1: cols 58:119
    g = softplus(dot(g, w_rest_ref[3]) + b[4:5, :])     # g2: cols 0:41
    g = softplus(dot(g, w_rest_ref[4]) + b[5:6, :])     # g3: cols 0:21
    g = dot(g, w_rest_ref[5]) + b[6:7, :]               # logits: cols 0:9 valid

    # Sigmoid via EUP exp + approx reciprocal; store only the 9 valid lanes.
    y = pl.reciprocal(1.0 + jnp.exp(-g), approx=True)   # (TB, 128)
    out_ref[...] = y[:, :OUT_DIM]


# ---------------------------------------------------------------------------
# Parameter construction (deterministic, PyTorch-style uniform(-1/sqrt(in), 1/sqrt(in))).
# Weights are stored transposed vs. PyTorch, i.e. (in, out); biases as (1, out).
# ---------------------------------------------------------------------------
def _init_linear(key, fan_in, fan_out):
    kw, kb = jax.random.split(key)
    bound = 1.0 / math.sqrt(fan_in)
    w = jax.random.uniform(kw, (fan_in, fan_out), jnp.float32, -bound, bound)
    b = jax.random.uniform(kb, (1, fan_out), jnp.float32, -bound, bound)
    return w, b


def make_params(key):
    keys = jax.random.split(key, 8)
    # l_z_x: 78 -> 58 -> 38 -> 18 -> 6
    zx_w1, zx_b1 = _init_linear(keys[0], 78, 58)
    zx_w2, zx_b2 = _init_linear(keys[1], 58, 38)
    zx_w3, zx_b3 = _init_linear(keys[2], 38, 18)
    zx_w4, zx_b4 = _init_linear(keys[3], 18, 6)
    # l_y_xz: 81 -> 61 -> 41 -> 21 -> 9
    yx_w1, yx_b1 = _init_linear(keys[4], 81, 61)
    yx_w2, yx_b2 = _init_linear(keys[5], 61, 41)
    yx_w3, yx_b3 = _init_linear(keys[6], 41, 21)
    yx_w4, yx_b4 = _init_linear(keys[7], 21, 9)
    return (zx_w1, zx_b1, zx_w2, zx_b2, zx_w3, zx_b3, zx_w4, zx_b4,
            yx_w1, yx_b1, yx_w2, yx_b2, yx_w3, yx_b3, yx_w4, yx_b4)


# ---------------------------------------------------------------------------
# Host-side packing: algebraic folds + lane-padded, concatenated bf16 weight slabs.
# ---------------------------------------------------------------------------
def pack_params(raw):
    (zx_w1, zx_b1, zx_w2, zx_b2, zx_w3, zx_b3, zx_w4, zx_b4,
     yx_w1, yx_b1, yx_w2, yx_b2, yx_w3, yx_b3, yx_w4, yx_b4) = raw

    yx_wx, yx_wmu = yx_w1[:78, :], yx_w1[78:, :]          # split cat(x, mu) weight: (78,61)/(3,61)

    # Exact fold: mu = h3 @ zx_w4[:, :3] + zx_b4[:, :3]  =>  mu @ yx_wmu = h3 @ W_mu' + b_mu'
    w_mu_fold = zx_w4[:, :3] @ yx_wmu                     # (18, 61)
    g_b1 = yx_b1 + zx_b4[:, :3] @ yx_wmu                  # (1, 61)

    # Fused first layer (shared x): cols 0:58 = zx_w1, cols 58:119 = yx_wx, 119:128 zero.
    w_first = jnp.zeros((78, LANES), jnp.float32)
    w_first = w_first.at[:, 0:58].set(zx_w1)
    w_first = w_first.at[:, 58:119].set(yx_wx)

    def pad_block(w, row_off, col_off):
        blk = jnp.zeros((LANES, LANES), jnp.float32)
        return blk.at[row_off:row_off + w.shape[0], col_off:col_off + w.shape[1]].set(w)

    w_rest = jnp.stack([
        pad_block(zx_w2, 0, 0),        # block 0: rows 0:58   -> cols 0:38
        pad_block(zx_w3, 0, 0),        # block 1: rows 0:38   -> cols 0:18
        pad_block(w_mu_fold, 0, 58),   # block 2: rows 0:18   -> cols 58:119 (g-path lane space)
        pad_block(yx_w2, 58, 0),       # block 3: rows 58:119 -> cols 0:41
        pad_block(yx_w3, 0, 0),        # block 4: rows 0:41   -> cols 0:21
        pad_block(yx_w4, 0, 0),        # block 5: rows 0:21   -> cols 0:9
    ])                                 # (6, 128, 128)

    def pad_bias(bvec, col_off):
        row = jnp.zeros((LANES,), jnp.float32)
        return row.at[col_off:col_off + bvec.shape[-1]].set(bvec.reshape(-1))

    b_all = jnp.stack([
        pad_bias(zx_b1, 0),                  # row 0
        pad_bias(zx_b2, 0),                  # row 1
        pad_bias(zx_b3, 0),                  # row 2
        pad_bias(g_b1, 58),                  # row 3 (g-path lane space)
        pad_bias(yx_b2, 0),                  # row 4
        pad_bias(yx_b3, 0),                  # row 5
        pad_bias(yx_b4, 0),                  # row 6
        jnp.zeros((LANES,), jnp.float32),    # row 7 (pad to 8 sublanes)
    ])                                       # (8, 128) f32

    # Weights feed the MXU in bf16 (f32 accumulation in-kernel); biases stay f32.
    return (w_first.astype(jnp.bfloat16),
            w_rest.astype(jnp.bfloat16),
            b_all)


def _choose_tile(batch, block_b):
    # Aim for >= 2 grid steps when the batch allows (v7x has 2 TensorCores to shard
    # the "parallel" axis over); cap at block_b to stay inside the default scoped VMEM.
    half = _round_up(max((batch + 1) // 2, 8), 8)
    return max(8, min(block_b, half))


# ---------------------------------------------------------------------------
# Wrapper: 1-D batch grid, weights resident across grid steps, lane-narrow output.
# ---------------------------------------------------------------------------
@functools.partial(jax.jit, static_argnames=("block_b",))
def cvae1_forward(x, packed, *, block_b=4096):
    w_first, w_rest, b_all = packed
    B = x.shape[0]

    tb = _choose_tile(B, block_b)             # multiple of 8 sublanes, <= block_b
    b_pad = _round_up(B, tb)
    if b_pad != B:
        x = jnp.pad(x, ((0, b_pad - B), (0, 0)))

    grid = (b_pad // tb,)

    out = pl.pallas_call(
        _cvae1_kernel,
        out_shape=jax.ShapeDtypeStruct((b_pad, OUT_DIM), jnp.float32),
        grid=grid,
        in_specs=[
            pl.BlockSpec((tb, 78), lambda i: (i, 0)),                 # x: tiled over batch
            pl.BlockSpec((78, LANES), lambda i: (0, 0)),              # fused first-layer weight
            pl.BlockSpec((6, LANES, LANES), lambda i: (0, 0, 0)),     # packed remaining weights
            pl.BlockSpec((8, LANES), lambda i: (0, 0)),               # packed biases
        ],
        out_specs=pl.BlockSpec((tb, OUT_DIM), lambda i: (i, 0)),      # narrow (tb, 9) output block
        compiler_params=pltpu.CompilerParams(
            dimension_semantics=("parallel",),                        # shard batch over TCs (v7x)
        ),
    )(x, w_first, w_rest, b_all)

    return out if b_pad == B else out[:B]


# ---------------------------------------------------------------------------
# Pure-JAX f32 reference (original, un-folded PyTorch math) for verification.
# ---------------------------------------------------------------------------
def cvae1_reference(x, raw):
    (zx_w1, zx_b1, zx_w2, zx_b2, zx_w3, zx_b3, zx_w4, zx_b4,
     yx_w1, yx_b1, yx_w2, yx_b2, yx_w3, yx_b3, yx_w4, yx_b4) = raw

    def softplus(v):
        return jnp.where(v > 20.0, v, jnp.log1p(jnp.exp(v)))

    h = softplus(x @ zx_w1 + zx_b1)
    h = softplus(h @ zx_w2 + zx_b2)
    h = softplus(h @ zx_w3 + zx_b3)
    h = h @ zx_w4 + zx_b4
    mu = h[:, :3]
    xz = jnp.concatenate([x, mu], axis=1)
    g = softplus(xz @ yx_w1 + yx_b1)
    g = softplus(g @ yx_w2 + yx_b2)
    g = softplus(g @ yx_w3 + yx_b3)
    g = g @ yx_w4 + yx_b4
    return jax.nn.sigmoid(g)


if __name__ == "__main__":
    key = jax.random.PRNGKey(0)
    k_params, k_x = jax.random.split(key)

    B = 512  # small demo batch; exercises a 2-step "parallel" grid (tb = 256)
    x = jax.random.normal(k_x, (B, 78), dtype=jnp.float32)

    raw_params = make_params(k_params)
    packed = pack_params(raw_params)

    y = cvae1_forward(x, packed)
    y = jax.block_until_ready(y)

    y_ref = cvae1_reference(x, raw_params)
    assert y.shape == (B, 9)
    # Tolerance loosened vs. pure-f32: bf16 MXU inputs + approx reciprocal in the kernel.
    assert jnp.allclose(y, y_ref, atol=3e-2, rtol=3e-2), "Pallas output mismatch vs reference"

    print("KERNEL_OK")
</pallas_src>

<mosaic_0001>
module attributes {stable_mosaic.version = 11 : i64} {
  func.func @_cvae1_kernel(%arg0: i32, %arg1: memref<256x78xf32, #tpu.memory_space<vmem>>, %arg2: memref<78x128xbf16, #tpu.memory_space<vmem>>, %arg3: memref<6x128x128xbf16, #tpu.memory_space<vmem>>, %arg4: memref<8x128xf32, #tpu.memory_space<vmem>>, %arg5: memref<256x9xf32, #tpu.memory_space<vmem>>) attributes {dimension_semantics = [#tpu.dimension_semantics<parallel>], iteration_bounds = array<i64: 2>, scalar_prefetch = 0 : i64, scratch_operands = 0 : i64, tpu.core_type = #tpu.core_type<tc>, window_params = [{transform_indices = @transform_0, window_bounds = array<i64: 256, 78>}, {pipeline_mode = #tpu.pipeline_mode<synchronous>, transform_indices = @transform_1, window_bounds = array<i64: 78, 128>}, {pipeline_mode = #tpu.pipeline_mode<synchronous>, transform_indices = @transform_2, window_bounds = array<i64: 6, 128, 128>}, {pipeline_mode = #tpu.pipeline_mode<synchronous>, transform_indices = @transform_3, window_bounds = array<i64: 8, 128>}, {transform_indices = @transform_4, window_bounds = array<i64: 256, 9>}]} {
    %c0 = arith.constant 0 : index
    %c0_0 = arith.constant 0 : index
    %0 = vector.load %arg1[%c0, %c0_0] : memref<256x78xf32, #tpu.memory_space<vmem>>, vector<256x78xf32>
    %c0_1 = arith.constant 0 : index
    %c0_2 = arith.constant 0 : index
    %1 = vector.load %arg2[%c0_1, %c0_2] : memref<78x128xbf16, #tpu.memory_space<vmem>>, vector<78x128xbf16>
    %c0_3 = arith.constant 0 : index
    %c0_4 = arith.constant 0 : index
    %2 = vector.load %arg4[%c0_3, %c0_4] : memref<8x128xf32, #tpu.memory_space<vmem>>, vector<8x128xf32>
    %3 = arith.truncf %0 : vector<256x78xf32> to vector<256x78xbf16>
    %cst = arith.constant dense<0.000000e+00> : vector<256x128xf32>
    %4 = tpu.matmul %3, %1, %cst {dimension_numbers = #tpu.dot_dimension_numbers<[1], [0], [0], [1], [0, 0, 1, 1], [], []>} : vector<256x78xbf16>, vector<78x128xbf16>, vector<256x128xf32> -> vector<256x128xf32>
    %5 = vector.extract_strided_slice %2 {offsets = [0, 0], sizes = [1, 128], strides = [1, 1]} : vector<8x128xf32> to vector<1x128xf32>
    %6 = vector.broadcast %5 : vector<1x128xf32> to vector<256x128xf32>
    %7 = arith.addf %4, %6 : vector<256x128xf32>
    %cst_5 = arith.constant 2.000000e+01 : f32
    %8 = vector.broadcast %cst_5 : f32 to vector<256x128xf32>
    %9 = arith.cmpf ogt, %7, %8 : vector<256x128xf32>
    %10 = math.exp %7 : vector<256x128xf32>
    %11 = math.log1p %10 : vector<256x128xf32>
    %12 = arith.select %9, %7, %11 : vector<256x128xi1>, vector<256x128xf32>
    %c0_6 = arith.constant 0 : index
    %c0_7 = arith.constant 0 : index
    %c0_8 = arith.constant 0 : index
    %13 = vector.load %arg3[%c0_6, %c0_7, %c0_8] : memref<6x128x128xbf16, #tpu.memory_space<vmem>>, vector<1x128x128xbf16>
    %14 = vector.shape_cast %13 : vector<1x128x128xbf16> to vector<128x128xbf16>
    %15 = arith.truncf %12 : vector<256x128xf32> to vector<256x128xbf16>
    %cst_9 = arith.constant dense<0.000000e+00> : vector<256x128xf32>
    %16 = tpu.matmul %15, %14, %cst_9 {dimension_numbers = #tpu.dot_dimension_numbers<[1], [0], [0], [1], [0, 0, 1, 1], [], []>} : vector<256x128xbf16>, vector<128x128xbf16>, vector<256x128xf32> -> vector<256x128xf32>
    %17 = vector.extract_strided_slice %2 {offsets = [1, 0], sizes = [1, 128], strides = [1, 1]} : vector<8x128xf32> to vector<1x128xf32>
    %18 = vector.broadcast %17 : vector<1x128xf32> to vector<256x128xf32>
    %19 = arith.addf %16, %18 : vector<256x128xf32>
    %cst_10 = arith.constant 2.000000e+01 : f32
    %20 = vector.broadcast %cst_10 : f32 to vector<256x128xf32>
    %21 = arith.cmpf ogt, %19, %20 : vector<256x128xf32>
    %22 = math.exp %19 : vector<256x128xf32>
    %23 = math.log1p %22 : vector<256x128xf32>
    %24 = arith.select %21, %19, %23 : vector<256x128xi1>, vector<256x128xf32>
    %c1 = arith.constant 1 : index
    %c0_11 = arith.constant 0 : index
    %c0_12 = arith.constant 0 : index
    %25 = vector.load %arg3[%c1, %c0_11, %c0_12] : memref<6x128x128xbf16, #tpu.memory_space<vmem>>, vector<1x128x128xbf16>
    %26 = vector.shape_cast %25 : vector<1x128x128xbf16> to vector<128x128xbf16>
    %27 = arith.truncf %24 : vector<256x128xf32> to vector<256x128xbf16>
    %cst_13 = arith.constant dense<0.000000e+00> : vector<256x128xf32>
    %28 = tpu.matmul %27, %26, %cst_13 {dimension_numbers = #tpu.dot_dimension_numbers<[1], [0], [0], [1], [0, 0, 1, 1], [], []>} : vector<256x128xbf16>, vector<128x128xbf16>, vector<256x128xf32> -> vector<256x128xf32>
    %29 = vector.extract_strided_slice %2 {offsets = [2, 0], sizes = [1, 128], strides = [1, 1]} : vector<8x128xf32> to vector<1x128xf32>
    %30 = vector.broadcast %29 : vector<1x128xf32> to vector<256x128xf32>
    %31 = arith.addf %28, %30 : vector<256x128xf32>
    %cst_14 = arith.constant 2.000000e+01 : f32
    %32 = vector.broadcast %cst_14 : f32 to vector<256x128xf32>
    %33 = arith.cmpf ogt, %31, %32 : vector<256x128xf32>
    %34 = math.exp %31 : vector<256x128xf32>
    %35 = math.log1p %34 : vector<256x128xf32>
    %36 = arith.select %33, %31, %35 : vector<256x128xi1>, vector<256x128xf32>
    %c2 = arith.constant 2 : index
    %c0_15 = arith.constant 0 : index
    %c0_16 = arith.constant 0 : index
    %37 = vector.load %arg3[%c2, %c0_15, %c0_16] : memref<6x128x128xbf16, #tpu.memory_space<vmem>>, vector<1x128x128xbf16>
    %38 = vector.shape_cast %37 : vector<1x128x128xbf16> to vector<128x128xbf16>
    %39 = arith.truncf %36 : vector<256x128xf32> to vector<256x128xbf16>
    %cst_17 = arith.constant dense<0.000000e+00> : vector<256x128xf32>
    %40 = tpu.matmul %39, %38, %cst_17 {dimension_numbers = #tpu.dot_dimension_numbers<[1], [0], [0], [1], [0, 0, 1, 1], [], []>} : vector<256x128xbf16>, vector<128x128xbf16>, vector<256x128xf32> -> vector<256x128xf32>
    %41 = arith.addf %4, %40 : vector<256x128xf32>
    %42 = vector.extract_strided_slice %2 {offsets = [3, 0], sizes = [1, 128], strides = [1, 1]} : vector<8x128xf32> to vector<1x128xf32>
    %43 = vector.broadcast %42 : vector<1x128xf32> to vector<256x128xf32>
    %44 = arith.addf %41, %43 : vector<256x128xf32>
    %cst_18 = arith.constant 2.000000e+01 : f32
    %45 = vector.broadcast %cst_18 : f32 to vector<256x128xf32>
    %46 = arith.cmpf ogt, %44, %45 : vector<256x128xf32>
    %47 = math.exp %44 : vector<256x128xf32>
    %48 = math.log1p %47 : vector<256x128xf32>
    %49 = arith.select %46, %44, %48 : vector<256x128xi1>, vector<256x128xf32>
    %c3 = arith.constant 3 : index
    %c0_19 = arith.constant 0 : index
    %c0_20 = arith.constant 0 : index
    %50 = vector.load %arg3[%c3, %c0_19, %c0_20] : memref<6x128x128xbf16, #tpu.memory_space<vmem>>, vector<1x128x128xbf16>
    %51 = vector.shape_cast %50 : vector<1x128x128xbf16> to vector<128x128xbf16>
    %52 = arith.truncf %49 : vector<256x128xf32> to vector<256x128xbf16>
    %cst_21 = arith.constant dense<0.000000e+00> : vector<256x128xf32>
    %53 = tpu.matmul %52, %51, %cst_21 {dimension_numbers = #tpu.dot_dimension_numbers<[1], [0], [0], [1], [0, 0, 1, 1], [], []>} : vector<256x128xbf16>, vector<128x128xbf16>, vector<256x128xf32> -> vector<256x128xf32>
    %54 = vector.extract_strided_slice %2 {offsets = [4, 0], sizes = [1, 128], strides = [1, 1]} : vector<8x128xf32> to vector<1x128xf32>
    %55 = vector.broadcast %54 : vector<1x128xf32> to vector<256x128xf32>
    %56 = arith.addf %53, %55 : vector<256x128xf32>
    %cst_22 = arith.constant 2.000000e+01 : f32
    %57 = vector.broadcast %cst_22 : f32 to vector<256x128xf32>
    %58 = arith.cmpf ogt, %56, %57 : vector<256x128xf32>
    %59 = math.exp %56 : vector<256x128xf32>
    %60 = math.log1p %59 : vector<256x128xf32>
    %61 = arith.select %58, %56, %60 : vector<256x128xi1>, vector<256x128xf32>
    %c4 = arith.constant 4 : index
    %c0_23 = arith.constant 0 : index
    %c0_24 = arith.constant 0 : index
    %62 = vector.load %arg3[%c4, %c0_23, %c0_24] : memref<6x128x128xbf16, #tpu.memory_space<vmem>>, vector<1x128x128xbf16>
    %63 = vector.shape_cast %62 : vector<1x128x128xbf16> to vector<128x128xbf16>
    %64 = arith.truncf %61 : vector<256x128xf32> to vector<256x128xbf16>
    %cst_25 = arith.constant dense<0.000000e+00> : vector<256x128xf32>
    %65 = tpu.matmul %64, %63, %cst_25 {dimension_numbers = #tpu.dot_dimension_numbers<[1], [0], [0], [1], [0, 0, 1, 1], [], []>} : vector<256x128xbf16>, vector<128x128xbf16>, vector<256x128xf32> -> vector<256x128xf32>
    %66 = vector.extract_strided_slice %2 {offsets = [5, 0], sizes = [1, 128], strides = [1, 1]} : vector<8x128xf32> to vector<1x128xf32>
    %67 = vector.broadcast %66 : vector<1x128xf32> to vector<256x128xf32>
    %68 = arith.addf %65, %67 : vector<256x128xf32>
    %cst_26 = arith.constant 2.000000e+01 : f32
    %69 = vector.broadcast %cst_26 : f32 to vector<256x128xf32>
    %70 = arith.cmpf ogt, %68, %69 : vector<256x128xf32>
    %71 = math.exp %68 : vector<256x128xf32>
    %72 = math.log1p %71 : vector<256x128xf32>
    %73 = arith.select %70, %68, %72 : vector<256x128xi1>, vector<256x128xf32>
    %c5 = arith.constant 5 : index
    %c0_27 = arith.constant 0 : index
    %c0_28 = arith.constant 0 : index
    %74 = vector.load %arg3[%c5, %c0_27, %c0_28] : memref<6x128x128xbf16, #tpu.memory_space<vmem>>, vector<1x128x128xbf16>
    %75 = vector.shape_cast %74 : vector<1x128x128xbf16> to vector<128x128xbf16>
    %76 = arith.truncf %73 : vector<256x128xf32> to vector<256x128xbf16>
    %cst_29 = arith.constant dense<0.000000e+00> : vector<256x128xf32>
    %77 = tpu.matmul %76, %75, %cst_29 {dimension_numbers = #tpu.dot_dimension_numbers<[1], [0], [0], [1], [0, 0, 1, 1], [], []>} : vector<256x128xbf16>, vector<128x128xbf16>, vector<256x128xf32> -> vector<256x128xf32>
    %78 = vector.extract_strided_slice %2 {offsets = [6, 0], sizes = [1, 128], strides = [1, 1]} : vector<8x128xf32> to vector<1x128xf32>
    %79 = vector.broadcast %78 : vector<1x128xf32> to vector<256x128xf32>
    %80 = arith.addf %77, %79 : vector<256x128xf32>
    %cst_30 = arith.constant 0.000000e+00 : f32
    %81 = vector.broadcast %cst_30 : f32 to vector<256x128xf32>
    %82 = arith.subf %81, %80 : vector<256x128xf32>
    %83 = math.exp %82 : vector<256x128xf32>
    %cst_31 = arith.constant 1.000000e+00 : f32
    %84 = vector.broadcast %cst_31 : f32 to vector<256x128xf32>
    %85 = arith.addf %84, %83 : vector<256x128xf32>
    %86 = tpu.reciprocal %85 {approx = true} : vector<256x128xf32> -> vector<256x128xf32>
    %87 = vector.extract_strided_slice %86 {offsets = [0, 0], sizes = [256, 9], strides = [1, 1]} : vector<256x128xf32> to vector<256x9xf32>
    %c0_32 = arith.constant 0 : index
    %c0_33 = arith.constant 0 : index
    %88 = vector.load %arg5[%c0_32, %c0_33] : memref<256x9xf32, #tpu.memory_space<vmem>>, vector<256x9xf32>
    tpu.vector_store %arg5[%c0_32, %c0_33], %87 {strides = array<i32>} : memref<256x9xf32, #tpu.memory_space<vmem>>, vector<256x9xf32>,
    return
  }
  func.func @transform_0(%arg0: i32) -> (i32, i32) {
    %c0_i32 = arith.constant 0 : i32
    %c0_i32_0 = arith.constant 0 : i32
    return %arg0, %c0_i32 : i32, i32
  }
  func.func @transform_1(%arg0: i32) -> (i32, i32) {
    %c0_i32 = arith.constant 0 : i32
    %c0_i32_0 = arith.constant 0 : i32
    %c0_i32_1 = arith.constant 0 : i32
    return %c0_i32, %c0_i32_0 : i32, i32
  }
  func.func @transform_2(%arg0: i32) -> (i32, i32, i32) {
    %c0_i32 = arith.constant 0 : i32
    %c0_i32_0 = arith.constant 0 : i32
    %c0_i32_1 = arith.constant 0 : i32
    %c0_i32_2 = arith.constant 0 : i32
    return %c0_i32, %c0_i32_0, %c0_i32_1 : i32, i32, i32
  }
  func.func @transform_3(%arg0: i32) -> (i32, i32) {
    %c0_i32 = arith.constant 0 : i32
    %c0_i32_0 = arith.constant 0 : i32
    %c0_i32_1 = arith.constant 0 : i32
    return %c0_i32, %c0_i32_0 : i32, i32
  }
  func.func @transform_4(%arg0: i32) -> (i32, i32) {
    %c0_i32 = arith.constant 0 : i32
    %c0_i32_0 = arith.constant 0 : i32
    return %arg0, %c0_i32 : i32, i32
  }
}

</mosaic_0001>

<bundles_post_ra>
// kernel: cvae1_forward.1
= control target key start
LH: loop header
LB: loop body
LE: loop exit
PB: predicated region body
PF: predicated region fallthrough
CT: control target
= control target key end

     0   :  { %s5633_s15 = smov 0   ;;  %s8160_s0 = inlined_call_operand.vmem [shape: f32[512,78], index: 0, kind: input, shape index: {}]   ;;  %s8161_s1 = inlined_call_operand.vmem [shape: bf16[78,128], index: 1, kind: input, shape index: {}]   ;;  %s8162_s2 = inlined_call_operand.vmem [shape: bf16[6,128,128], index: 2, kind: input, shape index: {}]   ;;  %s8163_s3 = inlined_call_operand.vmem [shape: f32[8,128], index: 3, kind: input, shape index: {}]   ;;  %s8164_s4 = inlined_call_operand.vmem [shape: f32[512,9], index: 4, kind: output, shape index: {}]  }
   0x1 LB: > { %s4299_s16 = sadd.s32 4294967295, %s5606_s15   ;;  %p4303_p0 = scmp.ge.s32.totalorder %s5606_s15, 1  ;;  %s5606_s15 = sphi %s5633_s15, %s14_s15  }
   0x2   : > { %p163_p1 = scmp.lt.s32.totalorder %s5606_s15, 3 }
   0x4   : > { %p164_p2 = pnand %p4303_p0, %p163_p1 }
   0x6   : > { %167 = sbr.rel (%p164_p2) target bundleno = 1511 (0x5e7), region = 36 }
   0xb   : > { %v4326_v0 = vld [vmem:[%s8161_s1 + $0x20] sm:$0xf]  ;;  %v4622_v1 = vld [vmem:[%s8161_s1 + $0x20] sm:$0x70]  ;;  %vm339_vm0 = vcmask 1046528   ;;  %s4304_s21 = sshll.u32 %s4299_s16, 5 }
   0xc   : > { %v4327_v2 = vor.u32 %v4622_v1, %v4326_v0  ;;  %p190_p3 = scmp.lt.s32.totalorder %s4304_s21, 63  ;;  %v4621_v4 = vld [vmem:[%s8161_s1 + $0x18] sm:$0xff]  ;;  %v4620_v5 = vld [vmem:[%s8161_s1 + $0x10] sm:$0xff]  ;;  %v4619_v6 = vld [vmem:[%s8161_s1 + $0x8] sm:$0xff]  ;;  %vm290_vm1 = vcmask 637952  }
   0xd   : > { %v4618_v7 = vld [vmem:[%s8161_s1] sm:$0xff]  ;;  %v4630_v29 = vld [vmem:[%s8162_s2 + $0x38] sm:$0xff]  ;;  %v4629_v30 = vld [vmem:[%s8162_s2 + $0x30] sm:$0xff] }
   0xe   : > { %v341_v3 = vsel %vm339_vm0, %v4327_v2, 0  ;;  %s8353_s21 = smov (!%p190_p3, %s4304_s21), 63  ;;  %962 = vmatpush.bf16.msra.mxu1 %v4630_v29  ;;  %v4628_v31 = vld [vmem:[%s8162_s2 + $0x28] sm:$0xff]  ;;  %v4627_v34 = vld [vmem:[%s8162_s2 + $0x20] sm:$0xff]  ;;  %v4626_v36 = vld [vmem:[%s8162_s2 + $0x18] sm:$0xff] }
   0xf   : > { %346 = vmatpush.bf16.msra.mxu0 %v341_v3  ;;  %4671 = vmatpush.bf16.msra.mxu3 %v341_v3  ;;  %s4305_s26 = sshll.u32 %s8353_s21, 3  ;;  %v4625_v37 = vld [vmem:[%s8162_s2 + $0x10] sm:$0xff]  ;;  %v5714_v38 = vld [vmem:[%s8163_s3] sm:$0xff]  ;;  %v4624_v39 = vld [vmem:[%s8162_s2 + $0x8] sm:$0xff] }
  0x10   : > { %s5664_s5 = scalar_lea.vmem %s8160_s0, %s4305_s26  ;;  %v5722_v42 = vperm.slane %v5714_v38, 0  ;;  %v4623_v43 = vld [vmem:[%s8162_s2] sm:$0xff]  ;;  %s7965_s27 = scalar_lea.vmem %s8164_s4, %s4305_s26 }
  0x11   : > { %v202_v8 = vld [vmem:[%s5664_s5] sm:$0xff]  ;;  %v203_v9 = vld [vmem:[%s5664_s5 + $0x8] sm:$0xff]  ;;  %v204_v11 = vld [vmem:[%s5664_s5 + $0x10] sm:$0xff] }
  0x12   : > { %v245_v10 = vpack.c.bf16 %v203_v9, %v202_v8  ;;  %v205_v12 = vld [vmem:[%s5664_s5 + $0x18] sm:$0xff]  ;;  %v206_v14 = vld [vmem:[%s5664_s5 + $0x20] sm:$0xff]  ;;  %v207_v15 = vld [vmem:[%s5664_s5 + $0x28] sm:$0xff]  ;;  %963 = vmatpush.bf16.msra.mxu1 %v4629_v30 }
  0x13   : > { %347 = vmatpush.bf16.msra.mxu0 %v4621_v4  ;;  %4672 = vmatpush.bf16.msra.mxu3 %v4621_v4  ;;  %v246_v13 = vpack.c.bf16 %v205_v12, %v204_v11  ;;  %v247_v16 = vpack.c.bf16 %v207_v15, %v206_v14  ;;  %v208_v17 = vld [vmem:[%s5664_s5 + $0x30] sm:$0xff]  ;;  %v209_v18 = vld [vmem:[%s5664_s5 + $0x38] sm:$0xff]  ;;  %v210_v20 = vld [vmem:[%s5664_s5 + $0x40] sm:$0xff] }
  0x14   : > { %v248_v19 = vpack.c.bf16 %v209_v18, %v208_v17  ;;  %v211_v21 = vld [vmem:[%s5664_s5 + $0x48] sm:$0xff]  ;;  %v212_v23 = vld [vmem:[%s5664_s5 + $0x50] sm:$0xff]  ;;  %v213_v24 = vld [vmem:[%s5664_s5 + $0x58] sm:$0xff] }
  0x15   : > { %v249_v22 = vpack.c.bf16 %v211_v21, %v210_v20  ;;  %v250_v25 = vpack.c.bf16 %v213_v24, %v212_v23  ;;  %v214_v26 = vld [vmem:[%s5664_s5 + $0x60] sm:$0xff]  ;;  %v215_v27 = vld [vmem:[%s5664_s5 + $0x68] sm:$0xff]  ;;  %v216_v32 = vld [vmem:[%s5664_s5 + $0x70] sm:$0xff] }
  0x16   : > { %v251_v28 = vpack.c.bf16 %v215_v27, %v214_v26  ;;  %v217_v33 = vld [vmem:[%s5664_s5 + $0x78] sm:$0xff]  ;;  %964 = vmatpush.bf16.msra.mxu1 %v4628_v31  ;;  %v218_v40 = vld [vmem:[%s5664_s5 + $0x80] sm:$0xff]  ;;  %v219_v41 = vld [vmem:[%s5664_s5 + $0x88] sm:$0xff] }
  0x17   : > { %348 = vmatpush.bf16.msra.mxu0 %v4620_v5  ;;  %4673 = vmatpush.bf16.msra.mxu3 %v4620_v5  ;;  %v252_v35 = vpack.c.bf16 %v217_v33, %v216_v32  ;;  %v253_v44 = vpack.c.bf16 %v219_v41, %v218_v40  ;;  %v220_v52 = vld [vmem:[%s5664_s5 + $0x90] sm:$0xff]  ;;  %v221_v53 = vld [vmem:[%s5664_s5 + $0x98] sm:$0xff]  ;;  %v222_v14 = vld [vmem:[%s5664_s5 + $0xa0] sm:$0xff] }
  0x18   : > { %v228_v55 = vld [vmem:[%s5664_s5 + $0xd0] sm:$0xff]  ;;  %v229_v56 = vld [vmem:[%s5664_s5 + $0xd8] sm:$0xff]  ;;  %v254_v58 = vpack.c.bf16 %v221_v53, %v220_v52  ;;  %v223_v15 = vld [vmem:[%s5664_s5 + $0xa8] sm:$0xff] }
  0x19   : > { %v258_v57 = vpack.c.bf16 %v229_v56, %v228_v55  ;;  %v230_v21 = vld [vmem:[%s5664_s5 + $0xe0] sm:$0xff]  ;;  %v255_v24 = vpack.c.bf16 %v223_v15, %v222_v14  ;;  %v224_v52 = vld [vmem:[%s5664_s5 + $0xb0] sm:$0xff]  ;;  %v225_v53 = vld [vmem:[%s5664_s5 + $0xb8] sm:$0xff] }
  0x1a   : > { %965 = vmatpush.bf16.msra.mxu1 %v4627_v34 }
  0x1b   : > { %349 = vmatpush.bf16.msra.mxu0 %v4619_v6  ;;  %4674 = vmatpush.bf16.msra.mxu3 %v4619_v6 }
  0x1e   : > { %966 = vmatpush.bf16.msra.mxu1 %v4626_v36 }
  0x1f   : > { %350 = vmatpush.bf16.msra.mxu0 %v4618_v7  ;;  %4675 = vmatpush.bf16.msra.mxu3 %v4618_v7 }
  0x22   : > { %4328 = vmatmul.msk.bf16.vlgmr.msra.gmra.mxu0 %vm290_vm1, %v245_v10  ;;  %967 = vmatpush.bf16.msra.mxu1 %v4625_v37 }
  0x23   : > { %4676 = vmatpush.bf16.msrb.mxu3 %v4630_v29 }
  0x24   : > { %4341 = vmatmul.msk.bf16.vlgmr.msra.gmra.mxu3 %vm290_vm1, %v258_v57 }
  0x26   : > { %968 = vmatpush.bf16.msra.mxu1 %v4624_v39 }
  0x27   : > { %4677 = vmatpush.bf16.msrb.mxu3 %v4629_v30 }
  0x2a   : > { %969 = vmatpush.bf16.msra.mxu1 %v4623_v43 }
  0x2b   : > { %4678 = vmatpush.bf16.msrb.mxu3 %v4628_v31 }
  0x2f   : > { %4679 = vmatpush.bf16.msrb.mxu3 %v4627_v34 }
  0x32   : > { %4329 = vmatmul.msk.bf16.gmra.mxu0 %vm290_vm1, %v246_v13 }
  0x33   : > { %4680 = vmatpush.bf16.msrb.mxu3 %v4626_v36 }
  0x37   : > { %4681 = vmatpush.bf16.msrb.mxu3 %v4625_v37 }
  0x3b   : > { %4682 = vmatpush.bf16.msrb.mxu3 %v4624_v39 }
  0x3f   : > { %4683 = vmatpush.bf16.msrb.mxu3 %v4623_v43 }
  0x42   : > { %4330 = vmatmul.msk.bf16.gmra.mxu0 %vm290_vm1, %v247_v16 }
  0x52   : > { %4331 = vmatmul.msk.bf16.gmra.mxu0 %vm290_vm1, %v248_v19 }
  0x62   : > { %4332 = vmatmul.msk.bf16.gmra.mxu0 %vm290_vm1, %v249_v22  ;;  %v231_v22 = vld [vmem:[%s5664_s5 + $0xe8] sm:$0xff] }
  0x63   : > { %v259_v23 = vpack.c.bf16 %v231_v22, %v230_v21 }
  0x65   : > { %4342 = vmatmul.msk.bf16.gmra.mxu3 %vm290_vm1, %v259_v23 }
  0x72   : > { %4333 = vmatmul.msk.bf16.gmra.mxu0 %vm290_vm1, %v250_v25 }
  0x82   : > { %4334 = vmatmul.msk.bf16.gmra.mxu0 %vm290_vm1, %v251_v28 }
  0x92   : > { %4335 = vmatmul.msk.bf16.gmra.mxu0 %vm290_vm1, %v252_v35 }
  0x9f   : > { %v5727_v45 = vpop.f32.mrf.mxu0 }
  0xa0   : > { %v433_v46 = vadd.f32 %v5722_v42, %v5727_v45 }
  0xa2   : > { %v497_v47 = vmul.f32 1.442695, %v433_v46  ;;  %4336 = vmatmul.msk.bf16.gmra.mxu0 %vm290_vm1, %v253_v44  ;;  %vm465_vm4 = vcmp.gt.f32.partialorder %v433_v46, 20.0 }
  0xa4   : > { %4700 = vpow2.f32 %v497_v47 }
  0xa7   : > { %v5732_v48 = vpop.f32.mrf.mxu0 }
  0xa8   : > { %v434_v49 = vadd.f32 %v5722_v42, %v5732_v48 }
  0xaa   : > { %v4701_v50 = vpop.eup %4700  ;;  %v499_v51 = vmul.f32 1.442695, %v434_v49  ;;  %vm466_vm5 = vcmp.gt.f32.partialorder %v434_v49, 20.0 }
  0xab   : > { %v561_v54 = vadd.f32 1.0, %v4701_v50  ;;  %v564_v63 = vmul.f32 -0.5, %v4701_v50  ;;  %v567_v5 = vand.u32 2147483647, %v4701_v50 }
  0xac   : > { %4702 = vpow2.f32 %v499_v51 }
  0xad   : > { %4704 = vlog2.f32 %v561_v54  ;;  %v565_v3 = vadd.f32 1.0, %v564_v63  ;;  %vm5758_vm2 = vcmp.lt.f32.partialorder %v567_v5, 0.0004427343 }
  0xaf   : > { %v5740_v59 = vpop.f32.mrf.mxu0  ;;  %v566_v12 = vmul.f32 %v4701_v50, %v565_v3 }
  0xb0   : > { %v5745_v60 = vadd.f32 %v5722_v42, %v5740_v59 }
  0xb2   : > { %v4703_v61 = vpop.eup %4702  ;;  %v501_v62 = vmul.f32 1.442695, %v5745_v60  ;;  %4337 = vmatmul.msk.bf16.gmra.mxu0 %vm290_vm1, %v254_v58  ;;  %vm467_vm8 = vcmp.gt.f32.partialorder %v5745_v60, 20.0 }
  0xb3   : > { %v570_v0 = vadd.f32 1.0, %v4703_v61  ;;  %v573_v1 = vmul.f32 -0.5, %v4703_v61  ;;  %v4705_v2 = vpop.eup %4704  ;;  %v576_v9 = vand.u32 2147483647, %v4703_v61 }
  0xb4   : > { %4706 = vpow2.f32 %v501_v62  ;;  %v563_v7 = vmul.f32 0.6931472, %v4705_v2  ;;  %v233_v62 = vld [vmem:[%s5664_s5 + $0xf8] sm:$0xff] }
  0xb5   : > { %4708 = vlog2.f32 %v570_v0  ;;  %v574_v8 = vadd.f32 1.0, %v573_v1  ;;  %vm577_vm3 = vcmp.lt.f32.partialorder %v576_v9, 0.0004427343  ;;  %v256_v0 = vpack.c.bf16 %v225_v53, %v224_v52 }
  0xb6   : > { %v569_v18 = vsel %vm5758_vm2, %v566_v12, %v563_v7 }
  0xb7   : > { %v5749_v4 = vpop.f32.mrf.mxu0  ;;  %v575_v20 = vmul.f32 %v4703_v61, %v574_v8  ;;  %v849_v27 = vsel %vm465_vm4, %v433_v46, %v569_v18  ;;  %v232_v61 = vld [vmem:[%s5664_s5 + $0xf0] sm:$0xff] }
  0xb8   : > { %v5753_v6 = vadd.f32 %v5722_v42, %v5749_v4  ;;  %v260_v63 = vpack.c.bf16 %v233_v62, %v232_v61 }
  0xba   : > { %v4707_v10 = vpop.eup %4706  ;;  %v503_v11 = vmul.f32 1.442695, %v5753_v6  ;;  %vm468_vm9 = vcmp.gt.f32.partialorder %v5753_v6, 20.0  ;;  %4343 = vmatmul.msk.bf16.gmra.mxu3 %vm290_vm1, %v260_v63 }
  0xbb   : > { %v4709_v13 = vpop.eup %4708  ;;  %v579_v17 = vadd.f32 1.0, %v4707_v10  ;;  %v582_v33 = vmul.f32 -0.5, %v4707_v10  ;;  %v585_v40 = vand.u32 2147483647, %v4707_v10 }
  0xbc   : > { %4710 = vpow2.f32 %v503_v11  ;;  %v572_v19 = vmul.f32 0.6931472, %v4709_v13 }
  0xbd   : > { %4712 = vlog2.f32 %v579_v17  ;;  %v583_v37 = vadd.f32 1.0, %v582_v33  ;;  %vm5784_vm6 = vcmp.lt.f32.partialorder %v585_v40, 0.0004427343 }
  0xbe   : > { %v578_v25 = vsel %vm577_vm3, %v575_v20, %v572_v19 }
  0xbf   : > { %v5766_v26 = vpop.f32.mrf.mxu0  ;;  %v850_v28 = vsel %vm466_vm5, %v434_v49, %v578_v25  ;;  %v584_v50 = vmul.f32 %v4707_v10, %v583_v37  ;;  %v227_v25 = vld [vmem:[%s5664_s5 + $0xc8] sm:$0xff] }
  0xc0   : > { %v5771_v29 = vadd.f32 %v5722_v42, %v5766_v26  ;;  %v897_v30 = vpack.c.bf16 %v850_v28, %v849_v27 }
  0xc2   : > { %v4711_v31 = vpop.eup %4710  ;;  %v505_v32 = vmul.f32 1.442695, %v5771_v29  ;;  %4338 = vmatmul.msk.bf16.gmra.mxu0 %vm290_vm1, %v255_v24  ;;  %970 = vmatmul.bf16.vlgmr.msra.gmra.mxu1 %v897_v30  ;;  %v226_v24 = vld [vmem:[%s5664_s5 + $0xc0] sm:$0xff]  ;;  %vm469_vm12 = vcmp.gt.f32.partialorder %v5771_v29, 20.0 }
  0xc3   : > { %v588_v34 = vadd.f32 1.0, %v4711_v31  ;;  %v591_v35 = vmul.f32 -0.5, %v4711_v31  ;;  %v4713_v36 = vpop.eup %4712  ;;  %v594_v46 = vand.u32 2147483647, %v4711_v31 }
  0xc4   : > { %4714 = vpow2.f32 %v505_v32  ;;  %v581_v43 = vmul.f32 0.6931472, %v4713_v36  ;;  %v257_v32 = vpack.c.bf16 %v227_v25, %v226_v24 }
  0xc5   : > { %4716 = vlog2.f32 %v588_v34  ;;  %v592_v44 = vadd.f32 1.0, %v591_v35  ;;  %vm595_vm7 = vcmp.lt.f32.partialorder %v594_v46, 0.0004427343 }
  0xc6   : > { %v587_v56 = vsel %vm5784_vm6, %v584_v50, %v581_v43 }
  0xc7   : > { %v5775_v39 = vpop.f32.mrf.mxu0  ;;  %v593_v58 = vmul.f32 %v4711_v31, %v592_v44  ;;  %v851_v3 = vsel %vm467_vm8, %v5745_v60, %v587_v56 }
  0xc8   : > { %v5779_v41 = vadd.f32 %v5722_v42, %v5775_v39 }
  0xca   : > { %v4715_v47 = vpop.eup %4714  ;;  %v507_v49 = vmul.f32 1.442695, %v5779_v41  ;;  %vm470_vm13 = vcmp.gt.f32.partialorder %v5779_v41, 20.0 }
  0xcb   : > { %v4717_v51 = vpop.eup %4716  ;;  %v597_v55 = vadd.f32 1.0, %v4715_v47  ;;  %v600_v11 = vmul.f32 -0.5, %v4715_v47  ;;  %v603_v15 = vand.u32 2147483647, %v4715_v47 }
  0xcc   : > { %4718 = vpow2.f32 %v507_v49  ;;  %v590_v57 = vmul.f32 0.6931472, %v4717_v51 }
  0xcd   : > { %4720 = vlog2.f32 %v597_v55  ;;  %v601_v13 = vadd.f32 1.0, %v600_v11  ;;  %vm604_vm10 = vcmp.lt.f32.partialorder %v603_v15, 0.0004427343 }
  0xce   : > { %v596_v1 = vsel %vm595_vm7, %v593_v58, %v590_v57 }
  0xcf   : > { %v5794_v2 = vpop.f32.mrf.mxu0  ;;  %v852_v5 = vsel %vm468_vm9, %v5753_v6, %v596_v1  ;;  %v602_v22 = vmul.f32 %v4715_v47, %v601_v13 }
  0xd0   : > { %v5801_v7 = vadd.f32 %v5722_v42, %v5794_v2  ;;  %v898_v8 = vpack.c.bf16 %v852_v5, %v851_v3 }
  0xd2   : > { %v4719_v9 = vpop.eup %4718  ;;  %v509_v10 = vmul.f32 1.442695, %v5801_v7  ;;  %4339 = vmatmul.msk.bf16.gmra.mxu0 %vm290_vm1, %v256_v0  ;;  %975 = vmatmul.bf16.gmra.mxu1 %v898_v8  ;;  %vm471_vm0 = vcmp.gt.f32.partialorder %v5801_v7, 20.0 }
  0xd3   : > { %v606_v12 = vadd.f32 1.0, %v4719_v9  ;;  %v609_v60 = vmul.f32 -0.5, %v4719_v9  ;;  %v4721_v6 = vpop.eup %4720  ;;  %v612_v19 = vand.u32 2147483647, %v4719_v9 }
  0xd4   : > { %4722 = vpow2.f32 %v509_v10  ;;  %v599_v17 = vmul.f32 0.6931472, %v4721_v6 }
  0xd5   : > { %4724 = vlog2.f32 %v606_v12  ;;  %v610_v18 = vadd.f32 1.0, %v609_v60  ;;  %vm613_vm11 = vcmp.lt.f32.partialorder %v612_v19, 0.0004427343 }
  0xd6   : > { %v605_v28 = vsel %vm604_vm10, %v602_v22, %v599_v17 }
  0xd7   : > { %v5805_v14 = vpop.f32.mrf.mxu0  ;;  %v611_v31 = vmul.f32 %v4719_v9, %v610_v18  ;;  %v853_v35 = vsel %vm469_vm12, %v5771_v29, %v605_v28 }
  0xd8   : > { %v440_v16 = vadd.f32 %v5722_v42, %v5805_v14 }
  0xda   : > { %v4723_v20 = vpop.eup %4722  ;;  %v511_v21 = vmul.f32 1.442695, %v440_v16 }
  0xdb   : > { %v4725_v23 = vpop.eup %4724  ;;  %v615_v27 = vadd.f32 1.0, %v4723_v20  ;;  %v618_v46 = vmul.f32 -0.5, %v4723_v20  ;;  %v621_v51 = vand.u32 2147483647, %v4723_v20 }
  0xdc   : > { %4726 = vpow2.f32 %v511_v21  ;;  %v608_v30 = vmul.f32 0.6931472, %v4725_v23 }
  0xdd   : > { %4728 = vlog2.f32 %v615_v27  ;;  %v619_v29 = vadd.f32 1.0, %v618_v46  ;;  %vm622_vm14 = vcmp.lt.f32.partialorder %v621_v51, 0.0004427343 }
  0xde   : > { %v614_v33 = vsel %vm613_vm11, %v611_v31, %v608_v30 }
  0xdf   : > { %v5813_v34 = vpop.f32.mrf.mxu0  ;;  %v854_v36 = vsel %vm470_vm13, %v5779_v41, %v614_v33  ;;  %v620_v58 = vmul.f32 %v4723_v20, %v619_v29 }
  0xe0   : > { %v5819_v37 = vadd.f32 %v5722_v42, %v5813_v34  ;;  %v899_v40 = vpack.c.bf16 %v854_v36, %v853_v35 }
  0xe2   : > { %v4727_v43 = vpop.eup %4726  ;;  %v513_v44 = vmul.f32 1.442695, %v5819_v37  ;;  %4340 = vmatmul.msk.bf16.gmra.mxu0 %vm290_vm1, %v257_v32  ;;  %980 = vmatmul.bf16.gmra.mxu1 %v899_v40  ;;  %vm472_vm1 = vcmp.gt.f32.partialorder %v440_v16, 20.0  ;;  %vm473_vm4 = vcmp.gt.f32.partialorder %v5819_v37, 20.0 }
  0xe3   : > { %v624_v47 = vadd.f32 1.0, %v4727_v43  ;;  %v627_v49 = vmul.f32 -0.5, %v4727_v43  ;;  %v4729_v50 = vpop.eup %4728  ;;  %v630_v55 = vand.u32 2147483647, %v4727_v43 }
  0xe4   : > { %4730 = vpow2.f32 %v513_v44  ;;  %v617_v53 = vmul.f32 0.6931472, %v4729_v50 }
  0xe5   : > { %4732 = vlog2.f32 %v624_v47  ;;  %v628_v54 = vadd.f32 1.0, %v627_v49  ;;  %vm631_vm15 = vcmp.lt.f32.partialorder %v630_v55, 0.0004427343 }
  0xe6   : > { %v623_v63 = vsel %vm622_vm14, %v620_v58, %v617_v53 }
  0xe7   : > { %v5823_v41 = vpop.f32.mrf.mxu0  ;;  %v629_v1 = vmul.f32 %v4727_v43, %v628_v54  ;;  %v855_v8 = vsel %vm471_vm0, %v5801_v7, %v623_v63 }
  0xe8   : > { %v442_v52 = vadd.f32 %v5722_v42, %v5823_v41 }
  0xea   : > { %v4731_v56 = vpop.eup %4730  ;;  %v515_v57 = vmul.f32 1.442695, %v442_v52  ;;  %vm474_vm5 = vcmp.gt.f32.partialorder %v442_v52, 20.0 }
  0xeb   : > { %v4733_v61 = vpop.eup %4732  ;;  %v633_v62 = vadd.f32 1.0, %v4731_v56  ;;  %v636_v6 = vmul.f32 -0.5, %v4731_v56  ;;  %v639_v7 = vand.u32 2147483647, %v4731_v56 }
  0xec   : > { %4734 = vpow2.f32 %v515_v57  ;;  %v626_v0 = vmul.f32 0.6931472, %v4733_v61 }
  0xed   : > { %4736 = vlog2.f32 %v633_v62  ;;  %v637_v18 = vadd.f32 1.0, %v636_v6  ;;  %vm640_vm2 = vcmp.lt.f32.partialorder %v639_v7, 0.0004427343 }
  0xee   : > { %v632_v3 = vsel %vm631_vm15, %v629_v1, %v626_v0 }
  0xef   : > { %v5828_v5 = vpop.f32.mrf.mxu0  ;;  %v856_v9 = vsel %vm472_vm1, %v440_v16, %v632_v3  ;;  %v638_v25 = vmul.f32 %v4731_v56, %v637_v18 }
  0xf0   : > { %v5833_v10 = vadd.f32 %v5722_v42, %v5828_v5  ;;  %v900_v11 = vpack.c.bf16 %v856_v9, %v855_v8 }
  0xf2   : > { %v4735_v12 = vpop.eup %4734  ;;  %v517_v60 = vmul.f32 1.442695, %v5833_v10  ;;  %985 = vmatmul.bf16.gmra.mxu1 %v900_v11  ;;  %vm475_vm8 = vcmp.gt.f32.partialorder %v5833_v10, 20.0 }
  0xf3   : > { %v642_v13 = vadd.f32 1.0, %v4735_v12  ;;  %v645_v15 = vmul.f32 -0.5, %v4735_v12  ;;  %v4737_v17 = vpop.eup %4736  ;;  %v648_v22 = vand.u32 2147483647, %v4735_v12 }
  0xf4   : > { %4738 = vpow2.f32 %v517_v60  ;;  %v635_v20 = vmul.f32 0.6931472, %v4737_v17 }
  0xf5   : > { %4740 = vlog2.f32 %v642_v13  ;;  %v646_v21 = vadd.f32 1.0, %v645_v15  ;;  %vm649_vm3 = vcmp.lt.f32.partialorder %v648_v22, 0.0004427343 }
  0xf6   : > { %v641_v30 = vsel %vm640_vm2, %v638_v25, %v635_v20 }
  0xf7   : > { %v5836_v19 = vpop.f32.mrf.mxu0  ;;  %v647_v32 = vmul.f32 %v4735_v12, %v646_v21  ;;  %v857_v36 = vsel %vm473_vm4, %v5819_v37, %v641_v30 }
  0xf8   : > { %v444_v16 = vadd.f32 %v5722_v42, %v5836_v19 }
  0xfa   : > { %v4739_v23 = vpop.eup %4738  ;;  %v519_v24 = vmul.f32 1.442695, %v444_v16  ;;  %vm476_vm9 = vcmp.gt.f32.partialorder %v444_v16, 20.0 }
  0xfb   : > { %v4741_v27 = vpop.eup %4740  ;;  %v651_v28 = vadd.f32 1.0, %v4739_v23  ;;  %v654_v49 = vmul.f32 -0.5, %v4739_v23  ;;  %v657_v37 = vand.u32 2147483647, %v4739_v23 }
  0xfc   : > { %4742 = vpow2.f32 %v519_v24  ;;  %v644_v31 = vmul.f32 0.6931472, %v4741_v27 }
  0xfd   : > { %4744 = vlog2.f32 %v651_v28  ;;  %v655_v53 = vadd.f32 1.0, %v654_v49  ;;  %vm658_vm6 = vcmp.lt.f32.partialorder %v657_v37, 0.0004427343 }
  0xfe   : > { %v650_v33 = vsel %vm649_vm3, %v647_v32, %v644_v31 }
  0xff   : > { %v5841_v35 = vpop.f32.mrf.mxu0  ;;  %v858_v40 = vsel %vm474_vm5, %v442_v52, %v650_v33  ;;  %v656_v62 = vmul.f32 %v4739_v23, %v655_v53 }
 0x100   : > { %v5846_v43 = vadd.f32 %v5722_v42, %v5841_v35  ;;  %v901_v44 = vpack.c.bf16 %v858_v40, %v857_v36 }
 0x102   : > { %v4743_v46 = vpop.eup %4742  ;;  %v521_v47 = vmul.f32 1.442695, %v5846_v43  ;;  %990 = vmatmul.bf16.gmra.mxu1 %v901_v44  ;;  %vm477_vm12 = vcmp.gt.f32.partialorder %v5846_v43, 20.0 }
 0x103   : > { %v660_v50 = vadd.f32 1.0, %v4743_v46  ;;  %v663_v29 = vmul.f32 -0.5, %v4743_v46  ;;  %v4745_v51 = vpop.eup %4744  ;;  %v666_v57 = vand.u32 2147483647, %v4743_v46 }
 0x104   : > { %4746 = vpow2.f32 %v521_v47  ;;  %v653_v55 = vmul.f32 0.6931472, %v4745_v51 }
 0x105   : > { %4748 = vlog2.f32 %v660_v50  ;;  %v664_v56 = vadd.f32 1.0, %v663_v29  ;;  %vm667_vm7 = vcmp.lt.f32.partialorder %v666_v57, 0.0004427343 }
 0x106   : > { %v659_v1 = vsel %vm658_vm6, %v656_v62, %v653_v55 }
 0x107   : > { %v5849_v54 = vpop.f32.mrf.mxu0  ;;  %v665_v8 = vmul.f32 %v4743_v46, %v664_v56  ;;  %v859_v12 = vsel %vm475_vm8, %v5833_v10, %v659_v1  ;;  %v4638_v56 = vld [vmem:[%s8162_s2 + $0x78] sm:$0xff] }
 0x108   : > { %v446_v52 = vadd.f32 %v5722_v42, %v5849_v54  ;;  %1549 = vmatpush.bf16.msra.mxu2 %v4638_v56  ;;  %4684 = vmatpush.bf16.msra.mxu3 %v4638_v56 }
 0x10a   : > { %v4747_v58 = vpop.eup %4746  ;;  %v523_v61 = vmul.f32 1.442695, %v446_v52  ;;  %vm478_vm13 = vcmp.gt.f32.partialorder %v446_v52, 20.0 }
 0x10b   : > { %v4749_v63 = vpop.eup %4748  ;;  %v669_v0 = vadd.f32 1.0, %v4747_v58  ;;  %v672_v18 = vmul.f32 -0.5, %v4747_v58  ;;  %v675_v10 = vand.u32 2147483647, %v4747_v58 }
 0x10c   : > { %4750 = vpow2.f32 %v523_v61  ;;  %v662_v3 = vmul.f32 0.6931472, %v4749_v63  ;;  %v4637_v61 = vld [vmem:[%s8162_s2 + $0x70] sm:$0xff] }
 0x10d   : > { %4752 = vlog2.f32 %v669_v0  ;;  %v673_v22 = vadd.f32 1.0, %v672_v18  ;;  %vm676_vm10 = vcmp.lt.f32.partialorder %v675_v10, 0.0004427343  ;;  %1550 = vmatpush.bf16.msra.mxu2 %v4637_v61  ;;  %4685 = vmatpush.bf16.msra.mxu3 %v4637_v61 }
 0x10e   : > { %v668_v9 = vsel %vm667_vm7, %v665_v8, %v662_v3 }
 0x10f   : > { %v5854_v11 = vpop.f32.mrf.mxu0  ;;  %v860_v60 = vsel %vm476_vm9, %v444_v16, %v668_v9  ;;  %v674_v31 = vmul.f32 %v4747_v58, %v673_v22  ;;  %v4635_v22 = vld [vmem:[%s8162_s2 + $0x60] sm:$0xff] }
 0x110   : > { %v5859_v6 = vadd.f32 %v5722_v42, %v5854_v11  ;;  %v902_v13 = vpack.c.bf16 %v860_v60, %v859_v12 }
 0x112   : > { %v4751_v15 = vpop.eup %4750  ;;  %v525_v17 = vmul.f32 1.442695, %v5859_v6  ;;  %995 = vmatmul.bf16.gmra.mxu1 %v902_v13  ;;  %v4636_v13 = vld [vmem:[%s8162_s2 + $0x68] sm:$0xff]  ;;  %vm479_vm0 = vcmp.gt.f32.partialorder %v5859_v6, 20.0 }
 0x113   : > { %v678_v7 = vadd.f32 1.0, %v4751_v15  ;;  %v681_v20 = vmul.f32 -0.5, %v4751_v15  ;;  %v4753_v21 = vpop.eup %4752  ;;  %v684_v27 = vand.u32 2147483647, %v4751_v15  ;;  %1551 = vmatpush.bf16.msra.mxu2 %v4636_v13  ;;  %4686 = vmatpush.bf16.msra.mxu3 %v4636_v13 }
 0x114   : > { %4754 = vpow2.f32 %v525_v17  ;;  %v671_v24 = vmul.f32 0.6931472, %v4753_v21 }
 0x115   : > { %4756 = vlog2.f32 %v678_v7  ;;  %v682_v25 = vadd.f32 1.0, %v681_v20  ;;  %vm685_vm11 = vcmp.lt.f32.partialorder %v684_v27, 0.0004427343 }
 0x116   : > { %v677_v36 = vsel %vm676_vm10, %v674_v31, %v671_v24 }
 0x117   : > { %v5862_v23 = vpop.f32.mrf.mxu0  ;;  %v683_v44 = vmul.f32 %v4751_v15, %v682_v25  ;;  %v861_v49 = vsel %vm477_vm12, %v5846_v43, %v677_v36  ;;  %1552 = vmatpush.bf16.msra.mxu2 %v4635_v22  ;;  %4687 = vmatpush.bf16.msra.mxu3 %v4635_v22 }
 0x118   : > { %v5866_v16 = vadd.f32 %v5722_v42, %v5862_v23 }
 0x11a   : > { %v4755_v28 = vpop.eup %4754  ;;  %v527_v30 = vmul.f32 1.442695, %v5866_v16  ;;  %vm480_vm1 = vcmp.gt.f32.partialorder %v5866_v16, 20.0 }
 0x11b   : > { %v4757_v32 = vpop.eup %4756  ;;  %v687_v33 = vadd.f32 1.0, %v4755_v28  ;;  %v690_v55 = vmul.f32 -0.5, %v4755_v28  ;;  %v693_v63 = vand.u32 2147483647, %v4755_v28 }
 0x11c   : > { %4758 = vpow2.f32 %v527_v30  ;;  %v680_v40 = vmul.f32 0.6931472, %v4757_v32 }
 0x11d   : > { %4760 = vlog2.f32 %v687_v33  ;;  %vm694_vm14 = vcmp.lt.f32.partialorder %v693_v63, 0.0004427343  ;;  %v4634_v33 = vld [vmem:[%s8162_s2 + $0x58] sm:$0xff] }
 0x11e   : > { %v686_v46 = vsel %vm685_vm11, %v683_v44, %v680_v40  ;;  %1553 = vmatpush.bf16.msra.mxu2 %v4634_v33  ;;  %4688 = vmatpush.bf16.msra.mxu3 %v4634_v33  ;;  %v4633_v44 = vld [vmem:[%s8162_s2 + $0x50] sm:$0xff] }
 0x11f   : > { %v5870_v47 = vpop.f32.mrf.mxu0  ;;  %v862_v50 = vsel %vm478_vm13, %v446_v52, %v686_v46  ;;  %v691_v52 = vadd.f32 1.0, %v690_v55 }
 0x120   : > { %v5875_v29 = vadd.f32 %v5722_v42, %v5870_v47  ;;  %v903_v51 = vpack.c.bf16 %v862_v50, %v861_v49 }
 0x121   : > { %v692_v60 = vmul.f32 %v4755_v28, %v691_v52  ;;  %v5925_v52 = vperm.slane %v5714_v38, 1 }
 0x122   : > { %v4759_v53 = vpop.eup %4758  ;;  %v529_v37 = vmul.f32 1.442695, %v5875_v29  ;;  %1000 = vmatmul.bf16.gmra.mxu1 %v903_v51  ;;  %1554 = vmatpush.bf16.msra.mxu2 %v4633_v44  ;;  %vm481_vm4 = vcmp.gt.f32.partialorder %v5875_v29, 20.0 }
 0x123   : > { %v696_v57 = vadd.f32 1.0, %v4759_v53  ;;  %v699_v58 = vmul.f32 -0.5, %v4759_v53  ;;  %v4761_v43 = vpop.eup %4760  ;;  %v702_v8 = vand.u32 2147483647, %v4759_v53  ;;  %4689 = vmatpush.bf16.msra.mxu3 %v4633_v44 }
 0x124   : > { %4762 = vpow2.f32 %v529_v37  ;;  %v689_v1 = vmul.f32 0.6931472, %v4761_v43 }
 0x125   : > { %4764 = vlog2.f32 %v696_v57  ;;  %v700_v3 = vadd.f32 1.0, %v699_v58  ;;  %vm703_vm15 = vcmp.lt.f32.partialorder %v702_v8, 0.0004427343  ;;  %v4632_v58 = vld [vmem:[%s8162_s2 + $0x48] sm:$0xff] }
 0x126   : > { %v695_v18 = vsel %vm694_vm14, %v692_v60, %v689_v1  ;;  %1555 = vmatpush.bf16.msra.mxu2 %v4632_v58 }
 0x127   : > { %v5884_v62 = vpop.f32.mrf.mxu0  ;;  %v701_v20 = vmul.f32 %v4759_v53, %v700_v3  ;;  %v863_v24 = vsel %vm479_vm0, %v5859_v6, %v695_v18  ;;  %4690 = vmatpush.bf16.msra.mxu3 %v4632_v58 }
 0x128   : > { %8182 = vst [vmem:[#allocation2_spill] sm:$0xff] %v5884_v62  ;;  %v5888_v0 = vadd.f32 %v5722_v42, %v5884_v62 }
 0x12a   : > { %v4763_v9 = vpop.eup %4762  ;;  %v531_v12 = vmul.f32 1.442695, %v5888_v0  ;;  %vm482_vm5 = vcmp.gt.f32.partialorder %v5888_v0, 20.0 }
 0x12b   : > { %v4765_v15 = vpop.eup %4764  ;;  %v705_v17 = vadd.f32 1.0, %v4763_v9  ;;  %v708_v32 = vmul.f32 -0.5, %v4763_v9  ;;  %v711_v49 = vand.u32 2147483647, %v4763_v9 }
 0x12c   : > { %4766 = vpow2.f32 %v531_v12  ;;  %v698_v7 = vmul.f32 0.6931472, %v4765_v15 }
 0x12d   : > { %4768 = vlog2.f32 %v705_v17  ;;  %v709_v40 = vadd.f32 1.0, %v708_v32  ;;  %vm5927_vm2 = vcmp.lt.f32.partialorder %v711_v49, 0.0004427343 }
 0x12e   : > { %v704_v21 = vsel %vm703_vm15, %v701_v20, %v698_v7  ;;  %v5949_v20 = vpop.f32.mrf.mxu3 }
 0x12f   : > { %v5899_v10 = vpop.f32.mrf.mxu0  ;;  %v864_v25 = vsel %vm480_vm1, %v5866_v16, %v704_v21  ;;  %v710_v57 = vmul.f32 %v4763_v9, %v709_v40  ;;  %v4631_v9 = vld [vmem:[%s8162_s2 + $0x40] sm:$0xff]  ;;  %8188 = vst [vmem:[#allocation6_spill] sm:$0xff] %v5949_v20  ;;  %v5964_v40 = vadd.f32 %v5722_v42, %v5949_v20 }
 0x130   : > { %8183 = vst [vmem:[#allocation3_spill] sm:$0xff] %v5899_v10  ;;  %v5905_v27 = vadd.f32 %v5722_v42, %v5899_v10  ;;  %v904_v28 = vpack.c.bf16 %v864_v25, %v863_v24  ;;  %1556 = vmatpush.bf16.msra.mxu2 %v4631_v9  ;;  %4691 = vmatpush.bf16.msra.mxu3 %v4631_v9 }
 0x132   : > { %v4767_v30 = vpop.eup %4766  ;;  %v533_v31 = vmul.f32 1.442695, %v5905_v27  ;;  %1005 = vmatmul.bf16.gmra.mxu1 %v904_v28  ;;  %vm483_vm7 = vcmp.gt.f32.partialorder %v5905_v27, 20.0 }
 0x133   : > { %v714_v6 = vadd.f32 1.0, %v4767_v30  ;;  %v717_v16 = vmul.f32 -0.5, %v4767_v30  ;;  %v4769_v36 = vpop.eup %4768  ;;  %v720_v37 = vand.u32 2147483647, %v4767_v30 }
 0x134   : > { %4770 = vpow2.f32 %v533_v31  ;;  %v707_v51 = vmul.f32 0.6931472, %v4769_v36 }
 0x135   : > { %4772 = vlog2.f32 %v714_v6  ;;  %v718_v53 = vadd.f32 1.0, %v717_v16  ;;  %vm721_vm3 = vcmp.lt.f32.partialorder %v720_v37, 0.0004427343 }
 0x136   : > { %v713_v1 = vsel %vm5927_vm2, %v710_v57, %v707_v51  ;;  %v5970_v57 = vpop.f32.mrf.mxu3 }
 0x137   : > { %v5914_v46 = vpop.f32.mrf.mxu0  ;;  %v719_v8 = vmul.f32 %v4767_v30, %v718_v53  ;;  %v865_v13 = vsel %vm481_vm4, %v5875_v29, %v713_v1  ;;  %8190 = vst [vmem:[#allocation8_spill] sm:$0xff] %v5970_v57 }
 0x138   : > { %8184 = vst [vmem:[#allocation4_spill] sm:$0xff] %v5914_v46  ;;  %v5918_v50 = vadd.f32 %v5722_v42, %v5914_v46 }
 0x13a   : > { %v4771_v55 = vpop.eup %4770  ;;  %v535_v56 = vmul.f32 1.442695, %v5918_v50  ;;  %vm484_vm9 = vcmp.gt.f32.partialorder %v5918_v50, 20.0 }
 0x13b   : > { %v4773_v43 = vpop.eup %4772  ;;  %v723_v63 = vadd.f32 1.0, %v4771_v55  ;;  %v729_v33 = vand.u32 2147483647, %v4771_v55 }
 0x13c   : > { %4774 = vpow2.f32 %v535_v56  ;;  %v716_v3 = vmul.f32 0.6931472, %v4773_v43 }
 0x13d   : > { %4776 = vlog2.f32 %v723_v63  ;;  %vm5974_vm6 = vcmp.lt.f32.partialorder %v729_v33, 0.0004427343 }
 0x13e   : > { %v722_v38 = vsel %vm721_vm3, %v719_v8, %v716_v3  ;;  %v6006_v33 = vpop.f32.mrf.mxu3 }
 0x13f   : > { %v5938_v12 = vpop.f32.mrf.mxu0  ;;  %v971_v60 = vpop.f32.mrf.mxu1  ;;  %v866_v15 = vsel %vm482_vm5, %v5888_v0, %v722_v38  ;;  %v726_v0 = vmul.f32 -0.5, %v4771_v55  ;;  %v549_v38 = vmul.f32 1.442695, %v5964_v40  ;;  %8194 = vst [vmem:[#allocation10_spill] sm:$0xff] %v6006_v33 }
 0x140   : > { %8187 = vst [vmem:[#allocation5_spill] sm:$0xff] %v5938_v12  ;;  %v5944_v17 = vadd.f32 %v5722_v42, %v5938_v12  ;;  %v5947_v18 = vadd.f32 %v971_v60, %v5925_v52  ;;  %v905_v7 = vpack.c.bf16 %v866_v15, %v865_v13 }
 0x141   : > { %v727_v30 = vadd.f32 1.0, %v726_v0  ;;  %v5998_v0 = vadd.f32 %v5722_v42, %v5970_v57 }
 0x142   : > { %v4775_v21 = vpop.eup %4774  ;;  %v537_v22 = vmul.f32 1.442695, %v5944_v17  ;;  %v1083_v29 = vmul.f32 1.442695, %v5947_v18  ;;  %1010 = vmatmul.bf16.gmra.mxu1 %v905_v7  ;;  %vm485_vm10 = vcmp.gt.f32.partialorder %v5944_v17, 20.0  ;;  %vm1051_vm12 = vcmp.gt.f32.partialorder %v5947_v18, 20.0 }
 0x143   : > { %v732_v24 = vadd.f32 1.0, %v4775_v21  ;;  %v4777_v25 = vpop.eup %4776  ;;  %v735_v28 = vmul.f32 -0.5, %v4775_v21  ;;  %v728_v37 = vmul.f32 %v4771_v55, %v727_v30  ;;  %v738_v56 = vand.u32 2147483647, %v4775_v21 }
 0x144   : > { %4778 = vpow2.f32 %v537_v22  ;;  %v725_v36 = vmul.f32 0.6931472, %v4777_v25 }
 0x145   : > { %4780 = vpow2.f32 %v1083_v29  ;;  %v736_v44 = vadd.f32 1.0, %v735_v28  ;;  %vm739_vm8 = vcmp.lt.f32.partialorder %v738_v56, 0.0004427343 }
 0x146   : > { %4782 = vlog2.f32 %v732_v24  ;;  %v731_v1 = vsel %vm5974_vm6, %v728_v37, %v725_v36  ;;  %v6058_v12 = vpop.f32.mrf.mxu3 }
 0x147   : > { %v5953_v31 = vpop.f32.mrf.mxu0  ;;  %v973_v32 = vpop.f32.mrf.mxu1  ;;  %v737_v8 = vmul.f32 %v4775_v21, %v736_v44  ;;  %v867_v15 = vsel %vm483_vm7, %v5905_v27, %v731_v1  ;;  %8200 = vst [vmem:[#allocation12_spill] sm:$0xff] %v6058_v12 }
 0x148   : > { %8189 = vst [vmem:[#allocation7_spill] sm:$0xff] %v5953_v31  ;;  %v5957_v6 = vadd.f32 %v5722_v42, %v5953_v31  ;;  %v5960_v16 = vadd.f32 %v973_v32, %v5925_v52 }
 0x14a   : > { %v5966_v49 = vpop.eup %4778  ;;  %v539_v51 = vmul.f32 1.442695, %v5957_v6  ;;  %v1085_v53 = vmul.f32 1.442695, %v5960_v16  ;;  %vm486_vm13 = vcmp.gt.f32.partialorder %v5957_v6, 20.0  ;;  %vm1052_vm14 = vcmp.gt.f32.partialorder %v5960_v16, 20.0 }
 0x14b   : > { %v5972_v58 = vpop.eup %4780  ;;  %v741_v61 = vadd.f32 1.0, %v5966_v49  ;;  %v744_v28 = vmul.f32 -0.5, %v5966_v49  ;;  %v747_v32 = vand.u32 2147483647, %v5966_v49 }
 0x14c   : > { %v4783_v63 = vpop.eup %4782  ;;  %4784 = vpow2.f32 %v539_v51  ;;  %v1147_v3 = vadd.f32 1.0, %v5972_v58  ;;  %v1150_v36 = vmul.f32 -0.5, %v5972_v58 }
 0x14d   : > { %4786 = vpow2.f32 %v1085_v53  ;;  %v734_v55 = vmul.f32 0.6931472, %v4783_v63  ;;  %v6011_v53 = vmul.f32 1.442695, %v5998_v0  ;;  %v745_v43 = vadd.f32 1.0, %v744_v28 }
 0x14e   : > { %4788 = vlog2.f32 %v741_v61  ;;  %vm6021_vm11 = vcmp.lt.f32.partialorder %v747_v32, 0.0004427343 }
 0x14f   : > { %v5984_v9 = vpop.f32.mrf.mxu0  ;;  %v976_v60 = vpop.f32.mrf.mxu1  ;;  %v740_v13 = vsel %vm739_vm8, %v737_v8, %v734_v55  ;;  %4790 = vlog2.f32 %v1147_v3  ;;  %v6019_v3 = vadd.f32 %v5722_v42, %v6006_v33  ;;  %v1153_v8 = vand.u32 2147483647, %v5972_v58 }
 0x150   : > { %8193 = vst [vmem:[#allocation9_spill] sm:$0xff] %v5984_v9  ;;  %v5990_v7 = vadd.f32 %v5722_v42, %v5984_v9  ;;  %v5993_v21 = vadd.f32 %v976_v60, %v5925_v52  ;;  %v868_v22 = vsel %vm484_vm9, %v5918_v50, %v740_v13  ;;  %4792 = vpow2.f32 %v549_v38 }
 0x151   : > { %v906_v29 = vpack.c.bf16 %v868_v22, %v867_v15  ;;  %v1151_v15 = vadd.f32 1.0, %v1150_v36  ;;  %vm6045_vm15 = vcmp.lt.f32.partialorder %v1153_v8, 0.0004427343  ;;  %v553_v36 = vmul.f32 1.442695, %v6019_v3 }
 0x152   : > { %v4785_v24 = vpop.eup %4784  ;;  %v541_v25 = vmul.f32 1.442695, %v5990_v7  ;;  %v1087_v27 = vmul.f32 1.442695, %v5993_v21  ;;  %vm487_vm2 = vcmp.gt.f32.partialorder %v5990_v7, 20.0  ;;  %vm1053_vm3 = vcmp.gt.f32.partialorder %v5993_v21, 20.0 }
 0x153   : > { %v6003_v30 = vpop.eup %4786  ;;  %1015 = vmatmul.bf16.gmra.mxu1 %v906_v29  ;;  %v750_v50 = vadd.f32 1.0, %v4785_v24  ;;  %v753_v37 = vmul.f32 -0.5, %v4785_v24 }
 0x154   : > { %4794 = vpow2.f32 %v541_v25  ;;  %v1156_v44 = vadd.f32 1.0, %v6003_v30  ;;  %v4789_v51 = vpop.eup %4788  ;;  %v1159_v61 = vmul.f32 -0.5, %v6003_v30  ;;  %v756_v25 = vand.u32 2147483647, %v4785_v24 }
 0x155   : > { %4796 = vpow2.f32 %v1087_v27  ;;  %v4791_v56 = vpop.eup %4790  ;;  %v743_v13 = vmul.f32 0.6931472, %v4789_v51  ;;  %v754_v29 = vadd.f32 1.0, %v753_v37  ;;  %v1162_v37 = vand.u32 2147483647, %v6003_v30 }
 0x156   : > { %4798 = vlog2.f32 %v750_v50  ;;  %v6034_v22 = vpop.eup %4792  ;;  %v1149_v27 = vmul.f32 0.6931472, %v4791_v56  ;;  %vm757_vm0 = vcmp.lt.f32.partialorder %v756_v25, 0.0004427343 }
 0x157   : > { %v6015_v63 = vpop.f32.mrf.mxu0  ;;  %v978_v1 = vpop.f32.mrf.mxu1  ;;  %4800 = vlog2.f32 %v1156_v44  ;;  %v746_v44 = vmul.f32 %v5966_v49, %v745_v43  ;;  %v1152_v49 = vmul.f32 %v5972_v58, %v1151_v15  ;;  %v755_v8 = vmul.f32 %v4785_v24, %v754_v29 }
 0x158   : > { %8195 = vst [vmem:[#allocation11_spill] sm:$0xff] %v6015_v63  ;;  %v6028_v38 = vadd.f32 %v5722_v42, %v6015_v63  ;;  %v6031_v60 = vadd.f32 %v978_v1, %v5925_v52  ;;  %v1160_v1 = vadd.f32 1.0, %v1159_v61  ;;  %vm1163_vm1 = vcmp.lt.f32.partialorder %v1162_v37, 0.0004427343 }
 0x159   : > { %v749_v57 = vsel %vm6021_vm11, %v746_v44, %v743_v13  ;;  %v1155_v63 = vsel %vm6045_vm15, %v1152_v49, %v1149_v27 }
 0x15a   : > { %v6037_v28 = vpop.eup %4794  ;;  %v543_v32 = vmul.f32 1.442695, %v6028_v38  ;;  %v1089_v50 = vmul.f32 1.442695, %v6031_v60  ;;  %v1161_v31 = vmul.f32 %v6003_v30, %v1160_v1  ;;  %v869_v15 = vsel %vm485_vm10, %v5944_v17, %v749_v57 }
 0x15b   : > { %v6042_v51 = vpop.eup %4796  ;;  %v759_v56 = vadd.f32 1.0, %v6037_v28  ;;  %v6083_v57 = vadd.f32 %v5722_v42, %v6058_v12  ;;  %vm488_vm4 = vcmp.gt.f32.partialorder %v6028_v38, 20.0  ;;  %vm1054_vm6 = vcmp.gt.f32.partialorder %v6031_v60, 20.0 }
 0x15c   : > { %v4799_v33 = vpop.eup %4798  ;;  %4802 = vpow2.f32 %v543_v32  ;;  %v1165_v43 = vadd.f32 1.0, %v6042_v51 }
 0x15d   : > { %v4801_v61 = vpop.eup %4800  ;;  %4804 = vpow2.f32 %v1089_v50  ;;  %v752_v20 = vmul.f32 0.6931472, %v4799_v33  ;;  %v555_v49 = vmul.f32 1.442695, %v6083_v57 }
 0x15e   : > { %v1158_v9 = vmul.f32 0.6931472, %v4801_v61  ;;  %4806 = vlog2.f32 %v759_v56  ;;  %v795_v56 = vadd.f32 1.0, %v6034_v22 }
 0x15f   : > { %v6060_v55 = vpop.f32.mrf.mxu0  ;;  %v981_v13 = vpop.f32.mrf.mxu1  ;;  %v758_v58 = vsel %vm757_vm0, %v755_v8, %v752_v20  ;;  %4808 = vlog2.f32 %v1165_v43  ;;  %v1435_v20 = vsel %vm1051_vm12, %v5947_v18, %v1155_v63 }
 0x160   : > { %8201 = vst [vmem:[#allocation13_spill] sm:$0xff] %v6060_v55  ;;  %v6067_v24 = vadd.f32 %v5722_v42, %v6060_v55  ;;  %v6070_v33 = vadd.f32 %v981_v13, %v5925_v52  ;;  %v870_v30 = vsel %vm486_vm13, %v5957_v6, %v758_v58  ;;  %v1164_v29 = vsel %vm1163_vm1, %v1161_v31, %v1158_v9 }
 0x161   : > { %v907_v25 = vpack.c.bf16 %v870_v30, %v869_v15  ;;  %v1436_v17 = vsel %vm1052_vm14, %v5960_v16, %v1164_v29  ;;  %v762_v31 = vmul.f32 -0.5, %v6037_v28  ;;  %4810 = vpow2.f32 %v6011_v53 }
 0x162   : > { %v4803_v27 = vpop.eup %4802  ;;  %v545_v32 = vmul.f32 1.442695, %v6067_v24  ;;  %v1091_v50 = vmul.f32 1.442695, %v6070_v33  ;;  %v1484_v6 = vpack.c.bf16 %v1436_v17, %v1435_v20  ;;  %v1168_v16 = vmul.f32 -0.5, %v6042_v51 }
 0x163   : > { %v4805_v9 = vpop.eup %4804  ;;  %1020 = vmatmul.bf16.gmra.mxu1 %v907_v25  ;;  %v768_v18 = vadd.f32 1.0, %v4803_v27  ;;  %v771_v37 = vmul.f32 -0.5, %v4803_v27  ;;  %v763_v43 = vadd.f32 1.0, %v762_v31  ;;  %v765_v13 = vand.u32 2147483647, %v6037_v28 }
 0x164   : > { %v4807_v63 = vpop.eup %4806  ;;  %4812 = vpow2.f32 %v545_v32  ;;  %1557 = vmatmul.bf16.vlgmr.msra.gmra.mxu2 %v1484_v6  ;;  %v1174_v44 = vadd.f32 1.0, %v4805_v9  ;;  %v1177_v53 = vmul.f32 -0.5, %v4805_v9  ;;  %v1171_v58 = vand.u32 2147483647, %v6042_v51 }
 0x165   : > { %v4809_v1 = vpop.eup %4808  ;;  %4814 = vpow2.f32 %v1091_v50  ;;  %v761_v29 = vmul.f32 0.6931472, %v4807_v63  ;;  %v1169_v25 = vadd.f32 1.0, %v1168_v16  ;;  %v772_v17 = vadd.f32 1.0, %v771_v37 }
 0x166   : > { %4816 = vlog2.f32 %v768_v18  ;;  %v774_v32 = vand.u32 2147483647, %v4803_v27  ;;  %v1167_v50 = vmul.f32 0.6931472, %v4809_v1  ;;  %vm6116_vm5 = vcmp.lt.f32.partialorder %v765_v13, 0.0004427343 }
 0x167   : > { %v6093_v61 = vpop.f32.mrf.mxu0  ;;  %v983_v8 = vpop.f32.mrf.mxu1  ;;  %4818 = vlog2.f32 %v1174_v44  ;;  %v764_v44 = vmul.f32 %v6037_v28, %v763_v43  ;;  %v1180_v37 = vand.u32 2147483647, %v4805_v9  ;;  %v1170_v55 = vmul.f32 %v6042_v51, %v1169_v25 }
 0x168   : > { %8202 = vst [vmem:[#allocation14_spill] sm:$0xff] %v6093_v61  ;;  %v6100_v15 = vadd.f32 %v5722_v42, %v6093_v61  ;;  %v6103_v30 = vadd.f32 %v983_v8, %v5925_v52  ;;  %v6106_v20 = vpop.eup %4810  ;;  %v1178_v8 = vadd.f32 1.0, %v1177_v53  ;;  %v773_v13 = vmul.f32 %v4803_v27, %v772_v17 }
 0x169   : > { %v767_v61 = vsel %vm6116_vm5, %v764_v44, %v761_v29  ;;  %vm6126_vm7 = vcmp.lt.f32.partialorder %v1171_v58, 0.0004427343  ;;  %vm775_vm8 = vcmp.lt.f32.partialorder %v774_v32, 0.0004427343  ;;  %vm1181_vm9 = vcmp.lt.f32.partialorder %v1180_v37, 0.0004427343 }
 0x16a   : > { %v6109_v6 = vpop.eup %4812  ;;  %v547_v31 = vmul.f32 1.442695, %v6100_v15  ;;  %v1093_v18 = vmul.f32 1.442695, %v6103_v30  ;;  %v1173_v10 = vsel %vm6126_vm7, %v1170_v55, %v1167_v50  ;;  %v1179_v62 = vmul.f32 %v4805_v9, %v1178_v8 }
 0x16b   : > { %v6114_v63 = vpop.eup %4814  ;;  %v777_v1 = vadd.f32 1.0, %v6109_v6  ;;  %v871_v51 = vsel %vm487_vm2, %v5990_v7, %v767_v61  ;;  %v1437_v55 = vsel %vm1053_vm3, %v5993_v21, %v1173_v10  ;;  %v780_v17 = vmul.f32 -0.5, %v6109_v6 }
 0x16c   : > { %v4817_v12 = vpop.eup %4816  ;;  %4820 = vpow2.f32 %v547_v31  ;;  %v1183_v28 = vadd.f32 1.0, %v6114_v63  ;;  %v804_v50 = vadd.f32 1.0, %v6106_v20  ;;  %v783_v8 = vand.u32 2147483647, %v6109_v6 }
 0x16d   : > { %v4819_v43 = vpop.eup %4818  ;;  %4822 = vpow2.f32 %v1093_v18  ;;  %v770_v53 = vmul.f32 0.6931472, %v4817_v12  ;;  %v781_v44 = vadd.f32 1.0, %v780_v17  ;;  %vm489_vm10 = vcmp.gt.f32.partialorder %v6067_v24, 20.0 }
 0x16e   : > { %v1176_v31 = vmul.f32 0.6931472, %v4819_v43  ;;  %4824 = vlog2.f32 %v777_v1  ;;  %vm1055_vm11 = vcmp.gt.f32.partialorder %v6070_v33, 20.0  ;;  %vm490_vm12 = vcmp.gt.f32.partialorder %v6100_v15, 20.0 }
 0x16f   : > { %v986_v16 = vpop.f32.mrf.mxu1  ;;  %v776_v29 = vsel %vm775_vm8, %v773_v13, %v770_v53  ;;  %4826 = vlog2.f32 %v1183_v28  ;;  %v1189_v28 = vand.u32 2147483647, %v6114_v63  ;;  %v6158_v53 = vpop.f32.mrf.mxu3  ;;  %vm1056_vm13 = vcmp.gt.f32.partialorder %v6103_v30, 20.0 }
 0x170   : > { %v6136_v12 = vadd.f32 %v986_v16, %v5925_v52  ;;  %v872_v27 = vsel %vm488_vm4, %v6028_v38, %v776_v29  ;;  %v1182_v58 = vsel %vm1181_vm9, %v1179_v62, %v1176_v31  ;;  %4828 = vpow2.f32 %v553_v36 }
 0x171   : > { %v908_v46 = vpack.c.bf16 %v872_v27, %v871_v51  ;;  %v1438_v7 = vsel %vm1054_vm6, %v6031_v60, %v1182_v58  ;;  %4830 = vlog2.f32 %v795_v56  ;;  %v1186_v36 = vmul.f32 -0.5, %v6114_v63 }
 0x172   : > { %v4821_v9 = vpop.eup %4820  ;;  %v1095_v61 = vmul.f32 1.442695, %v6136_v12  ;;  %v1485_v25 = vpack.c.bf16 %v1438_v7, %v1437_v55  ;;  %4832 = vpow2.f32 %v555_v49  ;;  %v798_v56 = vmul.f32 -0.5, %v6034_v22 }
 0x173   : > { %v4823_v38 = vpop.eup %4822  ;;  %1025 = vmatmul.bf16.gmra.mxu1 %v908_v46  ;;  %v786_v62 = vadd.f32 1.0, %v4821_v9  ;;  %v789_v10 = vmul.f32 -0.5, %v4821_v9  ;;  %v1187_v1 = vadd.f32 1.0, %v1186_v36  ;;  %v792_v51 = vand.u32 2147483647, %v4821_v9 }
 0x174   : > { %4834 = vpow2.f32 %v1095_v61  ;;  %1562 = vmatmul.bf16.gmra.mxu2 %v1485_v25  ;;  %v1192_v21 = vadd.f32 1.0, %v4823_v38  ;;  %v4825_v32 = vpop.eup %4824  ;;  %v1195_v60 = vmul.f32 -0.5, %v4823_v38  ;;  %v782_v7 = vmul.f32 %v6109_v6, %v781_v44 }
 0x175   : > { %4836 = vlog2.f32 %v786_v62  ;;  %v4827_v18 = vpop.eup %4826  ;;  %v779_v31 = vmul.f32 0.6931472, %v4825_v32  ;;  %v790_v16 = vadd.f32 1.0, %v789_v10  ;;  %vm6171_vm14 = vcmp.lt.f32.partialorder %v783_v8, 0.0004427343 }
 0x176   : > { %4838 = vlog2.f32 %v1192_v21  ;;  %v6153_v49 = vpop.eup %4828  ;;  %v1185_v27 = vmul.f32 0.6931472, %v4827_v18  ;;  %v1196_v58 = vadd.f32 1.0, %v1195_v60  ;;  %v1198_v25 = vand.u32 2147483647, %v4823_v38 }
 0x177   : > { %v988_v37 = vpop.f32.mrf.mxu1  ;;  %v4831_v43 = vpop.eup %4830  ;;  %v1188_v62 = vmul.f32 %v6114_v63, %v1187_v1  ;;  %vm6176_vm15 = vcmp.lt.f32.partialorder %v1189_v28, 0.0004427343  ;;  %4840 = vlog2.f32 %v804_v50  ;;  %v785_v6 = vsel %vm6171_vm14, %v782_v7, %v779_v31 }
 0x178   : > { %v6161_v13 = vadd.f32 %v988_v37, %v5925_v52  ;;  %v6164_v29 = vpop.eup %4832  ;;  %v791_v60 = vmul.f32 %v4821_v9, %v790_v16  ;;  %vm793_vm0 = vcmp.lt.f32.partialorder %v792_v51, 0.0004427343  ;;  %v1197_v63 = vmul.f32 %v4823_v38, %v1196_v58  ;;  %v6206_v7 = vpop.f32.mrf.mxu3 }
 0x179   : > { %v1191_v18 = vsel %vm6176_vm15, %v1188_v62, %v1185_v27  ;;  %vm1199_vm1 = vcmp.lt.f32.partialorder %v1198_v25, 0.0004427343  ;;  %v799_v37 = vadd.f32 1.0, %v798_v56  ;;  %v807_v50 = vmul.f32 -0.5, %v6106_v20 }
 0x17a   : > { %v6167_v46 = vpop.eup %4834  ;;  %v1097_v55 = vmul.f32 1.442695, %v6161_v13  ;;  %v873_v28 = vsel %vm489_vm10, %v6067_v24, %v785_v6  ;;  %v1439_v56 = vsel %vm1055_vm11, %v6070_v33, %v1191_v18  ;;  %v6203_v24 = vadd.f32 %v5722_v42, %v6158_v53 }
 0x17b   : > { %v4837_v17 = vpop.eup %4836  ;;  %v1201_v10 = vadd.f32 1.0, %v6167_v46  ;;  %v801_v58 = vand.u32 2147483647, %v6034_v22  ;;  %v808_v25 = vadd.f32 1.0, %v807_v50  ;;  %v1204_v33 = vmul.f32 -0.5, %v6167_v46 }
 0x17c   : > { %v4839_v21 = vpop.eup %4838  ;;  %4842 = vpow2.f32 %v1097_v55  ;;  %v788_v32 = vmul.f32 0.6931472, %v4837_v17  ;;  %v810_v17 = vand.u32 2147483647, %v6106_v20  ;;  %v797_v62 = vmul.f32 0.6931472, %v4831_v43 }
 0x17d   : > { %v1194_v44 = vmul.f32 0.6931472, %v4839_v21  ;;  %4844 = vlog2.f32 %v1201_v10  ;;  %v4841_v27 = vpop.eup %4840  ;;  %v800_v36 = vmul.f32 %v6034_v22, %v799_v37  ;;  %v557_v6 = vmul.f32 1.442695, %v6203_v24 }
 0x17e   : > { %v794_v8 = vsel %vm793_vm0, %v791_v60, %v788_v32  ;;  %v6215_v32 = vadd.f32 %v5722_v42, %v6206_v7  ;;  %vm6217_vm2 = vcmp.lt.f32.partialorder %v801_v58, 0.0004427343  ;;  %v806_v18 = vmul.f32 0.6931472, %v4841_v27 }
 0x17f   : > { %v991_v1 = vpop.f32.mrf.mxu1  ;;  %v874_v9 = vsel %vm490_vm12, %v6100_v15, %v794_v8  ;;  %v1200_v31 = vsel %vm1199_vm1, %v1197_v63, %v1194_v44  ;;  %v809_v44 = vmul.f32 %v6106_v20, %v808_v25  ;;  %v1205_v63 = vadd.f32 1.0, %v1204_v33 }
 0x180   : > { %v6193_v16 = vadd.f32 %v991_v1, %v5925_v52  ;;  %v909_v38 = vpack.c.bf16 %v874_v9, %v873_v28  ;;  %v1440_v51 = vsel %vm1056_vm13, %v6103_v30, %v1200_v31  ;;  %vm491_vm3 = vcmp.gt.f32.partialorder %v5964_v40, 20.0 }
 0x181   : > { %v1486_v15 = vpack.c.bf16 %v1440_v51, %v1439_v56  ;;  %vm6223_vm4 = vcmp.lt.f32.partialorder %v810_v17, 0.0004427343  ;;  %v1207_v8 = vand.u32 2147483647, %v6167_v46  ;;  %v813_v42 = vadd.f32 1.0, %v6153_v49 }
 0x182   : > { %v4843_v55 = vpop.eup %4842  ;;  %v1099_v61 = vmul.f32 1.442695, %v6193_v16  ;;  %1030 = vmatmul.bf16.vlgmr.msrb.gmra.mxu3 %v909_v38  ;;  %v803_v50 = vsel %vm6217_vm2, %v800_v36, %v797_v62  ;;  %v559_v28 = vmul.f32 1.442695, %v6215_v32  ;;  %v822_v31 = vadd.f32 1.0, %v6164_v29 }
 0x183   : > { %v1210_v30 = vadd.f32 1.0, %v4843_v55  ;;  %v1213_v10 = vmul.f32 -0.5, %v4843_v55  ;;  %v4845_v21 = vpop.eup %4844  ;;  %v1216_v9 = vand.u32 2147483647, %v4843_v55  ;;  %vm492_vm5 = vcmp.gt.f32.partialorder %v5998_v0, 20.0 }
 0x184   : > { %4846 = vpow2.f32 %v1099_v61  ;;  %1567 = vmatmul.bf16.gmra.mxu2 %v1486_v15  ;;  %v1203_v1 = vmul.f32 0.6931472, %v4845_v21  ;;  %v812_v51 = vsel %vm6223_vm4, %v809_v44, %v806_v18  ;;  %v1206_v27 = vmul.f32 %v6167_v46, %v1205_v63 }
 0x185   : > { %4848 = vlog2.f32 %v1210_v30  ;;  %v1214_v20 = vadd.f32 1.0, %v1213_v10  ;;  %v875_v58 = vsel %vm491_vm3, %v5964_v40, %v803_v50  ;;  %vm6246_vm6 = vcmp.lt.f32.partialorder %v1207_v8, 0.0004427343 }
 0x186   : > { %4850 = vpow2.f32 %v557_v6  ;;  %v1209_v33 = vsel %vm6246_vm6, %v1206_v27, %v1203_v1  ;;  %v876_v46 = vsel %vm492_vm5, %v5998_v0, %v812_v51  ;;  %vm1217_vm7 = vcmp.lt.f32.partialorder %v1216_v9, 0.0004427343 }
 0x187   : > { %v993_v43 = vpop.f32.mrf.mxu1  ;;  %4852 = vlog2.f32 %v813_v42  ;;  %v1215_v30 = vmul.f32 %v4843_v55, %v1214_v20  ;;  %v816_v62 = vmul.f32 -0.5, %v6153_v49  ;;  %vm1057_vm8 = vcmp.gt.f32.partialorder %v6136_v12, 20.0 }
 0x188   : > { %v6230_v37 = vadd.f32 %v993_v43, %v5925_v52  ;;  %vm1058_vm9 = vcmp.gt.f32.partialorder %v6161_v13, 20.0  ;;  %v825_v36 = vmul.f32 -0.5, %v6164_v29  ;;  %v1441_v6 = vsel %vm1057_vm8, %v6136_v12, %v1209_v33 }
 0x189   : > { %v910_v60 = vpack.c.bf16 %v876_v46, %v875_v58  ;;  %v817_v63 = vadd.f32 1.0, %v816_v62  ;;  %v819_v43 = vand.u32 2147483647, %v6153_v49  ;;  %vm493_vm12 = vcmp.gt.f32.partialorder %v6019_v3, 20.0 }
 0x18a   : > { %v6236_v38 = vpop.eup %4846  ;;  %v1101_v56 = vmul.f32 1.442695, %v6230_v37  ;;  %v826_v42 = vadd.f32 1.0, %v825_v36  ;;  %vm494_vm13 = vcmp.gt.f32.partialorder %v6083_v57, 20.0  ;;  %vm1059_vm0 = vcmp.gt.f32.partialorder %v6193_v16, 20.0 }
 0x18b   : > { %v4849_v15 = vpop.eup %4848  ;;  %v1219_v25 = vadd.f32 1.0, %v6236_v38  ;;  %v1222_v12 = vmul.f32 -0.5, %v6236_v38  ;;  %v818_v9 = vmul.f32 %v6153_v49, %v817_v63  ;;  %vm6270_vm10 = vcmp.lt.f32.partialorder %v819_v43, 0.0004427343 }
 0x18c   : > { %4854 = vpow2.f32 %v1101_v56  ;;  %v1212_v17 = vmul.f32 0.6931472, %v4849_v15  ;;  %v6258_v10 = vpop.eup %4850  ;;  %v827_v15 = vmul.f32 %v6164_v29, %v826_v42  ;;  %v1225_v33 = vand.u32 2147483647, %v6236_v38 }
 0x18d   : > { %4856 = vlog2.f32 %v822_v31  ;;  %v4853_v44 = vpop.eup %4852  ;;  %v1223_v58 = vadd.f32 1.0, %v1222_v12  ;;  %v831_v49 = vadd.f32 1.0, %v6258_v10  ;;  %vm1060_vm1 = vcmp.gt.f32.partialorder %v6230_v37, 20.0 }
 0x18e   : > { %v1218_v40 = vsel %vm1217_vm7, %v1215_v30, %v1212_v17  ;;  %4858 = vlog2.f32 %v1219_v25  ;;  %v815_v51 = vmul.f32 0.6931472, %v4853_v44  ;;  %vm6297_vm14 = vcmp.lt.f32.partialorder %v1225_v33, 0.0004427343 }
 0x18f   : > { %v996_v21 = vpop.f32.mrf.mxu1  ;;  %v1442_v55 = vsel %vm1058_vm9, %v6161_v13, %v1218_v40  ;;  %4860 = vpow2.f32 %v559_v28  ;;  %v828_v13 = vand.u32 2147483647, %v6164_v29  ;;  %v834_v44 = vmul.f32 -0.5, %v6258_v10 }
 0x190   : > { %v6263_v0 = vadd.f32 %v996_v21, %v5925_v52  ;;  %v1487_v18 = vpack.c.bf16 %v1442_v55, %v1441_v6  ;;  %v821_v21 = vsel %vm6270_vm10, %v818_v9, %v815_v51  ;;  %v1224_v55 = vmul.f32 %v6236_v38, %v1223_v58 }
 0x191   : > { %vm6277_vm11 = vcmp.lt.f32.partialorder %v828_v13, 0.0004427343  ;;  %v877_v38 = vsel %vm493_vm12, %v6019_v3, %v821_v21  ;;  %v835_v31 = vadd.f32 1.0, %v834_v44  ;;  %vm495_vm4 = vcmp.gt.f32.partialorder %v6203_v24, 20.0 }
 0x192   : > { %v4855_v22 = vpop.eup %4854  ;;  %v1103_v8 = vmul.f32 1.442695, %v6263_v0  ;;  %1035 = vmatmul.bf16.gmra.mxu3 %v910_v60  ;;  %vm496_vm5 = vcmp.gt.f32.partialorder %v6215_v32, 20.0  ;;  %vm1061_vm8 = vcmp.gt.f32.partialorder %v6263_v0, 20.0 }
 0x193   : > { %v4857_v50 = vpop.eup %4856  ;;  %v1228_v1 = vadd.f32 1.0, %v4855_v22  ;;  %v1231_v20 = vmul.f32 -0.5, %v4855_v22  ;;  %v1234_v29 = vand.u32 2147483647, %v4855_v22 }
 0x194   : > { %4862 = vpow2.f32 %v1103_v8  ;;  %1572 = vmatmul.bf16.gmra.mxu2 %v1487_v18  ;;  %v4859_v28 = vpop.eup %4858  ;;  %v824_v27 = vmul.f32 0.6931472, %v4857_v50 }
 0x195   : > { %4864 = vlog2.f32 %v1228_v1  ;;  %v6274_v56 = vpop.eup %4860  ;;  %v1221_v30 = vmul.f32 0.6931472, %v4859_v28  ;;  %v1232_v46 = vadd.f32 1.0, %v1231_v20  ;;  %vm1235_vm15 = vcmp.lt.f32.partialorder %v1234_v29, 0.0004427343 }
 0x196   : > { %v840_v62 = vadd.f32 1.0, %v6274_v56  ;;  %v830_v6 = vsel %vm6277_vm11, %v827_v15, %v824_v27  ;;  %4866 = vlog2.f32 %v831_v49  ;;  %v843_v13 = vmul.f32 -0.5, %v6274_v56 }
 0x197   : > { %v998_v61 = vpop.f32.mrf.mxu1  ;;  %v1227_v43 = vsel %vm6297_vm14, %v1224_v55, %v1221_v30  ;;  %v1233_v42 = vmul.f32 %v4855_v22, %v1232_v46  ;;  %v878_v12 = vsel %vm494_vm13, %v6083_v57, %v830_v6  ;;  %v836_v30 = vmul.f32 %v6258_v10, %v835_v31 }
 0x198   : > { %v6284_v17 = vadd.f32 %v998_v61, %v5925_v52  ;;  %v1443_v22 = vsel %vm1059_vm0, %v6193_v16, %v1227_v43  ;;  %v911_v28 = vpack.c.bf16 %v878_v12, %v877_v38  ;;  %v844_v15 = vadd.f32 1.0, %v843_v13 }
 0x199   : > { %v837_v16 = vand.u32 2147483647, %v6258_v10 }
 0x19a   : > { %v6289_v40 = vpop.eup %4862  ;;  %v1105_v36 = vmul.f32 1.442695, %v6284_v17  ;;  %vm1062_vm9 = vcmp.gt.f32.partialorder %v6284_v17, 20.0 }
 0x19b   : > { %v4865_v60 = vpop.eup %4864  ;;  %v1237_v63 = vadd.f32 1.0, %v6289_v40  ;;  %v1240_v58 = vmul.f32 -0.5, %v6289_v40  ;;  %vm6325_vm2 = vcmp.lt.f32.partialorder %v837_v16, 0.0004427343 }
 0x19c   : > { %4868 = vpow2.f32 %v1105_v36  ;;  %v1230_v8 = vmul.f32 0.6931472, %v4865_v60  ;;  %v4867_v9 = vpop.eup %4866  ;;  %v1243_v60 = vand.u32 2147483647, %v6289_v40 }
 0x19d   : > { %4870 = vlog2.f32 %v840_v62  ;;  %v833_v46 = vmul.f32 0.6931472, %v4867_v9  ;;  %v845_v62 = vmul.f32 %v6274_v56, %v844_v15  ;;  %v1241_v36 = vadd.f32 1.0, %v1240_v58 }
 0x19e   : > { %v1236_v50 = vsel %vm1235_vm15, %v1233_v42, %v1230_v8  ;;  %4872 = vlog2.f32 %v1237_v63  ;;  %vm1244_vm6 = vcmp.lt.f32.partialorder %v1243_v60, 0.0004427343 }
 0x19f   : > { %v1001_v1 = vpop.f32.mrf.mxu1  ;;  %v1444_v20 = vsel %vm1060_vm1, %v6230_v37, %v1236_v50  ;;  %v846_v37 = vand.u32 2147483647, %v6274_v56  ;;  %v839_v8 = vsel %vm6325_vm2, %v836_v30, %v833_v46  ;;  %v1242_v38 = vmul.f32 %v6289_v40, %v1241_v36 }
 0x1a0   : > { %v6317_v3 = vadd.f32 %v1001_v1, %v5925_v52  ;;  %v1488_v57 = vpack.c.bf16 %v1444_v20, %v1443_v22  ;;  %v879_v20 = vsel %vm495_vm4, %v6203_v24, %v839_v8 }
 0x1a1   : > { %vm6329_vm3 = vcmp.lt.f32.partialorder %v846_v37, 0.0004427343 }
 0x1a2   : > { %v4869_v51 = vpop.eup %4868  ;;  %v1107_v27 = vmul.f32 1.442695, %v6317_v3  ;;  %1040 = vmatmul.bf16.gmra.mxu3 %v911_v28  ;;  %vm1063_vm12 = vcmp.gt.f32.partialorder %v6317_v3, 20.0 }
 0x1a3   : > { %v4871_v61 = vpop.eup %4870  ;;  %v1246_v25 = vadd.f32 1.0, %v4869_v51  ;;  %v1249_v33 = vmul.f32 -0.5, %v4869_v51  ;;  %v1252_v56 = vand.u32 2147483647, %v4869_v51 }
 0x1a4   : > { %4874 = vpow2.f32 %v1107_v27  ;;  %1577 = vmatmul.bf16.gmra.mxu2 %v1488_v57  ;;  %v4873_v49 = vpop.eup %4872  ;;  %v842_v29 = vmul.f32 0.6931472, %v4871_v61 }
 0x1a5   : > { %4876 = vlog2.f32 %v1246_v25  ;;  %v1239_v10 = vmul.f32 0.6931472, %v4873_v49  ;;  %v1250_v44 = vadd.f32 1.0, %v1249_v33  ;;  %vm1253_vm7 = vcmp.lt.f32.partialorder %v1252_v56, 0.0004427343 }
 0x1a6   : > { %v848_v42 = vsel %vm6329_vm3, %v845_v62, %v842_v29 }
 0x1a7   : > { %v1003_v21 = vpop.f32.mrf.mxu1  ;;  %v1245_v13 = vsel %vm1244_vm6, %v1242_v38, %v1239_v10  ;;  %v1251_v22 = vmul.f32 %v4869_v51, %v1250_v44  ;;  %v880_v28 = vsel %vm496_vm5, %v6215_v32, %v848_v42 }
 0x1a8   : > { %v6335_v18 = vadd.f32 %v1003_v21, %v5925_v52  ;;  %v1445_v40 = vsel %vm1061_vm8, %v6263_v0, %v1245_v13  ;;  %v912_v51 = vpack.c.bf16 %v880_v28, %v879_v20 }
 0x1aa   : > { %v4875_v63 = vpop.eup %4874  ;;  %v1109_v43 = vmul.f32 1.442695, %v6335_v18  ;;  %vm1064_vm13 = vcmp.gt.f32.partialorder %v6335_v18, 20.0 }
 0x1ab   : > { %v4877_v12 = vpop.eup %4876  ;;  %v1255_v50 = vadd.f32 1.0, %v4875_v63  ;;  %v1258_v58 = vmul.f32 -0.5, %v4875_v63 }
 0x1ac   : > { %4878 = vpow2.f32 %v1109_v43  ;;  %v1248_v1 = vmul.f32 0.6931472, %v4877_v12 }
 0x1ad   : > { %4880 = vlog2.f32 %v1255_v50  ;;  %v1259_v0 = vadd.f32 1.0, %v1258_v58 }
 0x1ae   : > { %v1254_v57 = vsel %vm1253_vm7, %v1251_v22, %v1248_v1 }
 0x1af   : > { %v1006_v9 = vpop.f32.mrf.mxu1  ;;  %v1446_v31 = vsel %vm1062_vm9, %v6284_v17, %v1254_v57  ;;  %v1261_v17 = vand.u32 2147483647, %v4875_v63  ;;  %v1260_v36 = vmul.f32 %v4875_v63, %v1259_v0 }
 0x1b0   : > { %v6352_v27 = vadd.f32 %v1006_v9, %v5925_v52  ;;  %v1489_v15 = vpack.c.bf16 %v1446_v31, %v1445_v40 }
 0x1b1   : > { %vm1262_vm10 = vcmp.lt.f32.partialorder %v1261_v17, 0.0004427343 }
 0x1b2   : > { %v4879_v24 = vpop.eup %4878  ;;  %v1111_v32 = vmul.f32 1.442695, %v6352_v27  ;;  %1045 = vmatmul.bf16.gmra.mxu3 %v912_v51  ;;  %vm1065_vm0 = vcmp.gt.f32.partialorder %v6352_v27, 20.0 }
 0x1b3   : > { %v1264_v61 = vadd.f32 1.0, %v4879_v24  ;;  %v1267_v16 = vmul.f32 -0.5, %v4879_v24  ;;  %v4881_v37 = vpop.eup %4880  ;;  %v1270_v46 = vand.u32 2147483647, %v4879_v24 }
 0x1b4   : > { %4882 = vpow2.f32 %v1111_v32  ;;  %1582 = vmatmul.bf16.gmra.mxu2 %v1489_v15  ;;  %v1257_v49 = vmul.f32 0.6931472, %v4881_v37 }
 0x1b5   : > { %4884 = vlog2.f32 %v1264_v61  ;;  %v1268_v30 = vadd.f32 1.0, %v1267_v16  ;;  %vm1271_vm11 = vcmp.lt.f32.partialorder %v1270_v46, 0.0004427343 }
 0x1b6   : > { %v1263_v55 = vsel %vm1262_vm10, %v1260_v36, %v1257_v49 }
 0x1b7   : > { %v1008_v25 = vpop.f32.mrf.mxu1  ;;  %v1269_v10 = vmul.f32 %v4879_v24, %v1268_v30  ;;  %v1447_v43 = vsel %vm1063_vm12, %v6317_v3, %v1263_v55 }
 0x1b8   : > { %v1009_v33 = vadd.f32 %v1008_v25, %v5925_v52 }
 0x1ba   : > { %v4883_v29 = vpop.eup %4882  ;;  %v1113_v62 = vmul.f32 1.442695, %v1009_v33  ;;  %vm1066_vm1 = vcmp.gt.f32.partialorder %v1009_v33, 20.0 }
 0x1bb   : > { %v4885_v21 = vpop.eup %4884  ;;  %v1273_v6 = vadd.f32 1.0, %v4883_v29  ;;  %v1276_v38 = vmul.f32 -0.5, %v4883_v29  ;;  %v1279_v28 = vand.u32 2147483647, %v4883_v29 }
 0x1bc   : > { %4886 = vpow2.f32 %v1113_v62  ;;  %v1266_v60 = vmul.f32 0.6931472, %v4885_v21 }
 0x1bd   : > { %4888 = vlog2.f32 %v1273_v6  ;;  %v1277_v20 = vadd.f32 1.0, %v1276_v38  ;;  %vm1280_vm14 = vcmp.lt.f32.partialorder %v1279_v28, 0.0004427343 }
 0x1be   : > { %v1272_v44 = vsel %vm1271_vm11, %v1269_v10, %v1266_v60 }
 0x1bf   : > { %v1011_v56 = vpop.f32.mrf.mxu1  ;;  %v1448_v8 = vsel %vm1064_vm13, %v6335_v18, %v1272_v44  ;;  %v1278_v40 = vmul.f32 %v4883_v29, %v1277_v20 }
 0x1c0   : > { %v6361_v63 = vadd.f32 %v1011_v56, %v5925_v52  ;;  %v1490_v42 = vpack.c.bf16 %v1448_v8, %v1447_v43 }
 0x1c2   : > { %v4887_v12 = vpop.eup %4886  ;;  %v1115_v50 = vmul.f32 1.442695, %v6361_v63  ;;  %vm1067_vm4 = vcmp.gt.f32.partialorder %v6361_v63, 20.0 }
 0x1c3   : > { %v1282_v13 = vadd.f32 1.0, %v4887_v12  ;;  %v4889_v1 = vpop.eup %4888  ;;  %v1285_v22 = vmul.f32 -0.5, %v4887_v12  ;;  %v1288_v31 = vand.u32 2147483647, %v4887_v12 }
 0x1c4   : > { %4890 = vpow2.f32 %v1115_v50  ;;  %1587 = vmatmul.bf16.gmra.mxu2 %v1490_v42  ;;  %v1275_v3 = vmul.f32 0.6931472, %v4889_v1 }
 0x1c5   : > { %4892 = vlog2.f32 %v1282_v13  ;;  %v1286_v9 = vadd.f32 1.0, %v1285_v22  ;;  %vm1289_vm15 = vcmp.lt.f32.partialorder %v1288_v31, 0.0004427343 }
 0x1c6   : > { %v1281_v32 = vsel %vm1280_vm14, %v1278_v40, %v1275_v3 }
 0x1c7   : > { %v1013_v57 = vpop.f32.mrf.mxu1  ;;  %v1287_v61 = vmul.f32 %v4887_v12, %v1286_v9  ;;  %v1449_v0 = vsel %vm1065_vm0, %v6352_v27, %v1281_v32 }
 0x1c8   : > { %v1014_v18 = vadd.f32 %v1013_v57, %v5925_v52 }
 0x1ca   : > { %v4891_v51 = vpop.eup %4890  ;;  %v1117_v15 = vmul.f32 1.442695, %v1014_v18  ;;  %vm1068_vm5 = vcmp.gt.f32.partialorder %v1014_v18, 20.0 }
 0x1cb   : > { %v4893_v24 = vpop.eup %4892  ;;  %v1291_v16 = vadd.f32 1.0, %v4891_v51  ;;  %v1294_v62 = vmul.f32 -0.5, %v4891_v51  ;;  %v1297_v27 = vand.u32 2147483647, %v4891_v51 }
 0x1cc   : > { %4894 = vpow2.f32 %v1117_v15  ;;  %v1284_v58 = vmul.f32 0.6931472, %v4893_v24 }
 0x1cd   : > { %4896 = vlog2.f32 %v1291_v16  ;;  %v1295_v55 = vadd.f32 1.0, %v1294_v62  ;;  %vm1298_vm2 = vcmp.lt.f32.partialorder %v1297_v27, 0.0004427343 }
 0x1ce   : > { %v1290_v37 = vsel %vm1289_vm15, %v1287_v61, %v1284_v58 }
 0x1cf   : > { %v1450_v25 = vsel %vm1066_vm1, %v1009_v33, %v1290_v37  ;;  %v1296_v42 = vmul.f32 %v4891_v51, %v1295_v55 }
 0x1d0   : > { %v1016_v17 = vpop.f32.mrf.mxu1  ;;  %v1491_v49 = vpack.c.bf16 %v1450_v25, %v1449_v0 }
 0x1d1   : > { %v6368_v30 = vadd.f32 %v1016_v17, %v5925_v52 }
 0x1d2   : > { %v4895_v46 = vpop.eup %4894 }
 0x1d3   : > { %v1119_v29 = vmul.f32 1.442695, %v6368_v30  ;;  %v1300_v36 = vadd.f32 1.0, %v4895_v46  ;;  %v1303_v21 = vmul.f32 -0.5, %v4895_v46  ;;  %v4897_v6 = vpop.eup %4896  ;;  %v1306_v56 = vand.u32 2147483647, %v4895_v46 }
 0x1d4   : > { %1592 = vmatmul.bf16.gmra.mxu2 %v1491_v49  ;;  %v1293_v10 = vmul.f32 0.6931472, %v4897_v6  ;;  %vm1069_vm8 = vcmp.gt.f32.partialorder %v6368_v30, 20.0 }
 0x1d5   : > { %4898 = vpow2.f32 %v1119_v29  ;;  %v1304_v44 = vadd.f32 1.0, %v1303_v21  ;;  %vm1307_vm3 = vcmp.lt.f32.partialorder %v1306_v56, 0.0004427343 }
 0x1d6   : > { %4900 = vlog2.f32 %v1300_v36  ;;  %v1299_v50 = vsel %vm1298_vm2, %v1296_v42, %v1293_v10 }
 0x1d7   : > { %v1305_v1 = vmul.f32 %v4895_v46, %v1304_v44  ;;  %v1451_v28 = vsel %vm1067_vm4, %v6361_v63, %v1299_v50 }
 0x1d8   : > { %v1018_v60 = vpop.f32.mrf.mxu1 }
 0x1d9   : > { %v1019_v33 = vadd.f32 %v1018_v60, %v5925_v52 }
 0x1db   : > { %v4899_v43 = vpop.eup %4898  ;;  %v1121_v8 = vmul.f32 1.442695, %v1019_v33  ;;  %vm1070_vm9 = vcmp.gt.f32.partialorder %v1019_v33, 20.0 }
 0x1dc   : > { %v4901_v38 = vpop.eup %4900  ;;  %v1309_v12 = vadd.f32 1.0, %v4899_v43  ;;  %v1312_v40 = vmul.f32 -0.5, %v4899_v43  ;;  %v1315_v61 = vand.u32 2147483647, %v4899_v43 }
 0x1dd   : > { %4902 = vpow2.f32 %v1121_v8  ;;  %v1302_v13 = vmul.f32 0.6931472, %v4901_v38 }
 0x1de   : > { %4904 = vlog2.f32 %v1309_v12  ;;  %v1313_v58 = vadd.f32 1.0, %v1312_v40  ;;  %vm1316_vm6 = vcmp.lt.f32.partialorder %v1315_v61, 0.0004427343 }
 0x1df   : > { %v1308_v22 = vsel %vm1307_vm3, %v1305_v1, %v1302_v13 }
 0x1e0   : > { %v1021_v20 = vpop.f32.mrf.mxu1  ;;  %v1452_v57 = vsel %vm1068_vm5, %v1014_v18, %v1308_v22  ;;  %v1314_v0 = vmul.f32 %v4899_v43, %v1313_v58 }
 0x1e1   : > { %v6375_v3 = vadd.f32 %v1021_v20, %v5925_v52  ;;  %v1492_v9 = vpack.c.bf16 %v1452_v57, %v1451_v28 }
 0x1e3   : > { %v4903_v31 = vpop.eup %4902  ;;  %v1123_v51 = vmul.f32 1.442695, %v6375_v3  ;;  %vm1071_vm12 = vcmp.gt.f32.partialorder %v6375_v3, 20.0 }
 0x1e4   : > { %1597 = vmatmul.bf16.gmra.mxu2 %v1492_v9  ;;  %v1318_v15 = vadd.f32 1.0, %v4903_v31  ;;  %v4905_v24 = vpop.eup %4904  ;;  %v1321_v32 = vmul.f32 -0.5, %v4903_v31  ;;  %v1324_v25 = vand.u32 2147483647, %v4903_v31 }
 0x1e5   : > { %4906 = vpow2.f32 %v1123_v51  ;;  %v1311_v37 = vmul.f32 0.6931472, %v4905_v24 }
 0x1e6   : > { %4908 = vlog2.f32 %v1318_v15  ;;  %v1322_v18 = vadd.f32 1.0, %v1321_v32  ;;  %vm1325_vm7 = vcmp.lt.f32.partialorder %v1324_v25, 0.0004427343 }
 0x1e7   : > { %v1317_v29 = vsel %vm1316_vm6, %v1314_v0, %v1311_v37  ;;  %v6388_v37 = vpop.f32.mrf.mxu2 }
 0x1e8   : > { %v1023_v16 = vpop.f32.mrf.mxu1  ;;  %v1323_v36 = vmul.f32 %v4903_v31, %v1322_v18  ;;  %v1453_v60 = vsel %vm1069_vm8, %v6368_v30, %v1317_v29 }
 0x1e9   : > { %v1024_v63 = vadd.f32 %v1023_v16, %v5925_v52 }
 0x1eb   : > { %v4907_v17 = vpop.eup %4906  ;;  %v1125_v49 = vmul.f32 1.442695, %v1024_v63  ;;  %vm1072_vm13 = vcmp.gt.f32.partialorder %v1024_v63, 20.0 }
 0x1ec   : > { %v4909_v46 = vpop.eup %4908  ;;  %v1327_v21 = vadd.f32 1.0, %v4907_v17  ;;  %v1330_v8 = vmul.f32 -0.5, %v4907_v17 }
 0x1ed   : > { %4910 = vpow2.f32 %v1125_v49  ;;  %v1320_v62 = vmul.f32 0.6931472, %v4909_v46 }
 0x1ee   : > { %4912 = vlog2.f32 %v1327_v21  ;;  %v1331_v13 = vadd.f32 1.0, %v1330_v8 }
 0x1ef   : > { %v1326_v6 = vsel %vm1325_vm7, %v1323_v36, %v1320_v62 }
 0x1f0   : > { %v1026_v55 = vpop.f32.mrf.mxu1  ;;  %v1454_v27 = vsel %vm1070_vm9, %v1019_v33, %v1326_v6  ;;  %v1333_v33 = vand.u32 2147483647, %v4907_v17  ;;  %v1332_v9 = vmul.f32 %v4907_v17, %v1331_v13 }
 0x1f1   : > { %v6382_v10 = vadd.f32 %v1026_v55, %v5925_v52  ;;  %v1493_v44 = vpack.c.bf16 %v1454_v27, %v1453_v60  ;;  %v4646_v60 = vld [vmem:[%s8162_s2 + $0xb8] sm:$0xff] }
 0x1f2   : > { %vm1334_vm10 = vcmp.lt.f32.partialorder %v1333_v33, 0.0004427343  ;;  %2135 = vmatpush.bf16.msrb.mxu3 %v4646_v60 }
 0x1f3   : > { %v4911_v56 = vpop.eup %4910  ;;  %v1127_v43 = vmul.f32 1.442695, %v6382_v10  ;;  %vm1073_vm0 = vcmp.gt.f32.partialorder %v6382_v10, 20.0 }
 0x1f4   : > { %1602 = vmatmul.bf16.gmra.mxu2 %v1493_v44  ;;  %v1336_v42 = vadd.f32 1.0, %v4911_v56  ;;  %v1339_v38 = vmul.f32 -0.5, %v4911_v56  ;;  %v4913_v12 = vpop.eup %4912  ;;  %v1342_v28 = vand.u32 2147483647, %v4911_v56  ;;  %v6397_v44 = vpop.f32.mrf.mxu2 }
 0x1f5   : > { %4914 = vpow2.f32 %v1127_v43  ;;  %v1329_v1 = vmul.f32 0.6931472, %v4913_v12 }
 0x1f6   : > { %4916 = vlog2.f32 %v1336_v42  ;;  %v1340_v22 = vadd.f32 1.0, %v1339_v38  ;;  %vm1343_vm11 = vcmp.lt.f32.partialorder %v1342_v28, 0.0004427343  ;;  %v4645_v28 = vld [vmem:[%s8162_s2 + $0xb0] sm:$0xff] }
 0x1f7   : > { %v1335_v51 = vsel %vm1334_vm10, %v1332_v9, %v1329_v1  ;;  %2136 = vmatpush.bf16.msrb.mxu3 %v4645_v28 }
 0x1f8   : > { %v1028_v50 = vpop.f32.mrf.mxu1  ;;  %v1341_v24 = vmul.f32 %v4911_v56, %v1340_v22  ;;  %v1455_v58 = vsel %vm1071_vm12, %v6375_v3, %v1335_v51 }
 0x1f9   : > { %v1029_v30 = vadd.f32 %v1028_v50, %v5925_v52 }
 0x1fb   : > { %v1129_v20 = vmul.f32 1.442695, %v1029_v30  ;;  %v4915_v57 = vpop.eup %4914  ;;  %vm1074_vm1 = vcmp.gt.f32.partialorder %v1029_v30, 20.0 }
 0x1fc   : > { %v4917_v40 = vpop.eup %4916  ;;  %v1345_v31 = vadd.f32 1.0, %v4915_v57  ;;  %v1348_v0 = vmul.f32 -0.5, %v4915_v57  ;;  %v1351_v3 = vand.u32 2147483647, %v4915_v57 }
 0x1fd   : > { %4918 = vpow2.f32 %v1129_v20  ;;  %v1338_v15 = vmul.f32 0.6931472, %v4917_v40  ;;  %v6408_v40 = vpop.f32.mrf.mxu2 }
 0x1fe   : > { %4920 = vlog2.f32 %v1345_v31  ;;  %v1349_v36 = vadd.f32 1.0, %v1348_v0  ;;  %vm1352_vm14 = vcmp.lt.f32.partialorder %v1351_v3, 0.0004427343 }
 0x1ff   : > { %v1344_v32 = vsel %vm1343_vm11, %v1341_v24, %v1338_v15 }
 0x200   : > { %v1456_v61 = vsel %vm1072_vm13, %v1024_v63, %v1344_v32  ;;  %v1350_v55 = vmul.f32 %v4915_v57, %v1349_v36 }
 0x201   : > { %v1494_v16 = vpack.c.bf16 %v1456_v61, %v1455_v58  ;;  %v4644_v58 = vld [vmem:[%s8162_s2 + $0xa8] sm:$0xff] }
 0x202   : > { %2137 = vmatpush.bf16.msrb.mxu3 %v4644_v58 }
 0x203   : > { %v4919_v18 = vpop.eup %4918 }
 0x204   : > { %1607 = vmatmul.bf16.gmra.mxu2 %v1494_v16  ;;  %v1354_v17 = vadd.f32 1.0, %v4919_v18  ;;  %v1357_v46 = vmul.f32 -0.5, %v4919_v18  ;;  %v4921_v29 = vpop.eup %4920  ;;  %v1360_v6 = vand.u32 2147483647, %v4919_v18 }
 0x205   : > { %v1031_v25 = vpop.f32.mrf.mxu3  ;;  %v1347_v63 = vmul.f32 0.6931472, %v4921_v29  ;;  %v6418_v3 = vpop.f32.mrf.mxu2 }
 0x206   : > { %v6391_v49 = vadd.f32 %v1031_v25, %v5925_v52  ;;  %4922 = vlog2.f32 %v1354_v17  ;;  %v1358_v21 = vadd.f32 1.0, %v1357_v46  ;;  %vm1361_vm15 = vcmp.lt.f32.partialorder %v1360_v6, 0.0004427343 }
 0x207   : > { %v1353_v8 = vsel %vm1352_vm14, %v1350_v55, %v1347_v63 }
 0x208   : > { %v1131_v62 = vmul.f32 1.442695, %v6391_v49  ;;  %v1359_v38 = vmul.f32 %v4919_v18, %v1358_v21  ;;  %v1457_v1 = vsel %vm1073_vm0, %v6382_v10, %v1353_v8  ;;  %vm1075_vm4 = vcmp.gt.f32.partialorder %v6391_v49, 20.0 }
 0x20a   : > { %4924 = vpow2.f32 %v1131_v62 }
 0x20c   : > { %v4923_v27 = vpop.eup %4922 }
 0x20d   : > { %v1033_v56 = vpop.f32.mrf.mxu3  ;;  %v1356_v42 = vmul.f32 0.6931472, %v4923_v27  ;;  %v4643_v27 = vld [vmem:[%s8162_s2 + $0xa0] sm:$0xff] }
 0x20e   : > { %v1034_v43 = vadd.f32 %v1033_v56, %v5925_v52  ;;  %v4654_v56 = vld [vmem:[%s8162_s2 + $0xf8] sm:$0xff]  ;;  %2138 = vmatpush.bf16.msrb.mxu3 %v4643_v27 }
 0x20f   : > { %v1362_v13 = vsel %vm1361_vm15, %v1359_v38, %v1356_v42  ;;  %2787 = vmatpush.bf16.msrb.mxu0 %v4654_v56 }
 0x210   : > { %v4925_v12 = vpop.eup %4924  ;;  %v1133_v50 = vmul.f32 1.442695, %v1034_v43  ;;  %v1458_v22 = vsel %vm1074_vm1, %v1029_v30, %v1362_v13  ;;  %vm1076_vm5 = vcmp.gt.f32.partialorder %v1034_v43, 20.0 }
 0x211   : > { %v1363_v33 = vadd.f32 1.0, %v4925_v12  ;;  %v1495_v20 = vpack.c.bf16 %v1458_v22, %v1457_v1  ;;  %v1366_v51 = vmul.f32 -0.5, %v4925_v12  ;;  %v1369_v61 = vand.u32 2147483647, %v4925_v12 }
 0x212   : > { %4926 = vpow2.f32 %v1133_v50 }
 0x213   : > { %4928 = vlog2.f32 %v1363_v33  ;;  %v1367_v32 = vadd.f32 1.0, %v1366_v51  ;;  %vm1370_vm2 = vcmp.lt.f32.partialorder %v1369_v61, 0.0004427343 }
 0x214   : > { %1612 = vmatmul.bf16.gmra.mxu2 %v1495_v20 }
 0x215   : > { %v1036_v57 = vpop.f32.mrf.mxu3  ;;  %v1368_v29 = vmul.f32 %v4925_v12, %v1367_v32 }
 0x216   : > { %v6406_v9 = vadd.f32 %v1036_v57, %v5925_v52  ;;  %v6432_v57 = vpop.f32.mrf.mxu2 }
 0x218   : > { %v4927_v31 = vpop.eup %4926  ;;  %v1135_v10 = vmul.f32 1.442695, %v6406_v9  ;;  %vm1077_vm8 = vcmp.gt.f32.partialorder %v6406_v9, 20.0 }
 0x219   : > { %v1372_v30 = vadd.f32 1.0, %v4927_v31  ;;  %v1375_v15 = vmul.f32 -0.5, %v4927_v31  ;;  %v4929_v24 = vpop.eup %4928  ;;  %v1378_v17 = vand.u32 2147483647, %v4927_v31 }
 0x21a   : > { %4930 = vpow2.f32 %v1135_v10  ;;  %v1365_v18 = vmul.f32 0.6931472, %v4929_v24 }
 0x21b   : > { %4932 = vlog2.f32 %v1372_v30  ;;  %v1376_v0 = vadd.f32 1.0, %v1375_v15  ;;  %vm1379_vm3 = vcmp.lt.f32.partialorder %v1378_v17, 0.0004427343 }
 0x21c   : > { %v1371_v21 = vsel %vm1370_vm2, %v1368_v29, %v1365_v18 }
 0x21d   : > { %v1038_v16 = vpop.f32.mrf.mxu3  ;;  %v1377_v55 = vmul.f32 %v4927_v31, %v1376_v0  ;;  %v1459_v8 = vsel %vm1075_vm4, %v6391_v49, %v1371_v21 }
 0x21e   : > { %v6415_v25 = vadd.f32 %v1038_v16, %v5925_v52 }
 0x220   : > { %v4931_v46 = vpop.eup %4930  ;;  %v1137_v62 = vmul.f32 1.442695, %v6415_v25  ;;  %vm1078_vm9 = vcmp.gt.f32.partialorder %v6415_v25, 20.0 }
 0x221   : > { %v4933_v36 = vpop.eup %4932  ;;  %v1381_v63 = vadd.f32 1.0, %v4931_v46  ;;  %v1384_v1 = vmul.f32 -0.5, %v4931_v46  ;;  %v1387_v51 = vand.u32 2147483647, %v4931_v46 }
 0x222   : > { %v1374_v6 = vmul.f32 0.6931472, %v4933_v36  ;;  %4934 = vpow2.f32 %v1137_v62  ;;  %v4641_v36 = vld [vmem:[%s8162_s2 + $0x90] sm:$0xff] }
 0x223   : > { %4936 = vlog2.f32 %v1381_v63  ;;  %v1385_v49 = vadd.f32 1.0, %v1384_v1  ;;  %vm1388_vm6 = vcmp.lt.f32.partialorder %v1387_v51, 0.0004427343  ;;  %v6446_v63 = vpop.f32.mrf.mxu2  ;;  %v4653_v1 = vld [vmem:[%s8162_s2 + $0xf0] sm:$0xff] }
 0x224   : > { %v1380_v60 = vsel %vm1379_vm3, %v1377_v55, %v1374_v6  ;;  %2788 = vmatpush.bf16.msrb.mxu0 %v4653_v1 }
 0x225   : > { %v1460_v42 = vsel %vm1076_vm5, %v1034_v43, %v1380_v60  ;;  %v1041_v38 = vpop.f32.mrf.mxu3  ;;  %v4642_v43 = vld [vmem:[%s8162_s2 + $0x98] sm:$0xff]  ;;  %v1386_v61 = vmul.f32 %v4931_v46, %v1385_v49 }
 0x226   : > { %v1496_v12 = vpack.c.bf16 %v1460_v42, %v1459_v8  ;;  %v6429_v50 = vadd.f32 %v1041_v38, %v5925_v52  ;;  %2139 = vmatpush.bf16.msrb.mxu3 %v4642_v43 }
 0x228   : > { %v4935_v13 = vpop.eup %4934  ;;  %v1139_v33 = vmul.f32 1.442695, %v6429_v50  ;;  %1617 = vmatmul.bf16.vlgmr.msra.gmra.mxu3 %v1496_v12  ;;  %vm1079_vm12 = vcmp.gt.f32.partialorder %v6429_v50, 20.0 }
 0x229   : > { %v1390_v22 = vadd.f32 1.0, %v4935_v13  ;;  %v1393_v20 = vmul.f32 -0.5, %v4935_v13  ;;  %v4937_v28 = vpop.eup %4936  ;;  %v1396_v24 = vand.u32 2147483647, %v4935_v13 }
 0x22a   : > { %4938 = vpow2.f32 %v1139_v33  ;;  %v1383_v30 = vmul.f32 0.6931472, %v4937_v28  ;;  %2140 = vmatpush.bf16.msrb.mxu3 %v4641_v36  ;;  %v4640_v33 = vld [vmem:[%s8162_s2 + $0x88] sm:$0xff] }
 0x22b   : > { %4940 = vlog2.f32 %v1390_v22  ;;  %v1394_v15 = vadd.f32 1.0, %v1393_v20  ;;  %vm1397_vm7 = vcmp.lt.f32.partialorder %v1396_v24, 0.0004427343  ;;  %v6472_v51 = vpop.f32.mrf.mxu2 }
 0x22c   : > { %v1389_v0 = vsel %vm1388_vm6, %v1386_v61, %v1383_v30 }
 0x22d   : > { %v1043_v31 = vpop.f32.mrf.mxu3  ;;  %v1395_v29 = vmul.f32 %v4935_v13, %v1394_v15  ;;  %v1461_v21 = vsel %vm1077_vm8, %v6406_v9, %v1389_v0  ;;  %v5596_v9 = vld [vmem:[%s8163_s3] sm:$0xff] }
 0x22e   : > { %v6438_v10 = vadd.f32 %v1043_v31, %v5925_v52  ;;  %2141 = vmatpush.bf16.msrb.mxu3 %v4640_v33 }
 0x230   : > { %v4939_v32 = vpop.eup %4938  ;;  %v1141_v58 = vmul.f32 1.442695, %v6438_v10  ;;  %vm1080_vm13 = vcmp.gt.f32.partialorder %v6438_v10, 20.0 }
 0x231   : > { %v4941_v16 = vpop.eup %4940  ;;  %v1399_v18 = vadd.f32 1.0, %v4939_v32  ;;  %v1402_v8 = vmul.f32 -0.5, %v4939_v32  ;;  %v1405_v28 = vand.u32 2147483647, %v4939_v32 }
 0x232   : > { %4942 = vpow2.f32 %v1141_v58  ;;  %v1392_v17 = vmul.f32 0.6931472, %v4941_v16 }
 0x233   : > { %4944 = vlog2.f32 %v1399_v18  ;;  %v1403_v13 = vadd.f32 1.0, %v1402_v8  ;;  %vm1406_vm10 = vcmp.lt.f32.partialorder %v1405_v28, 0.0004427343 }
 0x234   : > { %v1398_v62 = vsel %vm1397_vm7, %v1395_v29, %v1392_v17 }
 0x235   : > { %v1046_v46 = vpop.f32.mrf.mxu3  ;;  %v1462_v6 = vsel %vm1078_vm9, %v6415_v25, %v1398_v62  ;;  %v6457_v25 = vperm.slane %v5596_v9, 2  ;;  %v1404_v58 = vmul.f32 %v4939_v32, %v1403_v13  ;;  %v4639_v32 = vld [vmem:[%s8162_s2 + $0x80] sm:$0xff] }
 0x236   : > { %v6451_v55 = vadd.f32 %v1046_v46, %v5925_v52  ;;  %v1497_v60 = vpack.c.bf16 %v1462_v6, %v1461_v21  ;;  %2142 = vmatpush.bf16.msrb.mxu3 %v4639_v32 }
 0x237   : > { %v6467_v22 = vadd.f32 %v6397_v44, %v6457_v25  ;;  %v6476_v24 = vadd.f32 %v6388_v37, %v6457_v25 }
 0x238   : > { %v4943_v27 = vpop.eup %4942  ;;  %v1143_v56 = vmul.f32 1.442695, %v6451_v55  ;;  %1622 = vmatmul.bf16.gmra.mxu3 %v1497_v60  ;;  %v6488_v60 = vpop.f32.mrf.mxu2  ;;  %vm1081_vm0 = vcmp.gt.f32.partialorder %v6451_v55, 20.0 }
 0x239   : > { %v1408_v42 = vadd.f32 1.0, %v4943_v27  ;;  %v1411_v38 = vmul.f32 -0.5, %v4943_v27  ;;  %v4945_v12 = vpop.eup %4944  ;;  %v1414_v30 = vand.u32 2147483647, %v4943_v27  ;;  %v1672_v16 = vmul.f32 1.442695, %v6467_v22 }
 0x23a   : > { %4946 = vpow2.f32 %v1143_v56  ;;  %v1401_v43 = vmul.f32 0.6931472, %v4945_v12  ;;  %v1670_v29 = vmul.f32 1.442695, %v6476_v24  ;;  %vm1639_vm4 = vcmp.gt.f32.partialorder %v6467_v22, 20.0 }
 0x23b   : > { %4948 = vlog2.f32 %v1408_v42  ;;  %v1412_v31 = vadd.f32 1.0, %v1411_v38  ;;  %vm1415_vm11 = vcmp.lt.f32.partialorder %v1414_v30, 0.0004427343  ;;  %vm1638_vm5 = vcmp.gt.f32.partialorder %v6476_v24, 20.0 }
 0x23c   : > { %v1407_v18 = vsel %vm1406_vm10, %v1404_v58, %v1401_v43 }
 0x23d   : > { %v1048_v20 = vpop.f32.mrf.mxu3  ;;  %v1413_v17 = vmul.f32 %v4943_v27, %v1412_v31  ;;  %v1463_v62 = vsel %vm1079_vm12, %v6429_v50, %v1407_v18 }
 0x23e   : > { %v6470_v49 = vadd.f32 %v1048_v20, %v5925_v52  ;;  %v6496_v20 = vadd.f32 %v6408_v40, %v6457_v25 }
 0x240   : > { %v4947_v15 = vpop.eup %4946  ;;  %v1145_v44 = vmul.f32 1.442695, %v6470_v49  ;;  %vm1082_vm1 = vcmp.gt.f32.partialorder %v6470_v49, 20.0  ;;  %vm1640_vm9 = vcmp.gt.f32.partialorder %v6496_v20, 20.0 }
 0x241   : > { %v4949_v61 = vpop.eup %4948  ;;  %v1417_v52 = vadd.f32 1.0, %v4947_v15  ;;  %v1420_v6 = vmul.f32 -0.5, %v4947_v15  ;;  %v1423_v12 = vand.u32 2147483647, %v4947_v15 }
 0x242   : > { %4950 = vpow2.f32 %v1145_v44  ;;  %v1410_v0 = vmul.f32 0.6931472, %v4949_v61 }
 0x243   : > { %4952 = vlog2.f32 %v1417_v52  ;;  %v1421_v38 = vadd.f32 1.0, %v1420_v6  ;;  %vm1424_vm14 = vcmp.lt.f32.partialorder %v1423_v12, 0.0004427343 }
 0x244   : > { %v1416_v37 = vsel %vm1415_vm11, %v1413_v17, %v1410_v0  ;;  %4954 = vpow2.f32 %v1672_v16  ;;  %v1674_v16 = vmul.f32 1.442695, %v6496_v20 }
 0x245   : > { %v1464_v36 = vsel %vm1080_vm13, %v6438_v10, %v1416_v37  ;;  %4956 = vpow2.f32 %v1670_v29  ;;  %v6492_v10 = vadd.f32 %v6418_v3, %v6457_v25  ;;  %v1422_v28 = vmul.f32 %v4947_v15, %v1421_v38  ;;  %v6499_v3 = vpop.f32.mrf.mxu2  ;;  %v4652_v15 = vld [vmem:[%s8162_s2 + $0xe8] sm:$0xff] }
 0x246   : > { %v1498_v46 = vpack.c.bf16 %v1464_v36, %v1463_v62  ;;  %2789 = vmatpush.bf16.msrb.mxu0 %v4652_v15  ;;  %v6513_v38 = vadd.f32 %v6446_v63, %v6457_v25 }
 0x247   : > { %v1676_v30 = vmul.f32 1.442695, %v6492_v10  ;;  %vm1641_vm8 = vcmp.gt.f32.partialorder %v6492_v10, 20.0 }
 0x248   : > { %v4951_v21 = vpop.eup %4950  ;;  %1627 = vmatmul.bf16.gmra.mxu3 %v1498_v46  ;;  %vm1643_vm12 = vcmp.gt.f32.partialorder %v6513_v38, 20.0 }
 0x249   : > { %v1426_v27 = vadd.f32 1.0, %v4951_v21  ;;  %v1429_v56 = vmul.f32 -0.5, %v4951_v21  ;;  %v4953_v8 = vpop.eup %4952  ;;  %v1432_v1 = vand.u32 2147483647, %v4951_v21 }
 0x24a   : > { %v4955_v42 = vpop.eup %4954  ;;  %v1419_v9 = vmul.f32 0.6931472, %v4953_v8 }
 0x24b   : > { %4958 = vlog2.f32 %v1426_v27  ;;  %v4957_v50 = vpop.eup %4956  ;;  %v1430_v13 = vadd.f32 1.0, %v1429_v56  ;;  %v1743_v33 = vadd.f32 1.0, %v4955_v42  ;;  %vm1433_vm15 = vcmp.lt.f32.partialorder %v1432_v1, 0.0004427343 }
 0x24c   : > { %v1734_v31 = vadd.f32 1.0, %v4957_v50  ;;  %v1425_v44 = vsel %vm1424_vm14, %v1422_v28, %v1419_v9  ;;  %v1746_v0 = vmul.f32 -0.5, %v4955_v42  ;;  %v1737_v29 = vmul.f32 -0.5, %v4957_v50 }
 0x24d   : > { %v1431_v61 = vmul.f32 %v4951_v21, %v1430_v13  ;;  %4960 = vlog2.f32 %v1743_v33  ;;  %v1465_v52 = vsel %vm1081_vm0, %v6451_v55, %v1425_v44  ;;  %v1749_v36 = vand.u32 2147483647, %v4955_v42  ;;  %v6509_v56 = vpop.f32.mrf.mxu2 }
 0x24e   : > { %4962 = vlog2.f32 %v1734_v31  ;;  %v1747_v32 = vadd.f32 1.0, %v1746_v0  ;;  %v1738_v21 = vadd.f32 1.0, %v1737_v29  ;;  %v1740_v27 = vand.u32 2147483647, %v4957_v50 }
 0x24f   : > { %4964 = vpow2.f32 %v1676_v30  ;;  %vm1750_vm2 = vcmp.lt.f32.partialorder %v1749_v36, 0.0004427343  ;;  %v6517_v33 = vadd.f32 %v6432_v57, %v6457_v25 }
 0x250   : > { %4966 = vpow2.f32 %v1674_v16  ;;  %v1739_v9 = vmul.f32 %v4957_v50, %v1738_v21  ;;  %vm1741_vm3 = vcmp.lt.f32.partialorder %v1740_v27, 0.0004427343 }
 0x251   : > { %v4959_v43 = vpop.eup %4958  ;;  %v1678_v63 = vmul.f32 1.442695, %v6517_v33  ;;  %vm1642_vm13 = vcmp.gt.f32.partialorder %v6517_v33, 20.0 }
 0x252   : > { %v1428_v58 = vmul.f32 0.6931472, %v4959_v43  ;;  %v1680_v43 = vmul.f32 1.442695, %v6513_v38 }
 0x253   : > { %v4961_v37 = vpop.eup %4960 }
 0x254   : > { %v1434_v40 = vsel %vm1433_vm15, %v1431_v61, %v1428_v58  ;;  %v4963_v62 = vpop.eup %4962  ;;  %v1745_v6 = vmul.f32 0.6931472, %v4961_v37 }
 0x255   : > { %v1466_v18 = vsel %vm1082_vm1, %v6470_v49, %v1434_v40  ;;  %v4965_v46 = vpop.eup %4964  ;;  %v1736_v8 = vmul.f32 0.6931472, %v4963_v62  ;;  %v1748_v49 = vmul.f32 %v4955_v42, %v1747_v32  ;;  %v6525_v30 = vpop.f32.mrf.mxu2  ;;  %v6533_v32 = vadd.f32 %v6472_v51, %v6457_v25  ;;  %v4651_v51 = vld [vmem:[%s8162_s2 + $0xe0] sm:$0xff] }
 0x256   : > { %v1499_v17 = vpack.c.bf16 %v1466_v18, %v1465_v52  ;;  %v4967_v55 = vpop.eup %4966  ;;  %v1761_v12 = vadd.f32 1.0, %v4965_v46  ;;  %v1764_v57 = vmul.f32 -0.5, %v4965_v46  ;;  %2790 = vmatpush.bf16.msrb.mxu0 %v4651_v51 }
 0x257   : > { %v1751_v13 = vsel %vm1750_vm2, %v1748_v49, %v1745_v6  ;;  %v1752_v1 = vadd.f32 1.0, %v4967_v55  ;;  %v1742_v28 = vsel %vm1741_vm3, %v1739_v9, %v1736_v8  ;;  %v1755_v44 = vmul.f32 -0.5, %v4967_v55 }
 0x258   : > { %1632 = vmatmul.bf16.gmra.mxu3 %v1499_v17  ;;  %v2023_v42 = vsel %vm1639_vm4, %v6467_v22, %v1751_v13  ;;  %4968 = vlog2.f32 %v1761_v12  ;;  %v2022_v50 = vsel %vm1638_vm5, %v6476_v24, %v1742_v28  ;;  %v1765_v61 = vadd.f32 1.0, %v1764_v57 }
 0x259   : > { %4970 = vlog2.f32 %v1752_v1  ;;  %v2071_v31 = vpack.c.bf16 %v2023_v42, %v2022_v50  ;;  %v1767_v22 = vand.u32 2147483647, %v4965_v46  ;;  %v1756_v15 = vadd.f32 1.0, %v1755_v44 }
 0x25a   : > { %4972 = vpow2.f32 %v1680_v43  ;;  %v1758_v18 = vand.u32 2147483647, %v4967_v55  ;;  %v6529_v24 = vadd.f32 %v6488_v60, %v6457_v25  ;;  %v1766_v29 = vmul.f32 %v4965_v46, %v1765_v61 }
 0x25b   : > { %4974 = vpow2.f32 %v1678_v63  ;;  %vm1768_vm6 = vcmp.lt.f32.partialorder %v1767_v22, 0.0004427343  ;;  %v1757_v62 = vmul.f32 %v4967_v55, %v1756_v15  ;;  %v1682_v46 = vmul.f32 1.442695, %v6533_v32 }
 0x25c   : > { %vm1759_vm7 = vcmp.lt.f32.partialorder %v1758_v18, 0.0004427343  ;;  %v1684_v27 = vmul.f32 1.442695, %v6529_v24  ;;  %vm1645_vm0 = vcmp.gt.f32.partialorder %v6529_v24, 20.0  ;;  %vm1644_vm1 = vcmp.gt.f32.partialorder %v6533_v32, 20.0 }
 0x25d   : > { %v6535_v21 = vpop.f32.mrf.mxu2 }
 0x25e   : > { %v4969_v58 = vpop.eup %4968 }
 0x25f   : > { %v4971_v16 = vpop.eup %4970  ;;  %v1763_v52 = vmul.f32 0.6931472, %v4969_v58 }
 0x260   : > { %v4973_v40 = vpop.eup %4972  ;;  %v1754_v17 = vmul.f32 0.6931472, %v4971_v16  ;;  %v6554_v16 = vadd.f32 %v6499_v3, %v6457_v25 }
 0x261   : > { %v4975_v0 = vpop.eup %4974  ;;  %v1779_v37 = vadd.f32 1.0, %v4973_v40  ;;  %v1769_v36 = vsel %vm1768_vm6, %v1766_v29, %v1763_v52  ;;  %v1782_v12 = vmul.f32 -0.5, %v4973_v40  ;;  %v1785_v43 = vand.u32 2147483647, %v4973_v40 }
 0x262   : > { %v1770_v6 = vadd.f32 1.0, %v4975_v0  ;;  %v1760_v60 = vsel %vm1759_vm7, %v1757_v62, %v1754_v17  ;;  %v2025_v8 = vsel %vm1641_vm8, %v6492_v10, %v1769_v36  ;;  %v1773_v9 = vmul.f32 -0.5, %v4975_v0  ;;  %v4650_v36 = vld [vmem:[%s8162_s2 + $0xd8] sm:$0xff] }
 0x263   : > { %4976 = vlog2.f32 %v1779_v37  ;;  %v2024_v55 = vsel %vm1640_vm9, %v6496_v20, %v1760_v60  ;;  %v1783_v13 = vadd.f32 1.0, %v1782_v12  ;;  %v6550_v20 = vadd.f32 %v6509_v56, %v6457_v25  ;;  %2791 = vmatpush.bf16.msrb.mxu0 %v4650_v36 }
 0x264   : > { %4978 = vlog2.f32 %v1770_v6  ;;  %v2072_v49 = vpack.c.bf16 %v2025_v8, %v2024_v55  ;;  %v1774_v63 = vadd.f32 1.0, %v1773_v9  ;;  %vm1786_vm10 = vcmp.lt.f32.partialorder %v1785_v43, 0.0004427343 }
 0x265   : > { %4980 = vpow2.f32 %v1684_v27  ;;  %v6546_v28 = vpop.f32.mrf.mxu2  ;;  %v1784_v58 = vmul.f32 %v4973_v40, %v1783_v13  ;;  %v1688_v18 = vmul.f32 1.442695, %v6550_v20  ;;  %v1686_v40 = vmul.f32 1.442695, %v6554_v16 }
 0x266   : > { %4982 = vpow2.f32 %v1682_v46  ;;  %v1775_v22 = vmul.f32 %v4975_v0, %v1774_v63  ;;  %vm1647_vm4 = vcmp.gt.f32.partialorder %v6550_v20, 20.0  ;;  %vm1646_vm5 = vcmp.gt.f32.partialorder %v6554_v16, 20.0 }
 0x268   : > { %2143 = vmatmul.bf16.vlgmr.msrb.gmra.mxu3 %v2071_v31  ;;  %v1776_v31 = vand.u32 2147483647, %v4975_v0 }
 0x269   : > { %v4977_v10 = vpop.eup %4976 }
 0x26a   : > { %v4979_v1 = vpop.eup %4978  ;;  %v1781_v50 = vmul.f32 0.6931472, %v4977_v10  ;;  %vm1777_vm11 = vcmp.lt.f32.partialorder %v1776_v31, 0.0004427343  ;;  %v6571_v10 = vadd.f32 %v6525_v30, %v6457_v25 }
 0x26b   : > { %v4981_v42 = vpop.eup %4980  ;;  %v1772_v44 = vmul.f32 0.6931472, %v4979_v1 }
 0x26c   : > { %v4983_v57 = vpop.eup %4982  ;;  %v1797_v61 = vadd.f32 1.0, %v4981_v42  ;;  %v1787_v15 = vsel %vm1786_vm10, %v1784_v58, %v1781_v50  ;;  %v1800_v37 = vmul.f32 -0.5, %v4981_v42  ;;  %v1803_v60 = vand.u32 2147483647, %v4981_v42 }
 0x26d   : > { %v1788_v52 = vadd.f32 1.0, %v4983_v57  ;;  %v1778_v17 = vsel %vm1777_vm11, %v1775_v22, %v1772_v44  ;;  %v2027_v56 = vsel %vm1643_vm12, %v6513_v38, %v1787_v15  ;;  %v1590_v29 = vpop.f32.mrf.mxu2  ;;  %v1791_v62 = vmul.f32 -0.5, %v4983_v57 }
 0x26e   : > { %4984 = vlog2.f32 %v1797_v61  ;;  %v2026_v3 = vsel %vm1642_vm13, %v6517_v33, %v1778_v17  ;;  %v1801_v6 = vadd.f32 1.0, %v1800_v37  ;;  %v1794_v33 = vand.u32 2147483647, %v4983_v57 }
 0x26f   : > { %4986 = vlog2.f32 %v1788_v52  ;;  %v2073_v0 = vpack.c.bf16 %v2027_v56, %v2026_v3  ;;  %v1792_v46 = vadd.f32 1.0, %v1791_v62  ;;  %vm1804_vm14 = vcmp.lt.f32.partialorder %v1803_v60, 0.0004427343 }
 0x270   : > { %4988 = vpow2.f32 %v1688_v18  ;;  %v1802_v9 = vmul.f32 %v4981_v42, %v1801_v6  ;;  %vm1795_vm15 = vcmp.lt.f32.partialorder %v1794_v33, 0.0004427343  ;;  %v1690_v44 = vmul.f32 1.442695, %v6571_v10 }
 0x271   : > { %4990 = vpow2.f32 %v1686_v40  ;;  %v1793_v43 = vmul.f32 %v4983_v57, %v1792_v46  ;;  %v6586_v37 = vadd.f32 %v6546_v28, %v6457_v25  ;;  %v4649_v46 = vld [vmem:[%s8162_s2 + $0xd0] sm:$0xff]  ;;  %vm1648_vm9 = vcmp.gt.f32.partialorder %v6571_v10, 20.0 }
 0x272   : > { %2792 = vmatpush.bf16.msrb.mxu0 %v4649_v46 }
 0x273   : > { %vm1650_vm13 = vcmp.gt.f32.partialorder %v6586_v37, 20.0 }
 0x274   : > { %v4985_v38 = vpop.eup %4984 }
 0x275   : > { %v4987_v27 = vpop.eup %4986  ;;  %v1799_v51 = vmul.f32 0.6931472, %v4985_v38  ;;  %v6573_v13 = vpop.f32.mrf.mxu2 }
 0x276   : > { %v4989_v8 = vpop.eup %4988  ;;  %v1790_v12 = vmul.f32 0.6931472, %v4987_v27 }
 0x277   : > { %v4991_v55 = vpop.eup %4990  ;;  %v1815_v1 = vadd.f32 1.0, %v4989_v8  ;;  %v1805_v63 = vsel %vm1804_vm14, %v1802_v9, %v1799_v51  ;;  %v1818_v58 = vmul.f32 -0.5, %v4989_v8  ;;  %v1821_v17 = vand.u32 2147483647, %v4989_v8 }
 0x278   : > { %2148 = vmatmul.bf16.gmra.mxu3 %v2072_v49  ;;  %v6567_v49 = vadd.f32 %v6535_v21, %v6457_v25  ;;  %v1806_v50 = vadd.f32 1.0, %v4991_v55  ;;  %v1796_v21 = vsel %vm1795_vm15, %v1793_v43, %v1790_v12  ;;  %v2029_v42 = vsel %vm1645_vm0, %v6529_v24, %v1805_v63 }
 0x279   : > { %4992 = vlog2.f32 %v1815_v1  ;;  %v2028_v30 = vsel %vm1644_vm1, %v6533_v32, %v1796_v21  ;;  %v1809_v61 = vmul.f32 -0.5, %v4991_v55  ;;  %v1819_v52 = vadd.f32 1.0, %v1818_v58 }
 0x27a   : > { %v1692_v31 = vmul.f32 1.442695, %v6567_v49  ;;  %4994 = vlog2.f32 %v1806_v50  ;;  %v2074_v57 = vpack.c.bf16 %v2029_v42, %v2028_v30  ;;  %v1812_v32 = vand.u32 2147483647, %v4991_v55 }
 0x27b   : > { %v1810_v40 = vadd.f32 1.0, %v1809_v61  ;;  %v1820_v36 = vmul.f32 %v4989_v8, %v1819_v52  ;;  %vm1822_vm2 = vcmp.lt.f32.partialorder %v1821_v17, 0.0004427343  ;;  %vm1649_vm8 = vcmp.gt.f32.partialorder %v6567_v49, 20.0 }
 0x27c   : > { %4996 = vpow2.f32 %v1692_v31  ;;  %vm1813_vm3 = vcmp.lt.f32.partialorder %v1812_v32, 0.0004427343 }
 0x27d   : > { %4998 = vpow2.f32 %v1690_v44  ;;  %v1595_v15 = vpop.f32.mrf.mxu2  ;;  %v1811_v6 = vmul.f32 %v4991_v55, %v1810_v40  ;;  %v6608_v40 = vadd.f32 %v6573_v13, %v6457_v25 }
 0x27f   : > { %v4993_v22 = vpop.eup %4992 }
 0x280   : > { %v4995_v18 = vpop.eup %4994  ;;  %v1817_v24 = vmul.f32 0.6931472, %v4993_v22  ;;  %v6603_v22 = vadd.f32 %v1595_v15, %v6457_v25 }
 0x281   : > { %v1808_v62 = vmul.f32 0.6931472, %v4995_v18 }
 0x282   : > { %v4997_v56 = vpop.eup %4996  ;;  %v1823_v27 = vsel %vm1822_vm2, %v1820_v36, %v1817_v24  ;;  %v1700_v36 = vmul.f32 1.442695, %v6603_v22 }
 0x283   : > { %v4999_v3 = vpop.eup %4998  ;;  %v1833_v38 = vadd.f32 1.0, %v4997_v56  ;;  %v1814_v28 = vsel %vm1813_vm3, %v1811_v6, %v1808_v62  ;;  %v2031_v8 = vsel %vm1647_vm4, %v6550_v20, %v1823_v27  ;;  %v1836_v9 = vmul.f32 -0.5, %v4997_v56 }
 0x284   : > { %v1824_v60 = vadd.f32 1.0, %v4999_v3  ;;  %v2030_v55 = vsel %vm1646_vm5, %v6554_v16, %v1814_v28  ;;  %v1827_v1 = vmul.f32 -0.5, %v4999_v3  ;;  %v1839_v44 = vand.u32 2147483647, %v4997_v56 }
 0x285   : > { %v6594_v33 = vpop.f32.mrf.mxu2  ;;  %5000 = vlog2.f32 %v1833_v38  ;;  %v2075_v12 = vpack.c.bf16 %v2031_v8, %v2030_v55  ;;  %v1837_v50 = vadd.f32 1.0, %v1836_v9  ;;  %v1830_v16 = vand.u32 2147483647, %v4999_v3 }
 0x286   : > { %5002 = vlog2.f32 %v1824_v60  ;;  %v1828_v30 = vadd.f32 1.0, %v1827_v1  ;;  %vm1840_vm6 = vcmp.lt.f32.partialorder %v1839_v44, 0.0004427343  ;;  %v1698_v38 = vmul.f32 1.442695, %v6608_v40 }
 0x287   : > { %v1838_v18 = vmul.f32 %v4997_v56, %v1837_v50  ;;  %vm1831_vm7 = vcmp.lt.f32.partialorder %v1830_v16, 0.0004427343  ;;  %vm1652_vm3 = vcmp.gt.f32.partialorder %v6608_v40, 20.0  ;;  %vm1653_vm5 = vcmp.gt.f32.partialorder %v6603_v22, 20.0 }
 0x288   : > { %2153 = vmatmul.bf16.gmra.mxu3 %v2073_v0  ;;  %v6582_v0 = vadd.f32 %v1590_v29, %v6457_v25  ;;  %v1694_v29 = vmul.f32 1.442695, %v6586_v37  ;;  %v1829_v32 = vmul.f32 %v4999_v3, %v1828_v30 }
 0x28a   : > { %v1696_v51 = vmul.f32 1.442695, %v6582_v0  ;;  %vm1651_vm12 = vcmp.gt.f32.partialorder %v6582_v0, 20.0 }
 0x28b   : > { %v5001_v43 = vpop.eup %5000 }
 0x28c   : > { %5004 = vpow2.f32 %v1696_v51  ;;  %v5003_v63 = vpop.eup %5002 }
 0x28d   : > { %5006 = vpow2.f32 %v1694_v29  ;;  %v1600_v58 = vpop.f32.mrf.mxu2  ;;  %v1826_v61 = vmul.f32 0.6931472, %v5003_v63 }
 0x28f   : > { %v1832_v15 = vsel %vm1831_vm7, %v1829_v32, %v1826_v61 }
 0x290   : > { %v2032_v3 = vsel %vm1648_vm9, %v6571_v10, %v1832_v15 }
 0x292   : > { %v5005_v31 = vpop.eup %5004 }
 0x293   : > { %v5007_v42 = vpop.eup %5006  ;;  %v1851_v17 = vadd.f32 1.0, %v5005_v31  ;;  %v1854_v60 = vmul.f32 -0.5, %v5005_v31  ;;  %v1857_v1 = vand.u32 2147483647, %v5005_v31 }
 0x294   : > { %v1842_v24 = vadd.f32 1.0, %v5007_v42  ;;  %v1845_v27 = vmul.f32 -0.5, %v5007_v42  ;;  %v1848_v9 = vand.u32 2147483647, %v5007_v42 }
 0x295   : > { %v6622_v28 = vpop.f32.mrf.mxu2  ;;  %v1855_v10 = vadd.f32 1.0, %v1854_v60  ;;  %vm6640_vm11 = vcmp.lt.f32.partialorder %v1857_v1, 0.0004427343 }
 0x296   : > { %vm6632_vm10 = vcmp.lt.f32.partialorder %v1848_v9, 0.0004427343 }
 0x297   : > { %v1856_v16 = vmul.f32 %v5005_v31, %v1855_v10 }
 0x298   : > { %2158 = vmatmul.bf16.gmra.mxu3 %v2074_v57  ;;  %v1835_v57 = vmul.f32 0.6931472, %v5001_v43 }
 0x29a   : > { %v1841_v62 = vsel %vm1840_vm6, %v1838_v18, %v1835_v57  ;;  %v6637_v18 = vadd.f32 %v1600_v58, %v6457_v25 }
 0x29b   : > { %v2033_v6 = vsel %vm1649_vm8, %v6567_v49, %v1841_v62 }
 0x29c   : > { %v2076_v29 = vpack.c.bf16 %v2033_v6, %v2032_v3  ;;  %v1704_v3 = vmul.f32 1.442695, %v6637_v18 }
 0x2a8   : > { %2163 = vmatmul.bf16.gmra.mxu3 %v2075_v12  ;;  %v1846_v12 = vadd.f32 1.0, %v1845_v27 }
 0x2aa   : > { %v1847_v57 = vmul.f32 %v5007_v42, %v1846_v12  ;;  %v6647_v42 = vadd.f32 %v6594_v33, %v6457_v25  ;;  %v1605_v33 = vpop.f32.mrf.mxu2 }
 0x2ab   : > { %v1618_v21 = vpop.f32.mrf.mxu3 }
 0x2ac   : > { %v6600_v20 = vadd.f32 %v1618_v21, %v6457_v25 }
 0x2ae   : > { %v1718_v52 = vmul.f32 1.442695, %v6600_v20  ;;  %vm1662_vm0 = vcmp.gt.f32.partialorder %v6600_v20, 20.0 }
 0x2b0   : > { %5008 = vpow2.f32 %v1718_v52 }
 0x2b1   : > { %5010 = vlog2.f32 %v1851_v17 }
 0x2b2   : > { %5012 = vlog2.f32 %v1842_v24 }
 0x2b3   : > { %v1620_v56 = vpop.f32.mrf.mxu3  ;;  %5014 = vpow2.f32 %v1700_v36 }
 0x2b4   : > { %v6616_v13 = vadd.f32 %v1620_v56, %v6457_v25  ;;  %5016 = vpow2.f32 %v1698_v38  ;;  %v4648_v38 = vld [vmem:[%s8162_s2 + $0xc8] sm:$0xff] }
 0x2b5   : > { %2793 = vmatpush.bf16.msrb.mxu0 %v4648_v38 }
 0x2b6   : > { %v6619_v46 = vpop.eup %5008  ;;  %v1720_v51 = vmul.f32 1.442695, %v6616_v13  ;;  %vm1663_vm1 = vcmp.gt.f32.partialorder %v6616_v13, 20.0 }
 0x2b7   : > { %v1950_v49 = vadd.f32 1.0, %v6619_v46  ;;  %v5011_v8 = vpop.eup %5010  ;;  %v1953_v32 = vmul.f32 -0.5, %v6619_v46 }
 0x2b8   : > { %5018 = vpow2.f32 %v1720_v51  ;;  %2168 = vmatmul.bf16.gmra.mxu3 %v2076_v29  ;;  %v5013_v55 = vpop.eup %5012  ;;  %v1853_v63 = vmul.f32 0.6931472, %v5011_v8  ;;  %v1702_v51 = vmul.f32 1.442695, %v6647_v42  ;;  %v1956_v8 = vand.u32 2147483647, %v6619_v46 }
 0x2b9   : > { %5020 = vlog2.f32 %v1950_v49  ;;  %v6625_v50 = vpop.eup %5014  ;;  %v1844_v44 = vmul.f32 0.6931472, %v5013_v55  ;;  %v1954_v60 = vadd.f32 1.0, %v1953_v32 }
 0x2ba   : > { %v6630_v30 = vpop.eup %5016  ;;  %v1859_v62 = vsel %vm6640_vm11, %v1856_v16, %v1853_v63  ;;  %v1869_v31 = vadd.f32 1.0, %v6625_v50  ;;  %vm6674_vm14 = vcmp.lt.f32.partialorder %v1956_v8, 0.0004427343  ;;  %vm1655_vm11 = vcmp.gt.f32.partialorder %v6637_v18, 20.0 }
 0x2bb   : > { %v1623_v43 = vpop.f32.mrf.mxu3  ;;  %v1850_v58 = vsel %vm6632_vm10, %v1847_v57, %v1844_v44  ;;  %v1860_v15 = vadd.f32 1.0, %v6630_v30  ;;  %v2035_v27 = vsel %vm1651_vm12, %v6582_v0, %v1859_v62  ;;  %v1863_v1 = vmul.f32 -0.5, %v6630_v30 }
 0x2bc   : > { %v6628_v21 = vadd.f32 %v1623_v43, %v6457_v25  ;;  %v2034_v49 = vsel %vm1650_vm13, %v6586_v37, %v1850_v58  ;;  %v1872_v37 = vmul.f32 -0.5, %v6625_v50  ;;  %v1955_v44 = vmul.f32 %v6619_v46, %v1954_v60 }
 0x2bd   : > { %v2077_v10 = vpack.c.bf16 %v2035_v27, %v2034_v49  ;;  %vm1654_vm13 = vcmp.gt.f32.partialorder %v6647_v42, 20.0 }
 0x2be   : > { %v5019_v52 = vpop.eup %5018  ;;  %v1722_v17 = vmul.f32 1.442695, %v6628_v21  ;;  %v1873_v46 = vadd.f32 1.0, %v1872_v37  ;;  %vm1664_vm8 = vcmp.gt.f32.partialorder %v6628_v21, 20.0 }
 0x2bf   : > { %v1959_v36 = vadd.f32 1.0, %v5019_v52  ;;  %v1962_v56 = vmul.f32 -0.5, %v5019_v52  ;;  %v5021_v6 = vpop.eup %5020  ;;  %v1965_v0 = vand.u32 2147483647, %v5019_v52 }
 0x2c0   : > { %5022 = vpow2.f32 %v1722_v17  ;;  %v1952_v12 = vmul.f32 0.6931472, %v5021_v6 }
 0x2c1   : > { %5024 = vlog2.f32 %v1959_v36  ;;  %v1963_v9 = vadd.f32 1.0, %v1962_v56  ;;  %vm1966_vm15 = vcmp.lt.f32.partialorder %v1965_v0, 0.0004427343  ;;  %v1875_v56 = vand.u32 2147483647, %v6625_v50 }
 0x2c2   : > { %5026 = vlog2.f32 %v1869_v31  ;;  %v1958_v17 = vsel %vm6674_vm14, %v1955_v44, %v1952_v12  ;;  %v1864_v31 = vadd.f32 1.0, %v1863_v1  ;;  %v6711_v0 = vadd.f32 %v6622_v28, %v6457_v25 }
 0x2c3   : > { %v1625_v29 = vpop.f32.mrf.mxu3  ;;  %5028 = vlog2.f32 %v1860_v15  ;;  %v1964_v32 = vmul.f32 %v5019_v52, %v1963_v9  ;;  %v6683_v15 = vpop.f32.mrf.mxu2  ;;  %v6687_v6 = vsel %vm1662_vm0, %v6600_v20, %v1958_v17  ;;  %v1866_v20 = vand.u32 2147483647, %v6630_v30 }
 0x2c4   : > { %v6666_v55 = vadd.f32 %v1625_v29, %v6457_v25  ;;  %5030 = vpow2.f32 %v1704_v3  ;;  %v1865_v8 = vmul.f32 %v6630_v30, %v1864_v31  ;;  %vm6713_vm2 = vcmp.lt.f32.partialorder %v1875_v56, 0.0004427343 }
 0x2c5   : > { %5032 = vpow2.f32 %v1702_v51  ;;  %vm6722_vm4 = vcmp.lt.f32.partialorder %v1866_v20, 0.0004427343  ;;  %v6754_v28 = vadd.f32 %v6683_v15, %v6457_v25 }
 0x2c6   : > { %v6669_v43 = vpop.eup %5022  ;;  %v1724_v63 = vmul.f32 1.442695, %v6666_v55  ;;  %vm1665_vm9 = vcmp.gt.f32.partialorder %v6666_v55, 20.0 }
 0x2c7   : > { %v5025_v57 = vpop.eup %5024  ;;  %v1968_v16 = vadd.f32 1.0, %v6669_v43  ;;  %v1971_v1 = vmul.f32 -0.5, %v6669_v43  ;;  %v1974_v31 = vand.u32 2147483647, %v6669_v43 }
 0x2c8   : > { %5034 = vpow2.f32 %v1724_v63  ;;  %2173 = vmatmul.bf16.gmra.mxu3 %v2077_v10  ;;  %v1961_v24 = vmul.f32 0.6931472, %v5025_v57  ;;  %v5027_v62 = vpop.eup %5026  ;;  %v1874_v10 = vmul.f32 %v6625_v50, %v1873_v46 }
 0x2c9   : > { %v5029_v36 = vpop.eup %5028  ;;  %5036 = vlog2.f32 %v1968_v16  ;;  %v1871_v60 = vmul.f32 0.6931472, %v5027_v62  ;;  %v1972_v17 = vadd.f32 1.0, %v1971_v1  ;;  %vm6745_vm6 = vcmp.lt.f32.partialorder %v1974_v31, 0.0004427343 }
 0x2ca   : > { %v1967_v58 = vsel %vm1966_vm15, %v1964_v32, %v1961_v24  ;;  %v6692_v3 = vpop.eup %5030  ;;  %v1862_v49 = vmul.f32 0.6931472, %v5029_v36  ;;  %v1706_v24 = vmul.f32 1.442695, %v6711_v0 }
 0x2cb   : > { %v1628_v38 = vpop.f32.mrf.mxu3  ;;  %v6690_v52 = vsel %vm1663_vm1, %v6616_v13, %v1967_v58  ;;  %v6699_v29 = vpop.eup %5032  ;;  %v6704_v13 = vadd.f32 %v1605_v33, %v6457_v25  ;;  %v1887_v30 = vadd.f32 1.0, %v6692_v3  ;;  %v1877_v33 = vsel %vm6713_vm2, %v1874_v10, %v1871_v60 }
 0x2cc   : > { %v6695_v27 = vadd.f32 %v1628_v38, %v6457_v25  ;;  %v2083_v51 = vpack.c.bf16 %v6690_v52, %v6687_v6  ;;  %v1878_v44 = vadd.f32 1.0, %v6699_v29  ;;  %v1868_v16 = vsel %vm6722_vm4, %v1865_v8, %v1862_v49  ;;  %v1610_v38 = vpop.f32.mrf.mxu2 }
 0x2cd   : > { %v1708_v61 = vmul.f32 1.442695, %v6704_v13  ;;  %v2037_v62 = vsel %vm1653_vm5, %v6603_v22, %v1877_v33  ;;  %v2036_v56 = vsel %vm1652_vm3, %v6608_v40, %v1868_v16  ;;  %v1881_v60 = vmul.f32 -0.5, %v6699_v29 }
 0x2ce   : > { %v5035_v12 = vpop.eup %5034  ;;  %v1726_v9 = vmul.f32 1.442695, %v6695_v27  ;;  %v1890_v49 = vmul.f32 -0.5, %v6692_v3  ;;  %v1973_v10 = vmul.f32 %v6669_v43, %v1972_v17  ;;  %v1893_v17 = vand.u32 2147483647, %v6692_v3 }
 0x2cf   : > { %v1977_v37 = vadd.f32 1.0, %v5035_v12  ;;  %v1980_v50 = vmul.f32 -0.5, %v5035_v12  ;;  %v5037_v57 = vpop.eup %5036  ;;  %v1983_v8 = vand.u32 2147483647, %v5035_v12  ;;  %vm1666_vm0 = vcmp.gt.f32.partialorder %v6695_v27, 20.0 }
 0x2d0   : > { %5038 = vpow2.f32 %v1726_v9  ;;  %v1970_v46 = vmul.f32 0.6931472, %v5037_v57  ;;  %v2078_v9 = vpack.c.bf16 %v2037_v62, %v2036_v56  ;;  %v1891_v57 = vadd.f32 1.0, %v1890_v49 }
 0x2d1   : > { %5040 = vlog2.f32 %v1977_v37  ;;  %v1981_v58 = vadd.f32 1.0, %v1980_v50  ;;  %v1882_v50 = vadd.f32 1.0, %v1881_v60  ;;  %vm1984_vm7 = vcmp.lt.f32.partialorder %v1983_v8, 0.0004427343 }
 0x2d2   : > { %5042 = vlog2.f32 %v1887_v30  ;;  %v1976_v30 = vsel %vm6745_vm6, %v1973_v10, %v1970_v46  ;;  %v1884_v56 = vand.u32 2147483647, %v6699_v29  ;;  %v6778_v49 = vadd.f32 %v1610_v38, %v6457_v25 }
 0x2d3   : > { %v1630_v32 = vpop.f32.mrf.mxu3  ;;  %5044 = vlog2.f32 %v1878_v44  ;;  %v1982_v33 = vmul.f32 %v5035_v12, %v1981_v58  ;;  %v1883_v10 = vmul.f32 %v6699_v29, %v1882_v50  ;;  %vm6785_vm10 = vcmp.lt.f32.partialorder %v1893_v17, 0.0004427343 }
 0x2d4   : > { %v6734_v36 = vadd.f32 %v1630_v32, %v6457_v25  ;;  %5046 = vpow2.f32 %v1708_v61  ;;  %vm6794_vm12 = vcmp.lt.f32.partialorder %v1884_v56, 0.0004427343  ;;  %v1712_v29 = vmul.f32 1.442695, %v6778_v49 }
 0x2d5   : > { %5048 = vpow2.f32 %v1706_v24  ;;  %v6760_v24 = vsel %vm1664_vm8, %v6628_v21, %v1976_v30  ;;  %v1892_v21 = vmul.f32 %v6692_v3, %v1891_v57  ;;  %vm1656_vm3 = vcmp.gt.f32.partialorder %v6711_v0, 20.0 }
 0x2d6   : > { %v6741_v22 = vpop.eup %5038  ;;  %v1728_v20 = vmul.f32 1.442695, %v6734_v36  ;;  %vm1667_vm1 = vcmp.gt.f32.partialorder %v6734_v36, 20.0  ;;  %vm1657_vm5 = vcmp.gt.f32.partialorder %v6704_v13, 20.0 }
 0x2d7   : > { %v5041_v1 = vpop.eup %5040  ;;  %v1986_v40 = vadd.f32 1.0, %v6741_v22 }
 0x2d8   : > { %5050 = vpow2.f32 %v1728_v20  ;;  %2178 = vmatmul.bf16.gmra.mxu3 %v2078_v9  ;;  %v1979_v37 = vmul.f32 0.6931472, %v5041_v1  ;;  %v5043_v44 = vpop.eup %5042  ;;  %v1989_v20 = vmul.f32 -0.5, %v6741_v22  ;;  %v6782_v9 = vpop.f32.mrf.mxu2 }
 0x2d9   : > { %v5045_v43 = vpop.eup %5044  ;;  %5052 = vlog2.f32 %v1986_v40  ;;  %v1889_v62 = vmul.f32 0.6931472, %v5043_v44 }
 0x2da   : > { %v1985_v61 = vsel %vm1984_vm7, %v1982_v33, %v1979_v37  ;;  %v6765_v32 = vpop.eup %5046  ;;  %v1880_v58 = vmul.f32 0.6931472, %v5045_v43  ;;  %v1990_v50 = vadd.f32 1.0, %v1989_v20 }
 0x2db   : > { %v1633_v16 = vpop.f32.mrf.mxu3  ;;  %v6763_v12 = vsel %vm1665_vm9, %v6666_v55, %v1985_v61  ;;  %v6772_v46 = vpop.eup %5048  ;;  %v1710_v55 = vmul.f32 1.442695, %v6754_v28  ;;  %v1905_v3 = vadd.f32 1.0, %v6765_v32  ;;  %v1895_v38 = vsel %vm6785_vm10, %v1892_v21, %v1889_v62 }
 0x2dc   : > { %v6768_v15 = vadd.f32 %v1633_v16, %v6457_v25  ;;  %v2084_v31 = vpack.c.bf16 %v6763_v12, %v6760_v24  ;;  %v1896_v40 = vadd.f32 1.0, %v6772_v46  ;;  %v1886_v44 = vsel %vm6794_vm12, %v1883_v10, %v1880_v58  ;;  %v4662_v58 = vld [vmem:[%s8162_s2 + $0x138] sm:$0xff] }
 0x2dd   : > { %v2039_v43 = vsel %vm1655_vm11, %v6637_v18, %v1895_v38  ;;  %v1992_v61 = vand.u32 2147483647, %v6741_v22  ;;  %v2038_v56 = vsel %vm1654_vm13, %v6647_v42, %v1886_v44  ;;  %v1899_v21 = vmul.f32 -0.5, %v6772_v46  ;;  %3374 = vmatpush.bf16.msrb.mxu1 %v4662_v58  ;;  %v4661_v42 = vld [vmem:[%s8162_s2 + $0x130] sm:$0xff] }
 0x2de   : > { %v5051_v60 = vpop.eup %5050  ;;  %v1730_v8 = vmul.f32 1.442695, %v6768_v15  ;;  %v2079_v10 = vpack.c.bf16 %v2039_v43, %v2038_v56  ;;  %v1991_v1 = vmul.f32 %v6741_v22, %v1990_v50  ;;  %v1911_v50 = vand.u32 2147483647, %v6765_v32  ;;  %v6832_v43 = vld [vmem:[%s8163_s3] sm:$0xff] }
 0x2df   : > { %v1995_v63 = vadd.f32 1.0, %v5051_v60  ;;  %v1998_v30 = vmul.f32 -0.5, %v5051_v60  ;;  %v5053_v37 = vpop.eup %5052  ;;  %v2001_v18 = vand.u32 2147483647, %v5051_v60  ;;  %vm6817_vm14 = vcmp.lt.f32.partialorder %v1992_v61, 0.0004427343 }
 0x2e0   : > { %5054 = vpow2.f32 %v1730_v8  ;;  %v1988_v17 = vmul.f32 0.6931472, %v5053_v37  ;;  %v1900_v22 = vadd.f32 1.0, %v1899_v21  ;;  %v6835_v61 = vperm.slane %v6832_v43, 3 }
 0x2e1   : > { %5056 = vlog2.f32 %v1995_v63  ;;  %v1999_v62 = vadd.f32 1.0, %v1998_v30  ;;  %vm2002_vm15 = vcmp.lt.f32.partialorder %v2001_v18, 0.0004427343  ;;  %vm6864_vm2 = vcmp.lt.f32.partialorder %v1911_v50, 0.0004427343  ;;  %3375 = vmatpush.bf16.msrb.mxu1 %v4661_v42 }
 0x2e2   : > { %5058 = vpow2.f32 %v1710_v55  ;;  %v1908_v55 = vmul.f32 -0.5, %v6765_v32  ;;  %vm1668_vm8 = vcmp.gt.f32.partialorder %v6768_v15, 20.0  ;;  %vm1659_vm12 = vcmp.gt.f32.partialorder %v6778_v49, 20.0 }
 0x2e3   : > { %v1635_v57 = vpop.f32.mrf.mxu3  ;;  %5060 = vlog2.f32 %v1905_v3  ;;  %v2000_v37 = vmul.f32 %v5051_v60, %v1999_v62  ;;  %vm1658_vm13 = vcmp.gt.f32.partialorder %v6754_v28, 20.0 }
 0x2e4   : > { %v6805_v16 = vadd.f32 %v1635_v57, %v6457_v25  ;;  %5062 = vlog2.f32 %v1896_v40  ;;  %v1994_v40 = vsel %vm6817_vm14, %v1991_v1, %v1988_v17  ;;  %v1909_v44 = vadd.f32 1.0, %v1908_v55 }
 0x2e5   : > { %5064 = vpow2.f32 %v1712_v29  ;;  %v1615_v29 = vpop.f32.mrf.mxu2  ;;  %v6839_v56 = vsel %vm1666_vm0, %v6695_v27, %v1994_v40  ;;  %v4647_v27 = vld [vmem:[%s8162_s2 + $0xc0] sm:$0xff] }
 0x2e6   : > { %v6813_v8 = vpop.eup %5054  ;;  %v1732_v20 = vmul.f32 1.442695, %v6805_v16  ;;  %v6847_v55 = vadd.f32 %v1615_v29, %v6457_v25  ;;  %v1910_v40 = vmul.f32 %v6765_v32, %v1909_v44  ;;  %2794 = vmatpush.bf16.msrb.mxu0 %v4647_v27  ;;  %vm1669_vm9 = vcmp.gt.f32.partialorder %v6805_v16, 20.0 }
 0x2e7   : > { %v5057_v3 = vpop.eup %5056  ;;  %v2004_v63 = vadd.f32 1.0, %v6813_v8 }
 0x2e8   : > { %v6822_v38 = vpop.eup %5058  ;;  %5066 = vpow2.f32 %v1732_v20  ;;  %2183 = vmatmul.bf16.gmra.mxu3 %v2079_v10  ;;  %v1997_v30 = vmul.f32 0.6931472, %v5057_v3  ;;  %v1902_v3 = vand.u32 2147483647, %v6772_v46 }
 0x2e9   : > { %v5061_v33 = vpop.eup %5060  ;;  %v1914_v62 = vadd.f32 1.0, %v6822_v38  ;;  %5068 = vlog2.f32 %v2004_v63 }
 0x2ea   : > { %v5063_v57 = vpop.eup %5062  ;;  %v2003_v60 = vsel %vm2002_vm15, %v2000_v37, %v1997_v30  ;;  %v1907_v20 = vmul.f32 0.6931472, %v5061_v33  ;;  %v2007_v37 = vmul.f32 -0.5, %v6813_v8  ;;  %v6871_v33 = vadd.f32 %v6782_v9, %v6457_v25 }
 0x2eb   : > { %v2144_v17 = vpop.f32.mrf.mxu3  ;;  %v6842_v58 = vsel %vm1667_vm1, %v6734_v36, %v2003_v60  ;;  %v6844_v21 = vpop.eup %5064  ;;  %v1898_v1 = vmul.f32 0.6931472, %v5063_v57  ;;  %v1901_v36 = vmul.f32 %v6772_v46, %v1900_v22  ;;  %5070 = vlog2.f32 %v1914_v62 }
 0x2ec   : > { %v2224_v18 = vadd.f32 %v2144_v17, %v5727_v45  ;;  %v2085_v10 = vpack.c.bf16 %v6842_v58, %v6839_v56  ;;  %v1923_v46 = vadd.f32 1.0, %v6844_v21  ;;  %v1716_v22 = vmul.f32 1.442695, %v6847_v55 }
 0x2ed   : > { %v1913_v44 = vsel %vm6864_vm2, %v1910_v40, %v1907_v20  ;;  %vm6879_vm4 = vcmp.lt.f32.partialorder %v1902_v3, 0.0004427343  ;;  %v2008_v60 = vadd.f32 1.0, %v2007_v37  ;;  %v1714_v17 = vmul.f32 1.442695, %v6871_v33 }
 0x2ee   : > { %v5067_v63 = vpop.eup %5066  ;;  %v6861_v45 = vadd.f32 %v6835_v61, %v2224_v18  ;;  %v1904_v9 = vsel %vm6879_vm4, %v1901_v36, %v1898_v1  ;;  %v2041_v18 = vsel %vm1657_vm5, %v6704_v13, %v1913_v44  ;;  %v2010_v20 = vand.u32 2147483647, %v6813_v8 }
 0x2ef   : > { %v2013_v29 = vadd.f32 1.0, %v5067_v63  ;;  %v2016_v50 = vmul.f32 -0.5, %v5067_v63  ;;  %v5069_v57 = vpop.eup %5068  ;;  %v2040_v30 = vsel %vm1656_vm3, %v6711_v0, %v1904_v9  ;;  %v1926_v1 = vmul.f32 -0.5, %v6844_v21 }
 0x2f0   : > { %v2321_v32 = vmul.f32 1.442695, %v6861_v45  ;;  %v2006_v3 = vmul.f32 0.6931472, %v5069_v57  ;;  %v2019_v36 = vand.u32 2147483647, %v5067_v63  ;;  %v2080_v13 = vpack.c.bf16 %v2041_v18, %v2040_v30 }
 0x2f1   : > { %5072 = vlog2.f32 %v2013_v29  ;;  %v2017_v42 = vadd.f32 1.0, %v2016_v50  ;;  %v5071_v40 = vpop.eup %5070  ;;  %vm6899_vm6 = vcmp.lt.f32.partialorder %v2010_v20, 0.0004427343  ;;  %v1927_v9 = vadd.f32 1.0, %v1926_v1 }
 0x2f2   : > { %5074 = vpow2.f32 %v2321_v32  ;;  %vm2020_vm7 = vcmp.lt.f32.partialorder %v2019_v36, 0.0004427343  ;;  %v1929_v20 = vand.u32 2147483647, %v6844_v21  ;;  %vm2289_vm0 = vcmp.gt.f32.partialorder %v6861_v45, 20.0 }
 0x2f3   : > { %v2146_v62 = vpop.f32.mrf.mxu3  ;;  %5076 = vlog2.f32 %v1923_v46  ;;  %v2009_v46 = vmul.f32 %v6813_v8, %v2008_v60  ;;  %v2018_v57 = vmul.f32 %v5067_v63, %v2017_v42  ;;  %v1920_v42 = vand.u32 2147483647, %v6822_v38 }
 0x2f4   : > { %5078 = vpow2.f32 %v1716_v22  ;;  %v2225_v27 = vadd.f32 %v2146_v62, %v5732_v48  ;;  %v1917_v48 = vmul.f32 -0.5, %v6822_v38  ;;  %vm6932_vm10 = vcmp.lt.f32.partialorder %v1929_v20, 0.0004427343 }
 0x2f5   : > { %5080 = vpow2.f32 %v1714_v17  ;;  %v2012_v44 = vsel %vm6899_vm6, %v2009_v46, %v2006_v3  ;;  %vm6938_vm11 = vcmp.lt.f32.partialorder %v1920_v42, 0.0004427343  ;;  %vm1661_vm4 = vcmp.gt.f32.partialorder %v6847_v55, 20.0 }
 0x2f6   : > { %v6895_v37 = vadd.f32 %v6835_v61, %v2225_v27  ;;  %v1918_v18 = vadd.f32 1.0, %v1917_v48  ;;  %v6915_v27 = vsel %vm1668_vm8, %v6768_v15, %v2012_v44  ;;  %vm1660_vm5 = vcmp.gt.f32.partialorder %v6871_v33, 20.0 }
 0x2f7   : > { %v5073_v29 = vpop.eup %5072 }
 0x2f8   : > { %v6903_v32 = vpop.eup %5074  ;;  %v2323_v0 = vmul.f32 1.442695, %v6895_v37  ;;  %2188 = vmatmul.bf16.gmra.mxu3 %v2080_v13  ;;  %v2015_v50 = vmul.f32 0.6931472, %v5073_v29  ;;  %v1916_v13 = vmul.f32 0.6931472, %v5071_v40  ;;  %v1919_v29 = vmul.f32 %v6822_v38, %v1918_v18 }
 0x2f9   : > { %v5077_v25 = vpop.eup %5076  ;;  %v2385_v8 = vadd.f32 1.0, %v6903_v32  ;;  %v2388_v22 = vmul.f32 -0.5, %v6903_v32  ;;  %vm2290_vm1 = vcmp.gt.f32.partialorder %v6895_v37, 20.0 }
 0x2fa   : > { %v6909_v60 = vpop.eup %5078  ;;  %5082 = vpow2.f32 %v2323_v0  ;;  %v2021_v17 = vsel %vm2020_vm7, %v2018_v57, %v2015_v50  ;;  %v1925_v30 = vmul.f32 0.6931472, %v5077_v25  ;;  %v1922_v38 = vsel %vm6938_vm11, %v1919_v29, %v1916_v13  ;;  %v4660_v25 = vld [vmem:[%s8162_s2 + $0x128] sm:$0xff] }
 0x2fb   : > { %v2149_v62 = vpop.f32.mrf.mxu3  ;;  %v6918_v63 = vsel %vm1669_vm9, %v6805_v16, %v2021_v17  ;;  %v6924_v36 = vpop.eup %5080  ;;  %5084 = vlog2.f32 %v2385_v8  ;;  %v1941_v46 = vadd.f32 1.0, %v6909_v60  ;;  %v1928_v16 = vmul.f32 %v6844_v21, %v1927_v9  ;;  %3376 = vmatpush.bf16.msrb.mxu1 %v4660_v25 }
 0x2fc   : > { %v2226_v3 = vadd.f32 %v2149_v62, %v5740_v59  ;;  %v2086_v1 = vpack.c.bf16 %v6918_v63, %v6915_v27  ;;  %v1932_v21 = vadd.f32 1.0, %v6924_v36  ;;  %v2389_v62 = vadd.f32 1.0, %v2388_v22 }
 0x2fd   : > { %v1931_v44 = vsel %vm6932_vm10, %v1928_v16, %v1925_v30  ;;  %5086 = vlog2.f32 %v1941_v46  ;;  %v2042_v20 = vsel %vm1658_vm13, %v6754_v28, %v1922_v38  ;;  %v1935_v42 = vmul.f32 -0.5, %v6924_v36 }
 0x2fe   : > { %v6928_v15 = vadd.f32 %v6835_v61, %v2226_v3  ;;  %v2043_v17 = vsel %vm1659_vm12, %v6778_v49, %v1931_v44  ;;  %v2391_v3 = vand.u32 2147483647, %v6903_v32  ;;  %v1944_v30 = vmul.f32 -0.5, %v6909_v60 }
 0x2ff   : > { %v2081_v29 = vpack.c.bf16 %v2043_v17, %v2042_v20  ;;  %v1936_v44 = vadd.f32 1.0, %v1935_v42  ;;  %v1947_v17 = vand.u32 2147483647, %v6909_v60 }
 0x300   : > { %v5083_v48 = vpop.eup %5082  ;;  %v2325_v0 = vmul.f32 1.442695, %v6928_v15  ;;  %vm6963_vm14 = vcmp.lt.f32.partialorder %v2391_v3, 0.0004427343  ;;  %vm2291_vm8 = vcmp.gt.f32.partialorder %v6928_v15, 20.0 }
 0x301   : > { %v2394_v50 = vadd.f32 1.0, %v5083_v48  ;;  %v2397_v57 = vmul.f32 -0.5, %v5083_v48  ;;  %v5085_v8 = vpop.eup %5084  ;;  %v2400_v59 = vand.u32 2147483647, %v5083_v48  ;;  %vm6980_vm2 = vcmp.lt.f32.partialorder %v1947_v17, 0.0004427343 }
 0x302   : > { %5088 = vpow2.f32 %v2325_v0  ;;  %v2387_v13 = vmul.f32 0.6931472, %v5085_v8 }
 0x303   : > { %5090 = vlog2.f32 %v2394_v50  ;;  %v2151_v9 = vpop.f32.mrf.mxu3  ;;  %v2398_v46 = vadd.f32 1.0, %v2397_v57  ;;  %v5087_v49 = vpop.eup %5086  ;;  %v1945_v50 = vadd.f32 1.0, %v1944_v30  ;;  %vm2401_vm15 = vcmp.lt.f32.partialorder %v2400_v59, 0.0004427343 }
 0x304   : > { %v2227_v18 = vadd.f32 %v2151_v9, %v5749_v4  ;;  %5092 = vlog2.f32 %v1932_v21  ;;  %v2390_v4 = vmul.f32 %v6903_v32, %v2389_v62  ;;  %v1943_v9 = vmul.f32 0.6931472, %v5087_v49 }
 0x305   : > { %v2399_v25 = vmul.f32 %v5083_v48, %v2398_v46  ;;  %v1938_v48 = vand.u32 2147483647, %v6924_v36  ;;  %v1946_v46 = vmul.f32 %v6909_v60, %v1945_v50 }
 0x306   : > { %v6959_v16 = vadd.f32 %v6835_v61, %v2227_v18  ;;  %v2393_v21 = vsel %vm6963_vm14, %v2390_v4, %v2387_v13 }
 0x307   : > { %v2673_v20 = vsel %vm2289_vm0, %v6861_v45, %v2393_v21  ;;  %v1937_v45 = vmul.f32 %v6924_v36, %v1936_v44  ;;  %vm1939_vm3 = vcmp.lt.f32.partialorder %v1938_v48, 0.0004427343  ;;  %v4659_v48 = vld [vmem:[%s8162_s2 + $0x120] sm:$0xff] }
 0x308   : > { %v5089_v22 = vpop.eup %5088  ;;  %v2327_v28 = vmul.f32 1.442695, %v6959_v16  ;;  %2193 = vmatmul.bf16.gmra.mxu3 %v2081_v29  ;;  %vm2292_vm9 = vcmp.gt.f32.partialorder %v6959_v16, 20.0  ;;  %3377 = vmatpush.bf16.msrb.mxu1 %v4659_v48 }
 0x309   : > { %v5091_v0 = vpop.eup %5090  ;;  %v2403_v38 = vadd.f32 1.0, %v5089_v22  ;;  %v2406_v59 = vmul.f32 -0.5, %v5089_v22  ;;  %v2409_v21 = vand.u32 2147483647, %v5089_v22 }
 0x30a   : > { %v2396_v57 = vmul.f32 0.6931472, %v5091_v0  ;;  %5094 = vpow2.f32 %v2327_v28  ;;  %v5093_v8 = vpop.eup %5092 }
 0x30b   : > { %v2154_v32 = vpop.f32.mrf.mxu3  ;;  %5096 = vlog2.f32 %v2403_v38  ;;  %v1934_v13 = vmul.f32 0.6931472, %v5093_v8  ;;  %v2407_v44 = vadd.f32 1.0, %v2406_v59  ;;  %vm2410_vm6 = vcmp.lt.f32.partialorder %v2409_v21, 0.0004427343 }
 0x30c   : > { %v2402_v62 = vsel %vm2401_vm15, %v2399_v25, %v2396_v57  ;;  %v2228_v18 = vadd.f32 %v2154_v32, %v5766_v26 }
 0x30d   : > { %v2674_v3 = vsel %vm2290_vm1, %v6895_v37, %v2402_v62  ;;  %v1949_v37 = vsel %vm6980_vm2, %v1946_v46, %v1943_v9  ;;  %v1940_v60 = vsel %vm1939_vm3, %v1937_v45, %v1934_v13 }
 0x30e   : > { %v6977_v42 = vadd.f32 %v6835_v61, %v2228_v18  ;;  %v2722_v30 = vpack.c.bf16 %v2674_v3, %v2673_v20  ;;  %v2045_v50 = vsel %vm1661_vm4, %v6847_v55, %v1949_v37  ;;  %v2044_v38 = vsel %vm1660_vm5, %v6871_v33, %v1940_v60 }
 0x30f   : > { %v2082_v25 = vpack.c.bf16 %v2045_v50, %v2044_v38  ;;  %v2408_v55 = vmul.f32 %v5089_v22, %v2407_v44 }
 0x310   : > { %v5095_v49 = vpop.eup %5094  ;;  %v2329_v26 = vmul.f32 1.442695, %v6977_v42  ;;  %2795 = vmatmul.bf16.vlgmr.msrb.gmra.mxu0 %v2722_v30  ;;  %vm2293_vm12 = vcmp.gt.f32.partialorder %v6977_v42, 20.0 }
 0x311   : > { %v2412_v4 = vadd.f32 1.0, %v5095_v49  ;;  %v2415_v28 = vmul.f32 -0.5, %v5095_v49  ;;  %v5097_v0 = vpop.eup %5096  ;;  %v2418_v9 = vand.u32 2147483647, %v5095_v49 }
 0x312   : > { %5098 = vpow2.f32 %v2329_v26  ;;  %v2405_v8 = vmul.f32 0.6931472, %v5097_v0 }
 0x313   : > { %v2156_v40 = vpop.f32.mrf.mxu3  ;;  %5100 = vlog2.f32 %v2412_v4  ;;  %v2416_v32 = vadd.f32 1.0, %v2415_v28  ;;  %vm2419_vm7 = vcmp.lt.f32.partialorder %v2418_v9, 0.0004427343 }
 0x314   : > { %v2229_v36 = vadd.f32 %v2156_v40, %v5775_v39  ;;  %v2411_v39 = vsel %vm2410_vm6, %v2408_v55, %v2405_v8 }
 0x315   : > { %v2417_v33 = vmul.f32 %v5095_v49, %v2416_v32  ;;  %v2675_v46 = vsel %vm2291_vm8, %v6928_v15, %v2411_v39 }
 0x316   : > { %v6994_v57 = vadd.f32 %v6835_v61, %v2229_v36 }
 0x318   : > { %v5099_v17 = vpop.eup %5098  ;;  %v2331_v62 = vmul.f32 1.442695, %v6994_v57  ;;  %2198 = vmatmul.bf16.gmra.mxu3 %v2082_v25  ;;  %vm2294_vm13 = vcmp.gt.f32.partialorder %v6994_v57, 20.0 }
 0x319   : > { %v5101_v18 = vpop.eup %5100  ;;  %v2421_v20 = vadd.f32 1.0, %v5099_v17  ;;  %v2424_v59 = vmul.f32 -0.5, %v5099_v17 }
 0x31a   : > { %5102 = vpow2.f32 %v2331_v62  ;;  %v2414_v3 = vmul.f32 0.6931472, %v5101_v18 }
 0x31b   : > { %v2159_v30 = vpop.f32.mrf.mxu3  ;;  %5104 = vlog2.f32 %v2421_v20  ;;  %v2425_v0 = vadd.f32 1.0, %v2424_v59 }
 0x31c   : > { %v2230_v13 = vadd.f32 %v2159_v30, %v5794_v2  ;;  %v2420_v22 = vsel %vm2419_vm7, %v2417_v33, %v2414_v3  ;;  %v4658_v30 = vld [vmem:[%s8162_s2 + $0x118] sm:$0xff] }
 0x31d   : > { %v2676_v29 = vsel %vm2292_vm9, %v6959_v16, %v2420_v22  ;;  %v2427_v16 = vand.u32 2147483647, %v5099_v17  ;;  %v2426_v25 = vmul.f32 %v5099_v17, %v2425_v0  ;;  %3378 = vmatpush.bf16.msrb.mxu1 %v4658_v30 }
 0x31e   : > { %v7006_v49 = vadd.f32 %v6835_v61, %v2230_v13  ;;  %v2723_v26 = vpack.c.bf16 %v2676_v29, %v2675_v46 }
 0x31f   : > { %vm2428_vm10 = vcmp.lt.f32.partialorder %v2427_v16, 0.0004427343 }
 0x320   : > { %v5103_v45 = vpop.eup %5102  ;;  %v2333_v37 = vmul.f32 1.442695, %v7006_v49  ;;  %2800 = vmatmul.bf16.gmra.mxu0 %v2723_v26  ;;  %vm2295_vm0 = vcmp.gt.f32.partialorder %v7006_v49, 20.0 }
 0x321   : > { %v2430_v4 = vadd.f32 1.0, %v5103_v45  ;;  %v2433_v2 = vmul.f32 -0.5, %v5103_v45  ;;  %v5105_v60 = vpop.eup %5104  ;;  %v2436_v44 = vand.u32 2147483647, %v5103_v45 }
 0x322   : > { %5106 = vpow2.f32 %v2333_v37  ;;  %v2423_v50 = vmul.f32 0.6931472, %v5105_v60 }
 0x323   : > { %v2161_v28 = vpop.f32.mrf.mxu3  ;;  %5108 = vlog2.f32 %v2430_v4  ;;  %v2434_v36 = vadd.f32 1.0, %v2433_v2  ;;  %vm2437_vm11 = vcmp.lt.f32.partialorder %v2436_v44, 0.0004427343 }
 0x324   : > { %v2231_v15 = vadd.f32 %v2161_v28, %v5805_v14  ;;  %v2429_v14 = vsel %vm2428_vm10, %v2426_v25, %v2423_v50 }
 0x325   : > { %v2435_v62 = vmul.f32 %v5103_v45, %v2434_v36  ;;  %v2677_v6 = vsel %vm2293_vm12, %v6977_v42, %v2429_v14 }
 0x326   : > { %v7011_v40 = vadd.f32 %v6835_v61, %v2231_v15 }
 0x328   : > { %v5107_v38 = vpop.eup %5106  ;;  %v2335_v21 = vmul.f32 1.442695, %v7011_v40  ;;  %2203 = vmatmul.bf16.gmra.mxu3 %v2083_v51  ;;  %vm2296_vm1 = vcmp.gt.f32.partialorder %v7011_v40, 20.0 }
 0x329   : > { %v5109_v8 = vpop.eup %5108  ;;  %v2439_v32 = vadd.f32 1.0, %v5107_v38  ;;  %v2442_v33 = vmul.f32 -0.5, %v5107_v38  ;;  %v2445_v46 = vand.u32 2147483647, %v5107_v38 }
 0x32a   : > { %5110 = vpow2.f32 %v2335_v21  ;;  %v2432_v9 = vmul.f32 0.6931472, %v5109_v8 }
 0x32b   : > { %v2164_v55 = vpop.f32.mrf.mxu3  ;;  %5112 = vlog2.f32 %v2439_v32  ;;  %v2443_v22 = vadd.f32 1.0, %v2442_v33  ;;  %vm2446_vm14 = vcmp.lt.f32.partialorder %v2445_v46, 0.0004427343 }
 0x32c   : > { %v2232_v18 = vadd.f32 %v2164_v55, %v5813_v34  ;;  %v2438_v20 = vsel %vm2437_vm11, %v2435_v62, %v2432_v9 }
 0x32d   : > { %v2678_v52 = vsel %vm2294_vm13, %v6994_v57, %v2438_v20  ;;  %v2444_v2 = vmul.f32 %v5107_v38, %v2443_v22 }
 0x32e   : > { %v7023_v51 = vadd.f32 %v6835_v61, %v2232_v18  ;;  %v2724_v17 = vpack.c.bf16 %v2678_v52, %v2677_v6 }
 0x330   : > { %v5111_v39 = vpop.eup %5110  ;;  %v2337_v3 = vmul.f32 1.442695, %v7023_v51  ;;  %2805 = vmatmul.bf16.gmra.mxu0 %v2724_v17  ;;  %vm2297_vm4 = vcmp.gt.f32.partialorder %v7023_v51, 20.0 }
 0x331   : > { %v2448_v48 = vadd.f32 1.0, %v5111_v39  ;;  %v2451_v34 = vmul.f32 -0.5, %v5111_v39  ;;  %v5113_v42 = vpop.eup %5112  ;;  %v2454_v37 = vand.u32 2147483647, %v5111_v39 }
 0x332   : > { %5114 = vpow2.f32 %v2337_v3  ;;  %v2441_v26 = vmul.f32 0.6931472, %v5113_v42 }
 0x333   : > { %v2166_v13 = vpop.f32.mrf.mxu3  ;;  %5116 = vlog2.f32 %v2448_v48  ;;  %v2452_v45 = vadd.f32 1.0, %v2451_v34  ;;  %vm2455_vm15 = vcmp.lt.f32.partialorder %v2454_v37, 0.0004427343  ;;  %v4657_v34 = vld [vmem:[%s8162_s2 + $0x110] sm:$0xff] }
 0x334   : > { %v2233_v57 = vadd.f32 %v2166_v13, %v5823_v41  ;;  %v2447_v28 = vsel %vm2446_vm14, %v2444_v2, %v2441_v26  ;;  %3379 = vmatpush.bf16.msrb.mxu1 %v4657_v34 }
 0x335   : > { %v2453_v0 = vmul.f32 %v5111_v39, %v2452_v45  ;;  %v2679_v24 = vsel %vm2295_vm0, %v7006_v49, %v2447_v28 }
 0x336   : > { %v7031_v29 = vadd.f32 %v6835_v61, %v2233_v57 }
 0x338   : > { %v5115_v59 = vpop.eup %5114  ;;  %v2339_v4 = vmul.f32 1.442695, %v7031_v29  ;;  %2208 = vmatmul.bf16.gmra.mxu3 %v2084_v31  ;;  %vm2298_vm5 = vcmp.gt.f32.partialorder %v7031_v29, 20.0 }
 0x339   : > { %v5117_v60 = vpop.eup %5116  ;;  %v2457_v41 = vadd.f32 1.0, %v5115_v59  ;;  %v2460_v25 = vmul.f32 -0.5, %v5115_v59 }
 0x33a   : > { %5118 = vpow2.f32 %v2339_v4  ;;  %v2450_v15 = vmul.f32 0.6931472, %v5117_v60 }
 0x33b   : > { %v2169_v16 = vpop.f32.mrf.mxu3  ;;  %5120 = vlog2.f32 %v2457_v41  ;;  %v2461_v9 = vadd.f32 1.0, %v2460_v25 }
 0x33c   : > { %v2234_v50 = vadd.f32 %v2169_v16, %v5828_v5  ;;  %v2456_v36 = vsel %vm2455_vm15, %v2453_v0, %v2450_v15 }
 0x33d   : > { %v2680_v12 = vsel %vm2296_vm1, %v7011_v40, %v2456_v36  ;;  %v2463_v40 = vand.u32 2147483647, %v5115_v59  ;;  %v2462_v17 = vmul.f32 %v5115_v59, %v2461_v9 }
 0x33e   : > { %v7043_v31 = vadd.f32 %v6835_v61, %v2234_v50  ;;  %v2725_v44 = vpack.c.bf16 %v2680_v12, %v2679_v24 }
 0x33f   : > { %vm2464_vm2 = vcmp.lt.f32.partialorder %v2463_v40, 0.0004427343 }
 0x340   : > { %v5119_v38 = vpop.eup %5118  ;;  %v2341_v21 = vmul.f32 1.442695, %v7043_v31  ;;  %2810 = vmatmul.bf16.gmra.mxu0 %v2725_v44  ;;  %vm2299_vm8 = vcmp.gt.f32.partialorder %v7043_v31, 20.0 }
 0x341   : > { %v2466_v8 = vadd.f32 1.0, %v5119_v38  ;;  %v2469_v5 = vmul.f32 -0.5, %v5119_v38  ;;  %v5121_v32 = vpop.eup %5120  ;;  %v2472_v20 = vand.u32 2147483647, %v5119_v38 }
 0x342   : > { %5122 = vpow2.f32 %v2341_v21  ;;  %v2459_v55 = vmul.f32 0.6931472, %v5121_v32 }
 0x343   : > { %v2171_v14 = vpop.f32.mrf.mxu3  ;;  %5124 = vlog2.f32 %v2466_v8  ;;  %v2470_v18 = vadd.f32 1.0, %v2469_v5  ;;  %vm2473_vm3 = vcmp.lt.f32.partialorder %v2472_v20, 0.0004427343 }
 0x344   : > { %v2235_v49 = vadd.f32 %v2171_v14, %v5836_v19  ;;  %v2465_v19 = vsel %vm2464_vm2, %v2462_v17, %v2459_v55 }
 0x345   : > { %v2471_v48 = vmul.f32 %v5119_v38, %v2470_v18 }
 0x346   : > { %v7048_v62 = vadd.f32 %v6835_v61, %v2235_v49 }
 0x348   : > { %v5123_v6 = vpop.eup %5122  ;;  %v2343_v52 = vmul.f32 1.442695, %v7048_v62  ;;  %2213 = vmatmul.bf16.gmra.mxu3 %v2085_v10  ;;  %v2681_v10 = vsel %vm2297_vm4, %v7023_v51, %v2465_v19  ;;  %vm2300_vm9 = vcmp.gt.f32.partialorder %v7048_v62, 20.0 }
 0x349   : > { %v5125_v39 = vpop.eup %5124  ;;  %v2475_v3 = vadd.f32 1.0, %v5123_v6  ;;  %v2478_v26 = vmul.f32 -0.5, %v5123_v6 }
 0x34a   : > { %5126 = vpow2.f32 %v2343_v52  ;;  %v2468_v33 = vmul.f32 0.6931472, %v5125_v39 }
 0x34b   : > { %v2174_v30 = vpop.f32.mrf.mxu3  ;;  %5128 = vlog2.f32 %v2475_v3  ;;  %v2479_v4 = vadd.f32 1.0, %v2478_v26 }
 0x34c   : > { %v2236_v56 = vadd.f32 %v2174_v30, %v5841_v35  ;;  %v2474_v58 = vsel %vm2473_vm3, %v2471_v48, %v2468_v33 }
 0x34d   : > { %v2682_v42 = vsel %vm2298_vm5, %v7031_v29, %v2474_v58  ;;  %v2481_v29 = vand.u32 2147483647, %v5123_v6  ;;  %v2480_v16 = vmul.f32 %v5123_v6, %v2479_v4 }
 0x34e   : > { %v7063_v13 = vadd.f32 %v6835_v61, %v2236_v56  ;;  %v2726_v57 = vpack.c.bf16 %v2682_v42, %v2681_v10 }
 0x34f   : > { %vm2482_vm6 = vcmp.lt.f32.partialorder %v2481_v29, 0.0004427343 }
 0x350   : > { %v5127_v22 = vpop.eup %5126  ;;  %v2345_v46 = vmul.f32 1.442695, %v7063_v13  ;;  %2815 = vmatmul.bf16.gmra.mxu0 %v2726_v57  ;;  %vm2301_vm12 = vcmp.gt.f32.partialorder %v7063_v13, 20.0 }
 0x351   : > { %v2484_v45 = vadd.f32 1.0, %v5127_v22  ;;  %v2487_v37 = vmul.f32 -0.5, %v5127_v22  ;;  %v5129_v35 = vpop.eup %5128  ;;  %v2490_v28 = vand.u32 2147483647, %v5127_v22 }
 0x352   : > { %5130 = vpow2.f32 %v2345_v46  ;;  %v2477_v60 = vmul.f32 0.6931472, %v5129_v35 }
 0x353   : > { %v2176_v59 = vpop.f32.mrf.mxu3  ;;  %5132 = vlog2.f32 %v2484_v45  ;;  %v2488_v41 = vadd.f32 1.0, %v2487_v37  ;;  %vm2491_vm7 = vcmp.lt.f32.partialorder %v2490_v28, 0.0004427343 }
 0x354   : > { %v2237_v51 = vadd.f32 %v2176_v59, %v5849_v54  ;;  %v2483_v54 = vsel %vm2482_vm6, %v2480_v16, %v2477_v60 }
 0x355   : > { %v2489_v12 = vmul.f32 %v5127_v22, %v2488_v41  ;;  %v2683_v27 = vsel %vm2299_vm8, %v7043_v31, %v2483_v54 }
 0x356   : > { %v7068_v2 = vadd.f32 %v6835_v61, %v2237_v51  ;;  %v8259_v51 = vld [vmem:[#allocation2_spill] sm:$0xff] }
 0x358   : > { %v5131_v15 = vpop.eup %5130  ;;  %v2347_v0 = vmul.f32 1.442695, %v7068_v2  ;;  %2218 = vmatmul.bf16.gmra.mxu3 %v2086_v1  ;;  %vm2302_vm13 = vcmp.gt.f32.partialorder %v7068_v2, 20.0 }
 0x359   : > { %v5133_v50 = vpop.eup %5132  ;;  %v2493_v36 = vadd.f32 1.0, %v5131_v15  ;;  %v2496_v32 = vmul.f32 -0.5, %v5131_v15  ;;  %v2499_v55 = vand.u32 2147483647, %v5131_v15 }
 0x35a   : > { %5134 = vpow2.f32 %v2347_v0  ;;  %v2486_v24 = vmul.f32 0.6931472, %v5133_v50 }
 0x35b   : > { %v2179_v44 = vpop.f32.mrf.mxu3  ;;  %5136 = vlog2.f32 %v2493_v36  ;;  %vm2500_vm10 = vcmp.lt.f32.partialorder %v2499_v55, 0.0004427343 }
 0x35c   : > { %v2238_v38 = vadd.f32 %v2179_v44, %v5854_v11  ;;  %v2492_v21 = vsel %vm2491_vm7, %v2489_v12, %v2486_v24  ;;  %v4656_v11 = vld [vmem:[%s8162_s2 + $0x108] sm:$0xff] }
 0x35d   : > { %v2684_v63 = vsel %vm2300_vm9, %v7048_v62, %v2492_v21  ;;  %v2497_v62 = vadd.f32 1.0, %v2496_v32  ;;  %3380 = vmatpush.bf16.msrb.mxu1 %v4656_v11 }
 0x35e   : > { %v7080_v1 = vadd.f32 %v6835_v61, %v2238_v38  ;;  %v2727_v25 = vpack.c.bf16 %v2684_v63, %v2683_v27  ;;  %v8260_v38 = vld [vmem:[#allocation3_spill] sm:$0xff] }
 0x35f   : > { %v2498_v3 = vmul.f32 %v5131_v15, %v2497_v62  ;;  %v8261_v62 = vld [vmem:[#allocation4_spill] sm:$0xff] }
 0x360   : > { %v5135_v8 = vpop.eup %5134  ;;  %v2349_v5 = vmul.f32 1.442695, %v7080_v1  ;;  %2820 = vmatmul.bf16.gmra.mxu0 %v2727_v25  ;;  %vm2303_vm0 = vcmp.gt.f32.partialorder %v7080_v1, 20.0 }
 0x361   : > { %v2502_v14 = vadd.f32 1.0, %v5135_v8  ;;  %v2505_v49 = vmul.f32 -0.5, %v5135_v8  ;;  %v5137_v31 = vpop.eup %5136  ;;  %v2508_v52 = vand.u32 2147483647, %v5135_v8 }
 0x362   : > { %5138 = vpow2.f32 %v2349_v5  ;;  %v2495_v20 = vmul.f32 0.6931472, %v5137_v31 }
 0x363   : > { %v2181_v9 = vpop.f32.mrf.mxu3  ;;  %5140 = vlog2.f32 %v2502_v14  ;;  %v2506_v6 = vadd.f32 1.0, %v2505_v49  ;;  %vm2509_vm11 = vcmp.lt.f32.partialorder %v2508_v52, 0.0004427343 }
 0x364   : > { %v2239_v40 = vadd.f32 %v2181_v9, %v5862_v23  ;;  %v2501_v48 = vsel %vm2500_vm10, %v2498_v3, %v2495_v20 }
 0x365   : > { %v2507_v30 = vmul.f32 %v5135_v8, %v2506_v6  ;;  %v2685_v10 = vsel %vm2301_vm12, %v7063_v13, %v2501_v48 }
 0x366   : > { %v2272_v18 = vadd.f32 %v6835_v61, %v2239_v40 }
 0x368   : > { %v5139_v17 = vpop.eup %5138  ;;  %v2351_v39 = vmul.f32 1.442695, %v2272_v18  ;;  %vm2304_vm1 = vcmp.gt.f32.partialorder %v2272_v18, 20.0 }
 0x369   : > { %v5141_v19 = vpop.eup %5140  ;;  %v2511_v33 = vadd.f32 1.0, %v5139_v17  ;;  %v2514_v45 = vmul.f32 -0.5, %v5139_v17  ;;  %v2517_v29 = vand.u32 2147483647, %v5139_v17 }
 0x36a   : > { %5142 = vpow2.f32 %v2351_v39  ;;  %v2504_v34 = vmul.f32 0.6931472, %v5141_v19 }
 0x36b   : > { %v2184_v56 = vpop.f32.mrf.mxu3  ;;  %5144 = vlog2.f32 %v2511_v33  ;;  %v2515_v4 = vadd.f32 1.0, %v2514_v45  ;;  %vm2518_vm14 = vcmp.lt.f32.partialorder %v2517_v29, 0.0004427343 }
 0x36c   : > { %v2240_v23 = vadd.f32 %v2184_v56, %v5870_v47  ;;  %v2510_v58 = vsel %vm2509_vm11, %v2507_v30, %v2504_v34  ;;  %v7118_v34 = vperm.slane %v6832_v43, 4 }
 0x36d   : > { %v2686_v42 = vsel %vm2302_vm13, %v7068_v2, %v2510_v58  ;;  %v2516_v16 = vmul.f32 %v5139_v17, %v2515_v4  ;;  %v4670_v17 = vld [vmem:[%s8162_s2 + $0x178] sm:$0xff] }
 0x36e   : > { %v7094_v57 = vadd.f32 %v6835_v61, %v2240_v23  ;;  %v2728_v22 = vpack.c.bf16 %v2686_v42, %v2685_v10  ;;  %3961 = vmatpush.bf16.msrb.mxu2 %v4670_v17  ;;  %v8262_v42 = vld [vmem:[#allocation5_spill] sm:$0xff] }
 0x370   : > { %v5143_v46 = vpop.eup %5142  ;;  %v2353_v26 = vmul.f32 1.442695, %v7094_v57  ;;  %2825 = vmatmul.bf16.gmra.mxu0 %v2728_v22  ;;  %vm2305_vm4 = vcmp.gt.f32.partialorder %v7094_v57, 20.0 }
 0x371   : > { %v2520_v37 = vadd.f32 1.0, %v5143_v46  ;;  %v2523_v35 = vmul.f32 -0.5, %v5143_v46  ;;  %v5145_v59 = vpop.eup %5144  ;;  %v2526_v28 = vand.u32 2147483647, %v5143_v46 }
 0x372   : > { %5146 = vpow2.f32 %v2353_v26  ;;  %v2513_v60 = vmul.f32 0.6931472, %v5145_v59 }
 0x373   : > { %v2186_v47 = vpop.f32.mrf.mxu3  ;;  %5148 = vlog2.f32 %v2520_v37  ;;  %v2524_v41 = vadd.f32 1.0, %v2523_v35  ;;  %vm2527_vm15 = vcmp.lt.f32.partialorder %v2526_v28, 0.0004427343 }
 0x374   : > { %v2241_v13 = vadd.f32 %v2186_v47, %v8259_v51  ;;  %v2519_v54 = vsel %vm2518_vm14, %v2516_v16, %v2513_v60  ;;  %v4655_v47 = vld [vmem:[%s8162_s2 + $0x100] sm:$0xff]  ;;  %v4669_v51 = vld [vmem:[%s8162_s2 + $0x170] sm:$0xff] }
 0x375   : > { %v2525_v12 = vmul.f32 %v5143_v46, %v2524_v41  ;;  %v2687_v63 = vsel %vm2303_vm0, %v7080_v1, %v2519_v54  ;;  %3381 = vmatpush.bf16.msrb.mxu1 %v4655_v47  ;;  %3962 = vmatpush.bf16.msrb.mxu2 %v4669_v51 }
 0x376   : > { %v7099_v2 = vadd.f32 %v6835_v61, %v2241_v13 }
 0x378   : > { %v5147_v15 = vpop.eup %5146  ;;  %v2355_v0 = vmul.f32 1.442695, %v7099_v2  ;;  %vm2306_vm5 = vcmp.gt.f32.partialorder %v7099_v2, 20.0 }
 0x379   : > { %v5149_v50 = vpop.eup %5148  ;;  %v2529_v36 = vadd.f32 1.0, %v5147_v15  ;;  %v2532_v49 = vmul.f32 -0.5, %v5147_v15 }
 0x37a   : > { %5150 = vpow2.f32 %v2355_v0  ;;  %v2522_v24 = vmul.f32 0.6931472, %v5149_v50 }
 0x37b   : > { %v2189_v44 = vpop.f32.mrf.mxu3  ;;  %5152 = vlog2.f32 %v2529_v36  ;;  %v2533_v1 = vadd.f32 1.0, %v2532_v49 }
 0x37c   : > { %v2242_v21 = vadd.f32 %v2189_v44, %v8260_v38  ;;  %v2528_v27 = vsel %vm2527_vm15, %v2525_v12, %v2522_v24 }
 0x37d   : > { %v2688_v25 = vsel %vm2304_vm1, %v2272_v18, %v2528_v27  ;;  %v2535_v18 = vand.u32 2147483647, %v5147_v15  ;;  %v2534_v33 = vmul.f32 %v5147_v15, %v2533_v1  ;;  %v8263_v15 = vld [vmem:[#allocation7_spill] sm:$0xff] }
 0x37e   : > { %v7106_v8 = vadd.f32 %v6835_v61, %v2242_v21  ;;  %v2729_v5 = vpack.c.bf16 %v2688_v25, %v2687_v63 }
 0x37f   : > { %vm2536_vm2 = vcmp.lt.f32.partialorder %v2535_v18, 0.0004427343 }
 0x380   : > { %v5151_v32 = vpop.eup %5150  ;;  %v2357_v14 = vmul.f32 1.442695, %v7106_v8  ;;  %2830 = vmatmul.bf16.gmra.mxu0 %v2729_v5  ;;  %vm2307_vm8 = vcmp.gt.f32.partialorder %v7106_v8, 20.0 }
 0x381   : > { %v2538_v11 = vadd.f32 1.0, %v5151_v32  ;;  %v2541_v31 = vmul.f32 -0.5, %v5151_v32  ;;  %v5153_v9 = vpop.eup %5152  ;;  %v2544_v39 = vand.u32 2147483647, %v5151_v32 }
 0x382   : > { %5154 = vpow2.f32 %v2357_v14  ;;  %v2531_v6 = vmul.f32 0.6931472, %v5153_v9 }
 0x383   : > { %v2191_v40 = vpop.f32.mrf.mxu3  ;;  %5156 = vlog2.f32 %v2538_v11  ;;  %v2542_v52 = vadd.f32 1.0, %v2541_v31  ;;  %vm2545_vm3 = vcmp.lt.f32.partialorder %v2544_v39, 0.0004427343 }
 0x384   : > { %v2243_v55 = vadd.f32 %v2191_v40, %v8261_v62  ;;  %v2537_v56 = vsel %vm2536_vm2, %v2534_v33, %v2531_v6 }
 0x385   : > { %v2543_v58 = vmul.f32 %v5151_v32, %v2542_v52  ;;  %v2689_v45 = vsel %vm2305_vm4, %v7094_v57, %v2537_v56 }
 0x386   : > { %v7111_v20 = vadd.f32 %v6835_v61, %v2243_v55  ;;  %v8266_v55 = vld [vmem:[#allocation9_spill] sm:$0xff] }
 0x388   : > { %v5155_v3 = vpop.eup %5154  ;;  %v2359_v19 = vmul.f32 1.442695, %v7111_v20  ;;  %vm2308_vm9 = vcmp.gt.f32.partialorder %v7111_v20, 20.0 }
 0x389   : > { %v5157_v48 = vpop.eup %5156  ;;  %v2547_v30 = vadd.f32 1.0, %v5155_v3  ;;  %v2550_v29 = vmul.f32 -0.5, %v5155_v3  ;;  %v2553_v36 = vand.u32 2147483647, %v5155_v3 }
 0x38a   : > { %5158 = vpow2.f32 %v2359_v19  ;;  %v2540_v23 = vmul.f32 0.6931472, %v5157_v48 }
 0x38b   : > { %v2194_v10 = vpop.f32.mrf.mxu3  ;;  %5160 = vlog2.f32 %v2547_v30  ;;  %v2551_v16 = vadd.f32 1.0, %v2550_v29  ;;  %vm7152_vm6 = vcmp.lt.f32.partialorder %v2553_v36, 0.0004427343 }
 0x38c   : > { %v2244_v22 = vadd.f32 %v2194_v10, %v8262_v42  ;;  %v2546_v46 = vsel %vm2545_vm3, %v2543_v58, %v2540_v23 }
 0x38d   : > { %v2796_v26 = vpop.f32.mrf.mxu0  ;;  %v2690_v43 = vsel %vm2306_vm5, %v7099_v2, %v2546_v46  ;;  %v2552_v63 = vmul.f32 %v5155_v3, %v2551_v16 }
 0x38e   : > { %v7126_v37 = vadd.f32 %v6835_v61, %v2244_v22  ;;  %v7129_v35 = vadd.f32 %v2796_v26, %v7118_v34  ;;  %v2730_v59 = vpack.c.bf16 %v2690_v43, %v2689_v45  ;;  %v4668_v45 = vld [vmem:[%s8162_s2 + $0x168] sm:$0xff] }
 0x38f   : > { %3963 = vmatpush.bf16.msrb.mxu2 %v4668_v45 }
 0x390   : > { %v5159_v13 = vpop.eup %5158  ;;  %v2361_v57 = vmul.f32 1.442695, %v7126_v37  ;;  %v2908_v4 = vmul.f32 1.442695, %v7129_v35  ;;  %2835 = vmatmul.bf16.gmra.mxu0 %v2730_v59  ;;  %v8267_v59 = vld [vmem:[#allocation11_spill] sm:$0xff]  ;;  %vm2876_vm10 = vcmp.gt.f32.partialorder %v7129_v35, 20.0 }
 0x391   : > { %v2556_v2 = vadd.f32 1.0, %v5159_v13  ;;  %v5161_v60 = vpop.eup %5160  ;;  %v2559_v28 = vmul.f32 -0.5, %v5159_v13  ;;  %v2562_v25 = vand.u32 2147483647, %v5159_v13  ;;  %vm2309_vm11 = vcmp.gt.f32.partialorder %v7126_v37, 20.0 }
 0x392   : > { %5162 = vpow2.f32 %v2361_v57  ;;  %v2549_v12 = vmul.f32 0.6931472, %v5161_v60 }
 0x393   : > { %5164 = vpow2.f32 %v2908_v4  ;;  %v2196_v41 = vpop.f32.mrf.mxu3  ;;  %v2560_v44 = vadd.f32 1.0, %v2559_v28  ;;  %vm2563_vm7 = vcmp.lt.f32.partialorder %v2562_v25, 0.0004427343 }
 0x394   : > { %v2245_v0 = vadd.f32 %v2196_v41, %v8263_v15  ;;  %5166 = vlog2.f32 %v2556_v2  ;;  %v2555_v11 = vsel %vm7152_vm6, %v2552_v63, %v2549_v12 }
 0x395   : > { %v2798_v50 = vpop.f32.mrf.mxu0  ;;  %v2561_v40 = vmul.f32 %v5159_v13, %v2560_v44  ;;  %v2691_v39 = vsel %vm2307_vm8, %v7106_v8, %v2555_v11 }
 0x396   : > { %v7141_v54 = vadd.f32 %v6835_v61, %v2245_v0  ;;  %v7144_v24 = vadd.f32 %v2798_v50, %v7118_v34 }
 0x398   : > { %v7146_v38 = vpop.eup %5162  ;;  %v2363_v21 = vmul.f32 1.442695, %v7141_v54  ;;  %v2910_v27 = vmul.f32 1.442695, %v7144_v24  ;;  %vm2310_vm12 = vcmp.gt.f32.partialorder %v7141_v54, 20.0  ;;  %vm2877_vm15 = vcmp.gt.f32.partialorder %v7144_v24, 20.0 }
 0x399   : > { %v7150_v5 = vpop.eup %5164  ;;  %v2565_v62 = vadd.f32 1.0, %v7146_v38  ;;  %v2568_v58 = vmul.f32 -0.5, %v7146_v38  ;;  %v2571_v46 = vand.u32 2147483647, %v7146_v38 }
 0x39a   : > { %v5167_v14 = vpop.eup %5166  ;;  %v2972_v49 = vadd.f32 1.0, %v7150_v5  ;;  %5168 = vpow2.f32 %v2363_v21  ;;  %v2975_v48 = vmul.f32 -0.5, %v7150_v5  ;;  %v2978_v13 = vand.u32 2147483647, %v7150_v5 }
 0x39b   : > { %5170 = vpow2.f32 %v2910_v27  ;;  %v2199_v31 = vpop.f32.mrf.mxu3  ;;  %v2558_v9 = vmul.f32 0.6931472, %v5167_v14  ;;  %v2569_v4 = vadd.f32 1.0, %v2568_v58  ;;  %vm7194_vm13 = vcmp.lt.f32.partialorder %v2571_v46, 0.0004427343 }
 0x39c   : > { %v2246_v1 = vadd.f32 %v2199_v31, %v8266_v55  ;;  %5172 = vlog2.f32 %v2972_v49  ;;  %v2976_v43 = vadd.f32 1.0, %v2975_v48  ;;  %vm7205_vm14 = vcmp.lt.f32.partialorder %v2978_v13, 0.0004427343  ;;  %v8274_v55 = vld [vmem:[#allocation13_spill] sm:$0xff] }
 0x39d   : > { %v2801_v18 = vpop.f32.mrf.mxu0  ;;  %v2564_v6 = vsel %vm2563_vm7, %v2561_v40, %v2558_v9  ;;  %5174 = vlog2.f32 %v2565_v62  ;;  %v2570_v49 = vmul.f32 %v7146_v38, %v2569_v4 }
 0x39e   : > { %v7164_v52 = vadd.f32 %v6835_v61, %v2246_v1  ;;  %v7167_v17 = vadd.f32 %v2801_v18, %v7118_v34  ;;  %v2692_v3 = vsel %vm2308_vm9, %v7111_v20, %v2564_v6  ;;  %v2977_v50 = vmul.f32 %v7150_v5, %v2976_v43 }
 0x39f   : > { %v2731_v19 = vpack.c.bf16 %v2692_v3, %v2691_v39 }
 0x3a0   : > { %v7171_v33 = vpop.eup %5168  ;;  %v2365_v30 = vmul.f32 1.442695, %v7164_v52  ;;  %v2912_v56 = vmul.f32 1.442695, %v7167_v17  ;;  %vm2311_vm2 = vcmp.gt.f32.partialorder %v7164_v52, 20.0  ;;  %vm2878_vm9 = vcmp.gt.f32.partialorder %v7167_v17, 20.0 }
 0x3a1   : > { %v5171_v23 = vpop.eup %5170  ;;  %2840 = vmatmul.bf16.gmra.mxu0 %v2731_v19  ;;  %v2574_v10 = vadd.f32 1.0, %v7171_v33  ;;  %v2577_v26 = vmul.f32 -0.5, %v7171_v33  ;;  %v2580_v63 = vand.u32 2147483647, %v7171_v33 }
 0x3a2   : > { %v2981_v42 = vadd.f32 1.0, %v5171_v23  ;;  %5176 = vpow2.f32 %v2365_v30  ;;  %v5173_v8 = vpop.eup %5172  ;;  %v2984_v20 = vmul.f32 -0.5, %v5171_v23  ;;  %v2987_v2 = vand.u32 2147483647, %v5171_v23 }
 0x3a3   : > { %5178 = vpow2.f32 %v2912_v56  ;;  %v2201_v22 = vpop.f32.mrf.mxu3  ;;  %v5175_v51 = vpop.eup %5174  ;;  %v2974_v29 = vmul.f32 0.6931472, %v5173_v8  ;;  %v2578_v0 = vadd.f32 1.0, %v2577_v26  ;;  %vm2581_vm1 = vcmp.lt.f32.partialorder %v2580_v63, 0.0004427343 }
 0x3a4   : > { %5180 = vlog2.f32 %v2981_v42  ;;  %v2247_v47 = vadd.f32 %v2201_v22, %v8267_v59  ;;  %v2985_v28 = vadd.f32 1.0, %v2984_v20  ;;  %v2567_v44 = vmul.f32 0.6931472, %v5175_v51 }
 0x3a5   : > { %v2803_v57 = vpop.f32.mrf.mxu0  ;;  %5182 = vlog2.f32 %v2574_v10  ;;  %v2980_v5 = vsel %vm7205_vm14, %v2977_v50, %v2974_v29  ;;  %vm7214_vm0 = vcmp.lt.f32.partialorder %v2987_v2, 0.0004427343  ;;  %v2579_v62 = vmul.f32 %v7171_v33, %v2578_v0 }
 0x3a6   : > { %v7188_v60 = vadd.f32 %v6835_v61, %v2247_v47  ;;  %v7191_v41 = vadd.f32 %v2803_v57, %v7118_v34  ;;  %v2986_v9 = vmul.f32 %v5171_v23, %v2985_v28  ;;  %v2573_v18 = vsel %vm7194_vm13, %v2570_v49, %v2567_v44  ;;  %v8275_v47 = vld [vmem:[#allocation14_spill] sm:$0xff] }
 0x3a7   : > { %v3260_v3 = vsel %vm2876_vm10, %v7129_v35, %v2980_v5  ;;  %v2693_v35 = vsel %vm2309_vm11, %v7126_v37, %v2573_v18 }
 0x3a8   : > { %v7198_v16 = vpop.eup %5176  ;;  %v2367_v36 = vmul.f32 1.442695, %v7188_v60  ;;  %v2914_v12 = vmul.f32 1.442695, %v7191_v41  ;;  %vm2312_vm3 = vcmp.gt.f32.partialorder %v7188_v60, 20.0  ;;  %vm2879_vm4 = vcmp.gt.f32.partialorder %v7191_v41, 20.0 }
 0x3a9   : > { %v7203_v21 = vpop.eup %5178  ;;  %v2583_v25 = vadd.f32 1.0, %v7198_v16  ;;  %v2586_v8 = vmul.f32 -0.5, %v7198_v16  ;;  %v2589_v43 = vand.u32 2147483647, %v7198_v16 }
 0x3aa   : > { %v5181_v32 = vpop.eup %5180  ;;  %5184 = vpow2.f32 %v2367_v36  ;;  %v2990_v39 = vadd.f32 1.0, %v7203_v21  ;;  %v2993_v26 = vmul.f32 -0.5, %v7203_v21  ;;  %v2996_v2 = vand.u32 2147483647, %v7203_v21 }
 0x3ab   : > { %v5183_v11 = vpop.eup %5182  ;;  %v2983_v31 = vmul.f32 0.6931472, %v5181_v32  ;;  %5186 = vpow2.f32 %v2914_v12  ;;  %v2204_v40 = vpop.f32.mrf.mxu3  ;;  %v2587_v13 = vadd.f32 1.0, %v2586_v8  ;;  %vm7260_vm5 = vcmp.lt.f32.partialorder %v2589_v43, 0.0004427343 }
 0x3ac   : > { %v2248_v1 = vadd.f32 %v2204_v40, %v8274_v55  ;;  %v2576_v6 = vmul.f32 0.6931472, %v5183_v11  ;;  %5188 = vlog2.f32 %v2583_v25  ;;  %v2994_v29 = vadd.f32 1.0, %v2993_v26 }
 0x3ad   : > { %v2989_v38 = vsel %vm7214_vm0, %v2986_v9, %v2983_v31  ;;  %v2806_v19 = vpop.f32.mrf.mxu0  ;;  %5190 = vlog2.f32 %v2990_v39  ;;  %v2588_v5 = vmul.f32 %v7198_v16, %v2587_v13  ;;  %vm7272_vm6 = vcmp.lt.f32.partialorder %v2996_v2, 0.0004427343  ;;  %v8285_v2 = vld [vmem:[#allocation8_spill] sm:$0xff] }
 0x3ae   : > { %v3261_v33 = vsel %vm2877_vm15, %v7144_v24, %v2989_v38  ;;  %v7233_v48 = vadd.f32 %v6835_v61, %v2248_v1  ;;  %v7236_v30 = vadd.f32 %v2806_v19, %v7118_v34  ;;  %v2582_v56 = vsel %vm2581_vm1, %v2579_v62, %v2576_v6  ;;  %v4667_v38 = vld [vmem:[%s8162_s2 + $0x160] sm:$0xff] }
 0x3af   : > { %v3309_v23 = vpack.c.bf16 %v3261_v33, %v3260_v3  ;;  %v2694_v58 = vsel %vm2310_vm12, %v7141_v54, %v2582_v56  ;;  %v2995_v31 = vmul.f32 %v7203_v21, %v2994_v29  ;;  %v8284_v19 = vld [vmem:[#allocation6_spill] sm:$0xff]  ;;  %3964 = vmatpush.bf16.msrb.mxu2 %v4667_v38 }
 0x3b0   : > { %v5185_v10 = vpop.eup %5184  ;;  %v2369_v42 = vmul.f32 1.442695, %v7233_v48  ;;  %v2916_v24 = vmul.f32 1.442695, %v7236_v30  ;;  %v2732_v22 = vpack.c.bf16 %v2694_v58, %v2693_v35  ;;  %vm2313_vm10 = vcmp.gt.f32.partialorder %v7233_v48, 20.0 }
 0x3b1   : > { %v5187_v20 = vpop.eup %5186  ;;  %3382 = vmatmul.bf16.vlgmr.msrb.gmra.mxu1 %v3309_v23  ;;  %v2592_v46 = vadd.f32 1.0, %v5185_v10  ;;  %v2595_v59 = vmul.f32 -0.5, %v5185_v10  ;;  %v2598_v36 = vand.u32 2147483647, %v5185_v10  ;;  %vm2880_vm11 = vcmp.gt.f32.partialorder %v7236_v30, 20.0 }
 0x3b2   : > { %5192 = vpow2.f32 %v2369_v42  ;;  %v2999_v37 = vadd.f32 1.0, %v5187_v20  ;;  %v5189_v45 = vpop.eup %5188  ;;  %2845 = vmatmul.bf16.gmra.mxu0 %v2732_v22  ;;  %v3002_v57 = vmul.f32 -0.5, %v5187_v20  ;;  %v3005_v27 = vand.u32 2147483647, %v5187_v20 }
 0x3b3   : > { %5194 = vpow2.f32 %v2916_v24  ;;  %v2206_v54 = vpop.f32.mrf.mxu3  ;;  %v5191_v28 = vpop.eup %5190  ;;  %v2585_v50 = vmul.f32 0.6931472, %v5189_v45  ;;  %v2596_v44 = vadd.f32 1.0, %v2595_v59  ;;  %vm7279_vm7 = vcmp.lt.f32.partialorder %v2598_v36, 0.0004427343 }
 0x3b4   : > { %v2249_v51 = vadd.f32 %v2206_v54, %v8275_v47  ;;  %5196 = vlog2.f32 %v2592_v46  ;;  %v3003_v14 = vadd.f32 1.0, %v3002_v57  ;;  %v2992_v11 = vmul.f32 0.6931472, %v5191_v28 }
 0x3b5   : > { %v2808_v4 = vpop.f32.mrf.mxu0  ;;  %5198 = vlog2.f32 %v2999_v37  ;;  %v2591_v55 = vsel %vm7260_vm5, %v2588_v5, %v2585_v50  ;;  %v2597_v39 = vmul.f32 %v5185_v10, %v2596_v44  ;;  %vm7284_vm8 = vcmp.lt.f32.partialorder %v3005_v27, 0.0004427343 }
 0x3b6   : > { %v7254_v15 = vadd.f32 %v6835_v61, %v2249_v51  ;;  %v7257_v0 = vadd.f32 %v2808_v4, %v7118_v34  ;;  %v3004_v23 = vmul.f32 %v5187_v20, %v3003_v14  ;;  %v2695_v10 = vsel %vm2311_vm2, %v7164_v52, %v2591_v55 }
 0x3b7   : > { %v2998_v42 = vsel %vm7272_vm6, %v2995_v31, %v2992_v11 }
 0x3b8   : > { %v7264_v63 = vpop.eup %5192  ;;  %v2371_v25 = vmul.f32 1.442695, %v7254_v15  ;;  %v2918_v32 = vmul.f32 1.442695, %v7257_v0  ;;  %v3262_v54 = vsel %vm2878_vm9, %v7167_v17, %v2998_v42  ;;  %vm2314_vm12 = vcmp.gt.f32.partialorder %v7254_v15, 20.0 }
 0x3b9   : > { %v7269_v49 = vpop.eup %5194  ;;  %v2601_v40 = vadd.f32 1.0, %v7264_v63  ;;  %v2604_v43 = vmul.f32 -0.5, %v7264_v63  ;;  %v2607_v12 = vand.u32 2147483647, %v7264_v63  ;;  %vm2881_vm13 = vcmp.gt.f32.partialorder %v7257_v0, 20.0 }
 0x3ba   : > { %v5197_v62 = vpop.eup %5196  ;;  %5200 = vpow2.f32 %v2371_v25  ;;  %v3008_v16 = vadd.f32 1.0, %v7269_v49  ;;  %v3011_v51 = vmul.f32 -0.5, %v7269_v49  ;;  %v3014_v27 = vand.u32 2147483647, %v7269_v49 }
 0x3bb   : > { %v5199_v18 = vpop.eup %5198  ;;  %5202 = vpow2.f32 %v2918_v32  ;;  %v2209_v21 = vpop.f32.mrf.mxu3  ;;  %v2594_v6 = vmul.f32 0.6931472, %v5197_v62  ;;  %v2605_v28 = vadd.f32 1.0, %v2604_v43  ;;  %vm7339_vm14 = vcmp.lt.f32.partialorder %v2607_v12, 0.0004427343 }
 0x3bc   : > { %v2250_v33 = vadd.f32 %v2209_v21, %v8284_v19  ;;  %v3001_v56 = vmul.f32 0.6931472, %v5199_v18  ;;  %5204 = vlog2.f32 %v2601_v40  ;;  %v3012_v44 = vadd.f32 1.0, %v3011_v51 }
 0x3bd   : > { %v2811_v35 = vpop.f32.mrf.mxu0  ;;  %v2600_v58 = vsel %vm7279_vm7, %v2597_v39, %v2594_v6  ;;  %5206 = vlog2.f32 %v3008_v16  ;;  %v2606_v55 = vmul.f32 %v7264_v63, %v2605_v28  ;;  %vm7351_vm0 = vcmp.lt.f32.partialorder %v3014_v27, 0.0004427343 }
 0x3be   : > { %v7300_v24 = vadd.f32 %v6835_v61, %v2250_v33  ;;  %v7303_v8 = vadd.f32 %v2811_v35, %v7118_v34  ;;  %v2696_v20 = vsel %vm2312_vm3, %v7188_v60, %v2600_v58  ;;  %v3007_v22 = vsel %vm7284_vm8, %v3004_v23, %v3001_v56  ;;  %v8292_v58 = vld [vmem:[#allocation10_spill] sm:$0xff] }
 0x3bf   : > { %v2733_v52 = vpack.c.bf16 %v2696_v20, %v2695_v10  ;;  %v3263_v46 = vsel %vm2879_vm4, %v7191_v41, %v3007_v22  ;;  %v3013_v21 = vmul.f32 %v7269_v49, %v3012_v44 }
 0x3c0   : > { %v5201_v26 = vpop.eup %5200  ;;  %v2373_v37 = vmul.f32 1.442695, %v7300_v24  ;;  %v2920_v45 = vmul.f32 1.442695, %v7303_v8  ;;  %v3310_v59 = vpack.c.bf16 %v3263_v46, %v3262_v54  ;;  %vm2315_vm2 = vcmp.gt.f32.partialorder %v7300_v24, 20.0 }
 0x3c1   : > { %v5203_v60 = vpop.eup %5202  ;;  %v2610_v47 = vadd.f32 1.0, %v5201_v26  ;;  %v2613_v29 = vmul.f32 -0.5, %v5201_v26  ;;  %v2616_v14 = vand.u32 2147483647, %v5201_v26  ;;  %vm2882_vm9 = vcmp.gt.f32.partialorder %v7303_v8, 20.0 }
 0x3c2   : > { %v5205_v13 = vpop.eup %5204  ;;  %5208 = vpow2.f32 %v2373_v37  ;;  %v3017_v57 = vadd.f32 1.0, %v5203_v60  ;;  %2850 = vmatmul.bf16.gmra.mxu0 %v2733_v52  ;;  %3387 = vmatmul.bf16.gmra.mxu1 %v3310_v59  ;;  %v3020_v50 = vmul.f32 -0.5, %v5203_v60  ;;  %v3023_v6 = vand.u32 2147483647, %v5203_v60 }
 0x3c3   : > { %v5207_v4 = vpop.eup %5206  ;;  %5210 = vpow2.f32 %v2920_v45  ;;  %v2211_v41 = vpop.f32.mrf.mxu3  ;;  %v2603_v5 = vmul.f32 0.6931472, %v5205_v13  ;;  %v2614_v11 = vadd.f32 1.0, %v2613_v29  ;;  %vm7347_vm15 = vcmp.lt.f32.partialorder %v2616_v14, 0.0004427343 }
 0x3c4   : > { %v2251_v17 = vadd.f32 %v2211_v41, %v8285_v2  ;;  %5212 = vlog2.f32 %v2610_v47  ;;  %v3010_v31 = vmul.f32 0.6931472, %v5207_v4  ;;  %v3021_v1 = vadd.f32 1.0, %v3020_v50  ;;  %v4666_v50 = vld [vmem:[%s8162_s2 + $0x158] sm:$0xff] }
 0x3c5   : > { %v2813_v36 = vpop.f32.mrf.mxu0  ;;  %5214 = vlog2.f32 %v3017_v57  ;;  %v2609_v38 = vsel %vm7339_vm14, %v2606_v55, %v2603_v5  ;;  %v2615_v23 = vmul.f32 %v5201_v26, %v2614_v11  ;;  %vm3024_vm1 = vcmp.lt.f32.partialorder %v3023_v6, 0.0004427343  ;;  %3965 = vmatpush.bf16.msrb.mxu2 %v4666_v50 }
 0x3c6   : > { %v7325_v25 = vadd.f32 %v6835_v61, %v2251_v17  ;;  %v7328_v32 = vadd.f32 %v2813_v36, %v7118_v34  ;;  %v3016_v35 = vsel %vm7351_vm0, %v3013_v21, %v3010_v31  ;;  %v3022_v20 = vmul.f32 %v5203_v60, %v3021_v1  ;;  %v8293_v36 = vld [vmem:[#allocation12_spill] sm:$0xff] }
 0x3c7   : > { %v2697_v37 = vsel %vm2313_vm10, %v7233_v48, %v2609_v38  ;;  %v3264_v59 = vsel %vm2880_vm11, %v7236_v30, %v3016_v35 }
 0x3c8   : > { %v7332_v9 = vpop.eup %5208  ;;  %v2375_v40 = vmul.f32 1.442695, %v7325_v25  ;;  %v2922_v62 = vmul.f32 1.442695, %v7328_v32  ;;  %vm2316_vm3 = vcmp.gt.f32.partialorder %v7325_v25, 20.0  ;;  %vm2883_vm4 = vcmp.gt.f32.partialorder %v7328_v32, 20.0 }
 0x3c9   : > { %v7337_v16 = vpop.eup %5210  ;;  %v2619_v39 = vadd.f32 1.0, %v7332_v9  ;;  %v2622_v57 = vmul.f32 -0.5, %v7332_v9  ;;  %v2625_v17 = vand.u32 2147483647, %v7332_v9 }
 0x3ca   : > { %v5213_v3 = vpop.eup %5212  ;;  %5216 = vpow2.f32 %v2375_v40  ;;  %v3026_v22 = vadd.f32 1.0, %v7337_v16  ;;  %v3029_v29 = vmul.f32 -0.5, %v7337_v16  ;;  %v3032_v11 = vand.u32 2147483647, %v7337_v16 }
 0x3cb   : > { %v5215_v33 = vpop.eup %5214  ;;  %5218 = vpow2.f32 %v2922_v62  ;;  %v2214_v56 = vpop.f32.mrf.mxu3  ;;  %v2612_v49 = vmul.f32 0.6931472, %v5213_v3  ;;  %v2623_v44 = vadd.f32 1.0, %v2622_v57  ;;  %vm7398_vm5 = vcmp.lt.f32.partialorder %v2625_v17, 0.0004427343 }
 0x3cc   : > { %v2252_v10 = vadd.f32 %v2214_v56, %v8292_v58  ;;  %v3019_v42 = vmul.f32 0.6931472, %v5215_v33  ;;  %5220 = vlog2.f32 %v2619_v39  ;;  %v3030_v14 = vadd.f32 1.0, %v3029_v29 }
 0x3cd   : > { %v2816_v52 = vpop.f32.mrf.mxu0  ;;  %v2618_v46 = vsel %vm7347_vm15, %v2615_v23, %v2612_v49  ;;  %5222 = vlog2.f32 %v3026_v22  ;;  %v2624_v19 = vmul.f32 %v7332_v9, %v2623_v44  ;;  %vm7410_vm6 = vcmp.lt.f32.partialorder %v3032_v11, 0.0004427343 }
 0x3ce   : > { %v7365_v26 = vadd.f32 %v6835_v61, %v2252_v10  ;;  %v7368_v45 = vadd.f32 %v2816_v52, %v7118_v34  ;;  %v2698_v54 = vsel %vm2314_vm12, %v7254_v15, %v2618_v46  ;;  %v3025_v43 = vsel %vm3024_vm1, %v3022_v20, %v3019_v42 }
 0x3cf   : > { %v2734_v60 = vpack.c.bf16 %v2698_v54, %v2697_v37  ;;  %v3265_v48 = vsel %vm2881_vm13, %v7257_v0, %v3025_v43  ;;  %v3031_v49 = vmul.f32 %v7337_v16, %v3030_v14 }
 0x3d0   : > { %v5217_v47 = vpop.eup %5216  ;;  %v2377_v51 = vmul.f32 1.442695, %v7365_v26  ;;  %v2924_v13 = vmul.f32 1.442695, %v7368_v45  ;;  %v3311_v15 = vpack.c.bf16 %v3265_v48, %v3264_v59  ;;  %vm2317_vm10 = vcmp.gt.f32.partialorder %v7365_v26, 20.0 }
 0x3d1   : > { %v5219_v4 = vpop.eup %5218  ;;  %v2628_v41 = vadd.f32 1.0, %v5217_v47  ;;  %v2631_v28 = vmul.f32 -0.5, %v5217_v47  ;;  %v2634_v1 = vand.u32 2147483647, %v5217_v47  ;;  %vm2884_vm12 = vcmp.gt.f32.partialorder %v7368_v45, 20.0 }
 0x3d2   : > { %5224 = vpow2.f32 %v2377_v51  ;;  %v3035_v2 = vadd.f32 1.0, %v5219_v4  ;;  %v5221_v30 = vpop.eup %5220  ;;  %2855 = vmatmul.bf16.gmra.mxu0 %v2734_v60  ;;  %3392 = vmatmul.bf16.gmra.mxu1 %v3311_v15  ;;  %v3038_v27 = vmul.f32 -0.5, %v5219_v4  ;;  %v3041_v6 = vand.u32 2147483647, %v5219_v4 }
 0x3d3   : > { %5226 = vpow2.f32 %v2924_v13  ;;  %v2216_v0 = vpop.f32.mrf.mxu3  ;;  %v5223_v31 = vpop.eup %5222  ;;  %v2621_v55 = vmul.f32 0.6931472, %v5221_v30  ;;  %v2632_v21 = vadd.f32 1.0, %v2631_v28  ;;  %vm7417_vm7 = vcmp.lt.f32.partialorder %v2634_v1, 0.0004427343 }
 0x3d4   : > { %v2253_v12 = vadd.f32 %v2216_v0, %v8293_v36  ;;  %5228 = vlog2.f32 %v2628_v41  ;;  %v3039_v63 = vadd.f32 1.0, %v3038_v27  ;;  %v3028_v56 = vmul.f32 0.6931472, %v5223_v31 }
 0x3d5   : > { %v2818_v5 = vpop.f32.mrf.mxu0  ;;  %5230 = vlog2.f32 %v3035_v2  ;;  %v2627_v10 = vsel %vm7398_vm5, %v2624_v19, %v2621_v55  ;;  %v2633_v52 = vmul.f32 %v5217_v47, %v2632_v21  ;;  %vm7422_vm8 = vcmp.lt.f32.partialorder %v3041_v6, 0.0004427343 }
 0x3d6   : > { %v7392_v40 = vadd.f32 %v6835_v61, %v2253_v12  ;;  %v7395_v62 = vadd.f32 %v2818_v5, %v7118_v34  ;;  %v3040_v43 = vmul.f32 %v5219_v4, %v3039_v63  ;;  %v2699_v48 = vsel %vm2315_vm2, %v7300_v24, %v2627_v10 }
 0x3d7   : > { %v3034_v47 = vsel %vm7410_vm6, %v3031_v49, %v3028_v56 }
 0x3d8   : > { %v7402_v39 = vpop.eup %5224  ;;  %v2379_v3 = vmul.f32 1.442695, %v7392_v40  ;;  %v2926_v38 = vmul.f32 1.442695, %v7395_v62  ;;  %v3266_v2 = vsel %vm2882_vm9, %v7303_v8, %v3034_v47  ;;  %vm2318_vm13 = vcmp.gt.f32.partialorder %v7392_v40, 20.0 }
 0x3d9   : > { %v7407_v33 = vpop.eup %5226  ;;  %v2637_v35 = vadd.f32 1.0, %v7402_v39  ;;  %v2640_v30 = vmul.f32 -0.5, %v7402_v39  ;;  %v2643_v17 = vand.u32 2147483647, %v7402_v39  ;;  %vm2885_vm0 = vcmp.gt.f32.partialorder %v7395_v62, 20.0 }
 0x3da   : > { %v5229_v58 = vpop.eup %5228  ;;  %5232 = vpow2.f32 %v2379_v3  ;;  %v3044_v9 = vadd.f32 1.0, %v7407_v33  ;;  %v3047_v36 = vmul.f32 -0.5, %v7407_v33  ;;  %v3050_v55 = vand.u32 2147483647, %v7407_v33 }
 0x3db   : > { %v5231_v20 = vpop.eup %5230  ;;  %5234 = vpow2.f32 %v2926_v38  ;;  %v2219_v16 = vpop.f32.mrf.mxu3  ;;  %v2630_v22 = vmul.f32 0.6931472, %v5229_v58  ;;  %v2641_v5 = vadd.f32 1.0, %v2640_v30  ;;  %vm7457_vm11 = vcmp.lt.f32.partialorder %v2643_v17, 0.0004427343 }
 0x3dc   : > { %v2254_v37 = vadd.f32 %v2219_v16, %v6158_v53  ;;  %v3037_v54 = vmul.f32 0.6931472, %v5231_v20  ;;  %5236 = vlog2.f32 %v2637_v35  ;;  %v3048_v21 = vadd.f32 1.0, %v3047_v36  ;;  %v4665_v16 = vld [vmem:[%s8162_s2 + $0x150] sm:$0xff] }
 0x3dd   : > { %v2821_v60 = vpop.f32.mrf.mxu0  ;;  %v2636_v59 = vsel %vm7417_vm7, %v2633_v52, %v2630_v22  ;;  %5238 = vlog2.f32 %v3044_v9  ;;  %v2642_v49 = vmul.f32 %v7402_v39, %v2641_v5  ;;  %vm7477_vm14 = vcmp.lt.f32.partialorder %v3050_v55, 0.0004427343  ;;  %3966 = vmatpush.bf16.msrb.mxu2 %v4665_v16 }
 0x3de   : > { %v7435_v51 = vadd.f32 %v6835_v61, %v2254_v37  ;;  %v7438_v53 = vadd.f32 %v2821_v60, %v7118_v34  ;;  %v2700_v13 = vsel %vm2316_vm3, %v7325_v25, %v2636_v59  ;;  %v3043_v57 = vsel %vm7422_vm8, %v3040_v43, %v3037_v54 }
 0x3df   : > { %v2735_v24 = vpack.c.bf16 %v2700_v13, %v2699_v48  ;;  %v3267_v4 = vsel %vm2883_vm4, %v7328_v32, %v3043_v57  ;;  %v3049_v20 = vmul.f32 %v7407_v33, %v3048_v21 }
 0x3e0   : > { %v5233_v15 = vpop.eup %5232  ;;  %v2381_v41 = vmul.f32 1.442695, %v7435_v51  ;;  %v2928_v29 = vmul.f32 1.442695, %v7438_v53  ;;  %v3312_v0 = vpack.c.bf16 %v3267_v4, %v3266_v2  ;;  %vm2319_vm3 = vcmp.gt.f32.partialorder %v7435_v51, 20.0 }
 0x3e1   : > { %v5235_v25 = vpop.eup %5234  ;;  %v2646_v28 = vadd.f32 1.0, %v5233_v15  ;;  %v2649_v27 = vmul.f32 -0.5, %v5233_v15  ;;  %v2652_v3 = vand.u32 2147483647, %v5233_v15  ;;  %vm2886_vm6 = vcmp.gt.f32.partialorder %v7438_v53, 20.0 }
 0x3e2   : > { %v5237_v50 = vpop.eup %5236  ;;  %5240 = vpow2.f32 %v2381_v41  ;;  %v3053_v12 = vadd.f32 1.0, %v5235_v25  ;;  %2860 = vmatmul.bf16.gmra.mxu0 %v2735_v24  ;;  %3397 = vmatmul.bf16.gmra.mxu1 %v3312_v0  ;;  %v3056_v14 = vmul.f32 -0.5, %v5235_v25  ;;  %v3059_v58 = vand.u32 2147483647, %v5235_v25 }
 0x3e3   : > { %v5239_v32 = vpop.eup %5238  ;;  %5242 = vpow2.f32 %v2928_v29  ;;  %v2221_v44 = vpop.f32.mrf.mxu3  ;;  %v2650_v6 = vadd.f32 1.0, %v2649_v27  ;;  %vm2653_vm15 = vcmp.lt.f32.partialorder %v2652_v3, 0.0004427343 }
 0x3e4   : > { %v2255_v8 = vadd.f32 %v2221_v44, %v6206_v7  ;;  %5244 = vlog2.f32 %v2646_v28  ;;  %v2639_v7 = vmul.f32 0.6931472, %v5237_v50  ;;  %v3046_v38 = vmul.f32 0.6931472, %v5239_v32 }
 0x3e5   : > { %v2823_v11 = vpop.f32.mrf.mxu0  ;;  %5246 = vlog2.f32 %v3053_v12  ;;  %v2651_v46 = vmul.f32 %v5233_v15, %v2650_v6  ;;  %vm3060_vm1 = vcmp.lt.f32.partialorder %v3059_v58, 0.0004427343 }
 0x3e6   : > { %v7463_v1 = vadd.f32 %v6835_v61, %v2255_v8  ;;  %v7466_v18 = vadd.f32 %v2823_v11, %v7118_v34  ;;  %v3057_v61 = vadd.f32 1.0, %v3056_v14  ;;  %v2645_v9 = vsel %vm7457_vm11, %v2642_v49, %v2639_v7 }
 0x3e7   : > { %v3052_v37 = vsel %vm7477_vm14, %v3049_v20, %v3046_v38  ;;  %v2701_v59 = vsel %vm2317_vm10, %v7365_v26, %v2645_v9 }
 0x3e8   : > { %v7469_v19 = vpop.eup %5240  ;;  %v2383_v63 = vmul.f32 1.442695, %v7463_v1  ;;  %v2930_v56 = vmul.f32 1.442695, %v7466_v18  ;;  %v3058_v43 = vmul.f32 %v5235_v25, %v3057_v61  ;;  %v3268_v24 = vsel %vm2884_vm12, %v7368_v45, %v3052_v37 }
 0x3e9   : > { %v7474_v23 = vpop.eup %5242  ;;  %v2655_v10 = vadd.f32 1.0, %v7469_v19  ;;  %v2658_v15 = vmul.f32 -0.5, %v7469_v19  ;;  %v2661_v50 = vand.u32 2147483647, %v7469_v19  ;;  %vm2320_vm7 = vcmp.gt.f32.partialorder %v7463_v1, 20.0 }
 0x3ea   : > { %v5245_v42 = vpop.eup %5244  ;;  %5248 = vpow2.f32 %v2383_v63  ;;  %v3062_v39 = vadd.f32 1.0, %v7474_v23  ;;  %v3065_v25 = vmul.f32 -0.5, %v7474_v23  ;;  %v3068_v44 = vand.u32 2147483647, %v7474_v23 }
 0x3eb   : > { %v5247_v22 = vpop.eup %5246  ;;  %5250 = vpow2.f32 %v2930_v56  ;;  %v2648_v52 = vmul.f32 0.6931472, %v5245_v42  ;;  %v2659_v28 = vadd.f32 1.0, %v2658_v15  ;;  %vm7515_vm2 = vcmp.lt.f32.partialorder %v2661_v50, 0.0004427343 }
 0x3ec   : > { %v3055_v54 = vmul.f32 0.6931472, %v5247_v22  ;;  %5252 = vlog2.f32 %v2655_v10  ;;  %v3066_v32 = vadd.f32 1.0, %v3065_v25  ;;  %vm7523_vm4 = vcmp.lt.f32.partialorder %v3068_v44, 0.0004427343 }
 0x3ed   : > { %v2826_v33 = vpop.f32.mrf.mxu0  ;;  %v2654_v60 = vsel %vm2653_vm15, %v2651_v46, %v2648_v52  ;;  %5254 = vlog2.f32 %v3062_v39  ;;  %v2660_v5 = vmul.f32 %v7469_v19, %v2659_v28  ;;  %vm2887_vm9 = vcmp.gt.f32.partialorder %v7466_v18, 20.0 }
 0x3ee   : > { %v7496_v48 = vadd.f32 %v2826_v33, %v7118_v34  ;;  %v2702_v47 = vsel %vm2318_vm13, %v7392_v40, %v2654_v60  ;;  %v3061_v13 = vsel %vm3060_vm1, %v3058_v43, %v3055_v54  ;;  %v3067_v63 = vmul.f32 %v7474_v23, %v3066_v32 }
 0x3ef   : > { %v2736_v57 = vpack.c.bf16 %v2702_v47, %v2701_v59  ;;  %v3269_v4 = vsel %vm2885_vm0, %v7395_v62, %v3061_v13 }
 0x3f0   : > { %v5249_v26 = vpop.eup %5248  ;;  %v2932_v41 = vmul.f32 1.442695, %v7496_v48  ;;  %v3313_v29 = vpack.c.bf16 %v3269_v4, %v3268_v24  ;;  %vm2888_vm13 = vcmp.gt.f32.partialorder %v7496_v48, 20.0 }
 0x3f1   : > { %v5251_v2 = vpop.eup %5250  ;;  %v2664_v30 = vadd.f32 1.0, %v5249_v26  ;;  %v2667_v0 = vmul.f32 -0.5, %v5249_v26  ;;  %v2670_v14 = vand.u32 2147483647, %v5249_v26 }
 0x3f2   : > { %v5253_v40 = vpop.eup %5252  ;;  %5256 = vpow2.f32 %v2932_v41  ;;  %v3071_v17 = vadd.f32 1.0, %v5251_v2  ;;  %2865 = vmatmul.bf16.gmra.mxu0 %v2736_v57  ;;  %3402 = vmatmul.bf16.gmra.mxu1 %v3313_v29  ;;  %v3074_v45 = vmul.f32 -0.5, %v5251_v2  ;;  %v3077_v6 = vand.u32 2147483647, %v5251_v2 }
 0x3f3   : > { %5258 = vlog2.f32 %v2664_v30  ;;  %v5255_v62 = vpop.eup %5254  ;;  %v2657_v12 = vmul.f32 0.6931472, %v5253_v40  ;;  %v2668_v8 = vadd.f32 1.0, %v2667_v0  ;;  %vm2671_vm5 = vcmp.lt.f32.partialorder %v2670_v14, 0.0004427343 }
 0x3f4   : > { %5260 = vlog2.f32 %v3071_v17  ;;  %v3064_v11 = vmul.f32 0.6931472, %v5255_v62  ;;  %v3075_v31 = vadd.f32 1.0, %v3074_v45  ;;  %vm3078_vm8 = vcmp.lt.f32.partialorder %v3077_v6, 0.0004427343 }
 0x3f5   : > { %v2828_v36 = vpop.f32.mrf.mxu0  ;;  %v2663_v38 = vsel %vm7515_vm2, %v2660_v5, %v2657_v12  ;;  %v2669_v61 = vmul.f32 %v5249_v26, %v2668_v8 }
 0x3f6   : > { %v7511_v27 = vadd.f32 %v2828_v36, %v7118_v34  ;;  %v3070_v58 = vsel %vm7523_vm4, %v3067_v63, %v3064_v11  ;;  %v3076_v42 = vmul.f32 %v5251_v2, %v3075_v31  ;;  %v2703_v20 = vsel %vm2319_vm3, %v7435_v51, %v2663_v38 }
 0x3f7   : > { %v3270_v52 = vsel %vm2886_vm6, %v7438_v53, %v3070_v58 }
 0x3f8   : > { %v5257_v55 = vpop.eup %5256  ;;  %v2934_v7 = vmul.f32 1.442695, %v7511_v27  ;;  %vm2889_vm12 = vcmp.gt.f32.partialorder %v7511_v27, 20.0 }
 0x3f9   : > { %v5259_v3 = vpop.eup %5258  ;;  %v3080_v35 = vadd.f32 1.0, %v5257_v55  ;;  %v3083_v60 = vmul.f32 -0.5, %v5257_v55  ;;  %v3086_v13 = vand.u32 2147483647, %v5257_v55 }
 0x3fa   : > { %v5261_v56 = vpop.eup %5260  ;;  %5262 = vpow2.f32 %v2934_v7  ;;  %v2666_v49 = vmul.f32 0.6931472, %v5259_v3 }
 0x3fb   : > { %v3073_v10 = vmul.f32 0.6931472, %v5261_v56  ;;  %5264 = vlog2.f32 %v3080_v35  ;;  %vm3087_vm10 = vcmp.lt.f32.partialorder %v3086_v13, 0.0004427343  ;;  %v5598_v13 = vld [vmem:[%s8163_s3] sm:$0xff] }
 0x3fc   : > { %v2672_v23 = vsel %vm2671_vm5, %v2669_v61, %v2666_v49 }
 0x3fd   : > { %v2831_v9 = vpop.f32.mrf.mxu0  ;;  %v2704_v39 = vsel %vm2320_vm7, %v7463_v1, %v2672_v23  ;;  %v3079_v16 = vsel %vm3078_vm8, %v3076_v42, %v3073_v10  ;;  %v4664_v1 = vld [vmem:[%s8162_s2 + $0x148] sm:$0xff] }
 0x3fe   : > { %v7537_v22 = vadd.f32 %v2831_v9, %v7118_v34  ;;  %v3271_v46 = vsel %vm2887_vm9, %v7466_v18, %v3079_v16  ;;  %v2737_v37 = vpack.c.bf16 %v2704_v39, %v2703_v20  ;;  %v3084_v18 = vadd.f32 1.0, %v3083_v60  ;;  %3967 = vmatpush.bf16.msrb.mxu2 %v4664_v1 }
 0x3ff   : > { %v3314_v54 = vpack.c.bf16 %v3271_v46, %v3270_v52 }
 0x400   : > { %v5263_v43 = vpop.eup %5262  ;;  %v2936_v33 = vmul.f32 1.442695, %v7537_v22  ;;  %v3085_v2 = vmul.f32 %v5257_v55, %v3084_v18  ;;  %vm2890_vm1 = vcmp.gt.f32.partialorder %v7537_v22, 20.0 }
 0x401   : > { %v3089_v59 = vadd.f32 1.0, %v5263_v43  ;;  %v3092_v51 = vmul.f32 -0.5, %v5263_v43  ;;  %v5265_v53 = vpop.eup %5264  ;;  %v3095_v15 = vand.u32 2147483647, %v5263_v43 }
 0x402   : > { %5266 = vpow2.f32 %v2936_v33  ;;  %2870 = vmatmul.bf16.gmra.mxu0 %v2737_v37  ;;  %3407 = vmatmul.bf16.gmra.mxu1 %v3314_v54  ;;  %v3082_v4 = vmul.f32 0.6931472, %v5265_v53 }
 0x403   : > { %5268 = vlog2.f32 %v3089_v59  ;;  %v3093_v24 = vadd.f32 1.0, %v3092_v51  ;;  %vm3096_vm11 = vcmp.lt.f32.partialorder %v3095_v15, 0.0004427343 }
 0x404   : > { %v3088_v0 = vsel %vm3087_vm10, %v3085_v2, %v3082_v4 }
 0x405   : > { %v2833_v47 = vpop.f32.mrf.mxu0  ;;  %v3094_v25 = vmul.f32 %v5263_v43, %v3093_v24  ;;  %v3272_v50 = vsel %vm2888_vm13, %v7496_v48, %v3088_v0  ;;  %v4663_v0 = vld [vmem:[%s8162_s2 + $0x140] sm:$0xff] }
 0x406   : > { %v2834_v57 = vadd.f32 %v2833_v47, %v7118_v34  ;;  %3968 = vmatpush.bf16.msrb.mxu2 %v4663_v0 }
 0x408   : > { %v5267_v26 = vpop.eup %5266  ;;  %v2938_v41 = vmul.f32 1.442695, %v2834_v57  ;;  %vm2891_vm0 = vcmp.gt.f32.partialorder %v2834_v57, 20.0 }
 0x409   : > { %v5269_v29 = vpop.eup %5268  ;;  %v3098_v40 = vadd.f32 1.0, %v5267_v26  ;;  %v3101_v44 = vmul.f32 -0.5, %v5267_v26 }
 0x40a   : > { %5270 = vpow2.f32 %v2938_v41  ;;  %v3091_v30 = vmul.f32 0.6931472, %v5269_v29 }
 0x40b   : > { %5272 = vlog2.f32 %v3098_v40  ;;  %v3102_v31 = vadd.f32 1.0, %v3101_v44 }
 0x40c   : > { %v3097_v17 = vsel %vm3096_vm11, %v3094_v25, %v3091_v30 }
 0x40d   : > { %v2836_v28 = vpop.f32.mrf.mxu0  ;;  %v3273_v45 = vsel %vm2889_vm12, %v7511_v27, %v3097_v17  ;;  %v3104_v27 = vand.u32 2147483647, %v5267_v26  ;;  %v3103_v63 = vmul.f32 %v5267_v26, %v3102_v31 }
 0x40e   : > { %v7550_v62 = vadd.f32 %v2836_v28, %v7118_v34  ;;  %v3315_v36 = vpack.c.bf16 %v3273_v45, %v3272_v50 }
 0x40f   : > { %vm3105_vm14 = vcmp.lt.f32.partialorder %v3104_v27, 0.0004427343 }
 0x410   : > { %v5271_v12 = vpop.eup %5270  ;;  %v2940_v32 = vmul.f32 1.442695, %v7550_v62  ;;  %vm2892_vm4 = vcmp.gt.f32.partialorder %v7550_v62, 20.0 }
 0x411   : > { %v3107_v8 = vadd.f32 1.0, %v5271_v12  ;;  %v3110_v5 = vmul.f32 -0.5, %v5271_v12  ;;  %v5273_v14 = vpop.eup %5272  ;;  %v3113_v48 = vand.u32 2147483647, %v5271_v12 }
 0x412   : > { %5274 = vpow2.f32 %v2940_v32  ;;  %3412 = vmatmul.bf16.gmra.mxu1 %v3315_v36  ;;  %v3100_v21 = vmul.f32 0.6931472, %v5273_v14 }
 0x413   : > { %5276 = vlog2.f32 %v3107_v8  ;;  %v3111_v7 = vadd.f32 1.0, %v3110_v5  ;;  %vm3114_vm15 = vcmp.lt.f32.partialorder %v3113_v48, 0.0004427343 }
 0x414   : > { %v3106_v61 = vsel %vm3105_vm14, %v3103_v63, %v3100_v21 }
 0x415   : > { %v2838_v11 = vpop.f32.mrf.mxu0  ;;  %v3112_v56 = vmul.f32 %v5271_v12, %v3111_v7  ;;  %v3274_v42 = vsel %vm2890_vm1, %v7537_v22, %v3106_v61 }
 0x416   : > { %v2839_v55 = vadd.f32 %v2838_v11, %v7118_v34 }
 0x418   : > { %v5275_v6 = vpop.eup %5274  ;;  %v2942_v3 = vmul.f32 1.442695, %v2839_v55  ;;  %vm2893_vm5 = vcmp.gt.f32.partialorder %v2839_v55, 20.0 }
 0x419   : > { %v5277_v38 = vpop.eup %5276  ;;  %v3116_v49 = vadd.f32 1.0, %v5275_v6  ;;  %v3119_v16 = vmul.f32 -0.5, %v5275_v6  ;;  %v3122_v33 = vand.u32 2147483647, %v5275_v6 }
 0x41a   : > { %5278 = vpow2.f32 %v2942_v3  ;;  %v3109_v19 = vmul.f32 0.6931472, %v5277_v38 }
 0x41b   : > { %5280 = vlog2.f32 %v3116_v49  ;;  %v3120_v54 = vadd.f32 1.0, %v3119_v16  ;;  %vm3123_vm2 = vcmp.lt.f32.partialorder %v3122_v33, 0.0004427343 }
 0x41c   : > { %v3115_v35 = vsel %vm3114_vm15, %v3112_v56, %v3109_v19 }
 0x41d   : > { %v3275_v58 = vsel %vm2891_vm0, %v2834_v57, %v3115_v35  ;;  %v3121_v47 = vmul.f32 %v5275_v6, %v3120_v54  ;;  %v7568_v57 = vperm.slane %v5598_v13, 5 }
 0x41e   : > { %v2841_v10 = vpop.f32.mrf.mxu0  ;;  %v3316_v9 = vpack.c.bf16 %v3275_v58, %v3274_v42 }
 0x41f   : > { %v7558_v23 = vadd.f32 %v2841_v10, %v7118_v34 }
 0x420   : > { %v5279_v20 = vpop.eup %5278 }
 0x421   : > { %v2944_v39 = vmul.f32 1.442695, %v7558_v23  ;;  %v3125_v52 = vadd.f32 1.0, %v5279_v20  ;;  %v3128_v46 = vmul.f32 -0.5, %v5279_v20  ;;  %v5281_v37 = vpop.eup %5280  ;;  %v3131_v51 = vand.u32 2147483647, %v5279_v20 }
 0x422   : > { %3417 = vmatmul.bf16.gmra.mxu1 %v3316_v9  ;;  %v3118_v60 = vmul.f32 0.6931472, %v5281_v37  ;;  %vm2894_vm8 = vcmp.gt.f32.partialorder %v7558_v23, 20.0 }
 0x423   : > { %5282 = vpow2.f32 %v2944_v39  ;;  %v3129_v59 = vadd.f32 1.0, %v3128_v46  ;;  %vm3132_vm3 = vcmp.lt.f32.partialorder %v3131_v51, 0.0004427343 }
 0x424   : > { %5284 = vlog2.f32 %v3125_v52  ;;  %v3124_v4 = vsel %vm3123_vm2, %v3121_v47, %v3118_v60 }
 0x425   : > { %v3130_v26 = vmul.f32 %v5279_v20, %v3129_v59  ;;  %v3276_v2 = vsel %vm2892_vm4, %v7550_v62, %v3124_v4 }
 0x426   : > { %v2843_v43 = vpop.f32.mrf.mxu0 }
 0x427   : > { %v7562_v22 = vadd.f32 %v2843_v43, %v7118_v34 }
 0x429   : > { %v5283_v1 = vpop.eup %5282  ;;  %v2946_v53 = vmul.f32 1.442695, %v7562_v22  ;;  %vm2895_vm9 = vcmp.gt.f32.partialorder %v7562_v22, 20.0 }
 0x42a   : > { %v5285_v18 = vpop.eup %5284  ;;  %v3134_v24 = vadd.f32 1.0, %v5283_v1  ;;  %v3137_v28 = vmul.f32 -0.5, %v5283_v1  ;;  %v3140_v5 = vand.u32 2147483647, %v5283_v1 }
 0x42b   : > { %5286 = vpow2.f32 %v2946_v53  ;;  %v3127_v15 = vmul.f32 0.6931472, %v5285_v18 }
 0x42c   : > { %5288 = vlog2.f32 %v3134_v24  ;;  %v3138_v8 = vadd.f32 1.0, %v3137_v28  ;;  %vm7590_vm6 = vcmp.lt.f32.partialorder %v3140_v5, 0.0004427343 }
 0x42d   : > { %v3133_v41 = vsel %vm3132_vm3, %v3130_v26, %v3127_v15 }
 0x42e   : > { %v3383_v29 = vpop.f32.mrf.mxu1  ;;  %v3277_v30 = vsel %vm2893_vm5, %v2839_v55, %v3133_v41  ;;  %v3139_v7 = vmul.f32 %v5283_v1, %v3138_v8 }
 0x42f   : > { %v7573_v25 = vadd.f32 %v3383_v29, %v7568_v57  ;;  %v3317_v40 = vpack.c.bf16 %v3277_v30, %v3276_v2  ;;  %v2846_v17 = vpop.f32.mrf.mxu0 }
 0x430   : > { %v7579_v50 = vadd.f32 %v2846_v17, %v7118_v34 }
 0x431   : > { %v5287_v45 = vpop.eup %5286  ;;  %v3495_v36 = vmul.f32 1.442695, %v7573_v25  ;;  %vm3463_vm10 = vcmp.gt.f32.partialorder %v7573_v25, 20.0 }
 0x432   : > { %v3143_v12 = vadd.f32 1.0, %v5287_v45  ;;  %v5289_v62 = vpop.eup %5288  ;;  %v2948_v32 = vmul.f32 1.442695, %v7579_v50  ;;  %3422 = vmatmul.bf16.gmra.mxu1 %v3317_v40  ;;  %v3146_v44 = vmul.f32 -0.5, %v5287_v45  ;;  %v3149_v21 = vand.u32 2147483647, %v5287_v45 }
 0x433   : > { %5290 = vpow2.f32 %v3495_v36  ;;  %v3136_v11 = vmul.f32 0.6931472, %v5289_v62  ;;  %vm2896_vm0 = vcmp.gt.f32.partialorder %v7579_v50, 20.0 }
 0x434   : > { %5292 = vlog2.f32 %v3143_v12  ;;  %v3147_v27 = vadd.f32 1.0, %v3146_v44  ;;  %vm3150_vm7 = vcmp.lt.f32.partialorder %v3149_v21, 0.0004427343 }
 0x435   : > { %5294 = vpow2.f32 %v2948_v32  ;;  %v3142_v56 = vsel %vm7590_vm6, %v3139_v7, %v3136_v11 }
 0x436   : > { %v3385_v14 = vpop.f32.mrf.mxu1  ;;  %v3148_v58 = vmul.f32 %v5287_v45, %v3147_v27  ;;  %v3278_v9 = vsel %vm2894_vm8, %v7558_v23, %v3142_v56 }
 0x437   : > { %v7584_v31 = vadd.f32 %v3385_v14, %v7568_v57  ;;  %v2848_v55 = vpop.f32.mrf.mxu0 }
 0x438   : > { %v7587_v6 = vadd.f32 %v2848_v55, %v7118_v34 }
 0x439   : > { %v5291_v48 = vpop.eup %5290  ;;  %v3497_v3 = vmul.f32 1.442695, %v7584_v31  ;;  %vm3464_vm13 = vcmp.gt.f32.partialorder %v7584_v31, 20.0 }
 0x43a   : > { %v5293_v63 = vpop.eup %5292  ;;  %v3559_v19 = vadd.f32 1.0, %v5291_v48  ;;  %v2950_v61 = vmul.f32 1.442695, %v7587_v6  ;;  %v3562_v16 = vmul.f32 -0.5, %v5291_v48  ;;  %v3565_v47 = vand.u32 2147483647, %v5291_v48 }
 0x43b   : > { %v5295_v49 = vpop.eup %5294  ;;  %5296 = vpow2.f32 %v3497_v3  ;;  %v3145_v35 = vmul.f32 0.6931472, %v5293_v63  ;;  %vm2897_vm1 = vcmp.gt.f32.partialorder %v7587_v6, 20.0 }
 0x43c   : > { %5298 = vlog2.f32 %v3559_v19  ;;  %v3152_v10 = vadd.f32 1.0, %v5295_v49  ;;  %v3155_v59 = vmul.f32 -0.5, %v5295_v49  ;;  %v3158_v18 = vand.u32 2147483647, %v5295_v49 }
 0x43d   : > { %5300 = vpow2.f32 %v2950_v61  ;;  %v3151_v42 = vsel %vm3150_vm7, %v3148_v58, %v3145_v35  ;;  %vm7610_vm11 = vcmp.lt.f32.partialorder %v3565_v47, 0.0004427343 }
 0x43e   : > { %v3279_v20 = vsel %vm2895_vm9, %v7562_v22, %v3151_v42  ;;  %5302 = vlog2.f32 %v3152_v10  ;;  %v3563_v22 = vadd.f32 1.0, %v3562_v16  ;;  %v3156_v15 = vadd.f32 1.0, %v3155_v59 }
 0x43f   : > { %v3318_v39 = vpack.c.bf16 %v3279_v20, %v3278_v9  ;;  %v2851_v52 = vpop.f32.mrf.mxu0  ;;  %v3388_v46 = vpop.f32.mrf.mxu1  ;;  %vm7622_vm12 = vcmp.lt.f32.partialorder %v3158_v18, 0.0004427343 }
 0x440   : > { %v7602_v54 = vadd.f32 %v2851_v52, %v7118_v34  ;;  %v7605_v43 = vadd.f32 %v3388_v46, %v7568_v57  ;;  %v3564_v29 = vmul.f32 %v5291_v48, %v3563_v22  ;;  %v3157_v62 = vmul.f32 %v5295_v49, %v3156_v15 }
 0x441   : > { %v5297_v37 = vpop.eup %5296 }
 0x442   : > { %v5299_v33 = vpop.eup %5298  ;;  %v3568_v60 = vadd.f32 1.0, %v5297_v37  ;;  %v3571_v1 = vmul.f32 -0.5, %v5297_v37  ;;  %v2952_v23 = vmul.f32 1.442695, %v7602_v54  ;;  %3427 = vmatmul.bf16.gmra.mxu1 %v3318_v39  ;;  %v3499_v53 = vmul.f32 1.442695, %v7605_v43 }
 0x443   : > { %v5301_v51 = vpop.eup %5300  ;;  %v3561_v4 = vmul.f32 0.6931472, %v5299_v33  ;;  %v3574_v2 = vand.u32 2147483647, %v5297_v37  ;;  %vm2898_vm2 = vcmp.gt.f32.partialorder %v7602_v54, 20.0  ;;  %vm3465_vm9 = vcmp.gt.f32.partialorder %v7605_v43, 20.0 }
 0x444   : > { %5304 = vlog2.f32 %v3568_v60  ;;  %v3161_v13 = vadd.f32 1.0, %v5301_v51  ;;  %v5303_v24 = vpop.eup %5302  ;;  %v3164_v26 = vmul.f32 -0.5, %v5301_v51  ;;  %v3572_v41 = vadd.f32 1.0, %v3571_v1 }
 0x445   : > { %5306 = vpow2.f32 %v2952_v23  ;;  %v3154_v45 = vmul.f32 0.6931472, %v5303_v24  ;;  %v3567_v12 = vsel %vm7610_vm11, %v3564_v29, %v3561_v4  ;;  %v3167_v27 = vand.u32 2147483647, %v5301_v51 }
 0x446   : > { %5308 = vpow2.f32 %v3499_v53  ;;  %v3165_v44 = vadd.f32 1.0, %v3164_v26  ;;  %v3573_v14 = vmul.f32 %v5297_v37, %v3572_v41  ;;  %vm3575_vm14 = vcmp.lt.f32.partialorder %v3574_v2, 0.0004427343 }
 0x447   : > { %5310 = vlog2.f32 %v3161_v13  ;;  %v2853_v30 = vpop.f32.mrf.mxu0  ;;  %v3390_v40 = vpop.f32.mrf.mxu1  ;;  %v3847_v3 = vsel %vm3463_vm10, %v7573_v25, %v3567_v12  ;;  %v3160_v63 = vsel %vm7622_vm12, %v3157_v62, %v3154_v45  ;;  %vm3168_vm15 = vcmp.lt.f32.partialorder %v3167_v27, 0.0004427343 }
 0x448   : > { %v7615_v17 = vadd.f32 %v2853_v30, %v7118_v34  ;;  %v7618_v28 = vadd.f32 %v3390_v40, %v7568_v57  ;;  %v3166_v49 = vmul.f32 %v5301_v51, %v3165_v44  ;;  %v3280_v9 = vsel %vm2896_vm0, %v7579_v50, %v3160_v63 }
 0x44a   : > { %v5305_v36 = vpop.eup %5304  ;;  %v2954_v11 = vmul.f32 1.442695, %v7615_v17  ;;  %v3501_v7 = vmul.f32 1.442695, %v7618_v28  ;;  %vm2899_vm3 = vcmp.gt.f32.partialorder %v7615_v17, 20.0  ;;  %vm3466_vm4 = vcmp.gt.f32.partialorder %v7618_v28, 20.0 }
 0x44b   : > { %v7626_v8 = vpop.eup %5306  ;;  %v3570_v5 = vmul.f32 0.6931472, %v5305_v36 }
 0x44c   : > { %v7629_v55 = vpop.eup %5308  ;;  %v3170_v21 = vadd.f32 1.0, %v7626_v8  ;;  %5312 = vpow2.f32 %v2954_v11  ;;  %v3173_v37 = vmul.f32 -0.5, %v7626_v8  ;;  %v3176_v47 = vand.u32 2147483647, %v7626_v8 }
 0x44d   : > { %v5311_v48 = vpop.eup %5310  ;;  %v3576_v38 = vsel %vm3575_vm14, %v3573_v14, %v3570_v5  ;;  %5314 = vpow2.f32 %v3501_v7  ;;  %v3577_v35 = vadd.f32 1.0, %v7629_v55  ;;  %v3580_v59 = vmul.f32 -0.5, %v7629_v55 }
 0x44e   : > { %v3848_v19 = vsel %vm3464_vm13, %v7584_v31, %v3576_v38  ;;  %v3163_v56 = vmul.f32 0.6931472, %v5311_v48  ;;  %5316 = vlog2.f32 %v3170_v21  ;;  %v3174_v1 = vadd.f32 1.0, %v3173_v37 }
 0x44f   : > { %v3896_v61 = vpack.c.bf16 %v3848_v19, %v3847_v3  ;;  %v2856_v58 = vpop.f32.mrf.mxu0  ;;  %v3393_v25 = vpop.f32.mrf.mxu1  ;;  %5318 = vlog2.f32 %v3577_v35  ;;  %v3581_v18 = vadd.f32 1.0, %v3580_v59  ;;  %v3583_v26 = vand.u32 2147483647, %v7629_v55 }
 0x450   : > { %v3169_v10 = vsel %vm3168_vm15, %v3166_v49, %v3163_v56  ;;  %v7644_v42 = vadd.f32 %v2856_v58, %v7118_v34  ;;  %v7647_v31 = vadd.f32 %v3393_v25, %v7568_v57  ;;  %v3175_v45 = vmul.f32 %v7626_v8, %v3174_v1 }
 0x451   : > { %v3281_v20 = vsel %vm2897_vm1, %v7587_v6, %v3169_v10  ;;  %3969 = vmatmul.bf16.vlgmr.msrb.gmra.mxu2 %v3896_v61  ;;  %vm7673_vm5 = vcmp.lt.f32.partialorder %v3176_v47, 0.0004427343  ;;  %v3582_v44 = vmul.f32 %v7629_v55, %v3581_v18  ;;  %vm7681_vm6 = vcmp.lt.f32.partialorder %v3583_v26, 0.0004427343 }
 0x452   : > { %v3319_v39 = vpack.c.bf16 %v3281_v20, %v3280_v9  ;;  %v5313_v16 = vpop.eup %5312  ;;  %v2956_v52 = vmul.f32 1.442695, %v7644_v42  ;;  %v3503_v46 = vmul.f32 1.442695, %v7647_v31  ;;  %vm2900_vm10 = vcmp.gt.f32.partialorder %v7644_v42, 20.0 }
 0x453   : > { %v5315_v33 = vpop.eup %5314  ;;  %v3179_v60 = vadd.f32 1.0, %v5313_v16  ;;  %v3182_v6 = vmul.f32 -0.5, %v5313_v16  ;;  %v3185_v29 = vand.u32 2147483647, %v5313_v16  ;;  %vm3467_vm11 = vcmp.gt.f32.partialorder %v7647_v31, 20.0 }
 0x454   : > { %3432 = vmatmul.bf16.gmra.mxu1 %v3319_v39  ;;  %5320 = vpow2.f32 %v2956_v52  ;;  %v3586_v51 = vadd.f32 1.0, %v5315_v33  ;;  %v5317_v50 = vpop.eup %5316  ;;  %v3589_v23 = vmul.f32 -0.5, %v5315_v33  ;;  %v3592_v2 = vand.u32 2147483647, %v5315_v33 }
 0x455   : > { %5322 = vpow2.f32 %v3503_v46  ;;  %v5319_v13 = vpop.eup %5318  ;;  %v3172_v15 = vmul.f32 0.6931472, %v5317_v50  ;;  %v3183_v41 = vadd.f32 1.0, %v3182_v6  ;;  %vm3186_vm7 = vcmp.lt.f32.partialorder %v3185_v29, 0.0004427343 }
 0x456   : > { %5324 = vlog2.f32 %v3179_v60  ;;  %v3590_v36 = vadd.f32 1.0, %v3589_v23  ;;  %v3579_v32 = vmul.f32 0.6931472, %v5319_v13  ;;  %vm3593_vm8 = vcmp.lt.f32.partialorder %v3592_v2, 0.0004427343 }
 0x457   : > { %v2858_v22 = vpop.f32.mrf.mxu0  ;;  %v3395_v53 = vpop.f32.mrf.mxu1  ;;  %5326 = vlog2.f32 %v3586_v51  ;;  %v3178_v11 = vsel %vm7673_vm5, %v3175_v45, %v3172_v15  ;;  %v3184_v48 = vmul.f32 %v5313_v16, %v3183_v41 }
 0x458   : > { %v7659_v24 = vadd.f32 %v2858_v22, %v7118_v34  ;;  %v7662_v4 = vadd.f32 %v3395_v53, %v7568_v57  ;;  %v3591_v55 = vmul.f32 %v5315_v33, %v3590_v36  ;;  %v3282_v56 = vsel %vm2898_vm2, %v7602_v54, %v3178_v11 }
 0x459   : > { %v3585_v49 = vsel %vm7681_vm6, %v3582_v44, %v3579_v32 }
 0x45a   : > { %v7666_v30 = vpop.eup %5320  ;;  %v2958_v40 = vmul.f32 1.442695, %v7659_v24  ;;  %v3505_v0 = vmul.f32 1.442695, %v7662_v4  ;;  %v3849_v16 = vsel %vm3465_vm9, %v7605_v43, %v3585_v49  ;;  %vm2901_vm12 = vcmp.gt.f32.partialorder %v7659_v24, 20.0 }
 0x45b   : > { %v7671_v12 = vpop.eup %5322  ;;  %v3188_v5 = vadd.f32 1.0, %v7666_v30  ;;  %v3191_v52 = vmul.f32 -0.5, %v7666_v30  ;;  %v3194_v23 = vand.u32 2147483647, %v7666_v30  ;;  %vm3468_vm13 = vcmp.gt.f32.partialorder %v7662_v4, 20.0 }
 0x45c   : > { %v5325_v14 = vpop.eup %5324  ;;  %5328 = vpow2.f32 %v2958_v40  ;;  %v3595_v8 = vadd.f32 1.0, %v7671_v12  ;;  %v3598_v60 = vmul.f32 -0.5, %v7671_v12  ;;  %v3601_v22 = vand.u32 2147483647, %v7671_v12 }
 0x45d   : > { %v5327_v7 = vpop.eup %5326  ;;  %5330 = vpow2.f32 %v3505_v0  ;;  %v3181_v21 = vmul.f32 0.6931472, %v5325_v14  ;;  %v3192_v50 = vadd.f32 1.0, %v3191_v52  ;;  %vm7728_vm14 = vcmp.lt.f32.partialorder %v3194_v23, 0.0004427343 }
 0x45e   : > { %v3588_v3 = vmul.f32 0.6931472, %v5327_v7  ;;  %5332 = vlog2.f32 %v3188_v5  ;;  %v3599_v13 = vadd.f32 1.0, %v3598_v60  ;;  %vm7736_vm15 = vcmp.lt.f32.partialorder %v3601_v22, 0.0004427343 }
 0x45f   : > { %v2861_v38 = vpop.f32.mrf.mxu0  ;;  %v3398_v63 = vpop.f32.mrf.mxu1  ;;  %v3187_v19 = vsel %vm3186_vm7, %v3184_v48, %v3181_v21  ;;  %5334 = vlog2.f32 %v3595_v8  ;;  %v3193_v0 = vmul.f32 %v7666_v30, %v3192_v50 }
 0x460   : > { %v7692_v61 = vadd.f32 %v2861_v38, %v7118_v34  ;;  %v7695_v35 = vadd.f32 %v3398_v63, %v7568_v57  ;;  %v3283_v58 = vsel %vm2899_vm3, %v7615_v17, %v3187_v19  ;;  %v3594_v25 = vsel %vm3593_vm8, %v3591_v55, %v3588_v3 }
 0x461   : > { %v3320_v10 = vpack.c.bf16 %v3283_v58, %v3282_v56  ;;  %v3850_v54 = vsel %vm3466_vm4, %v7618_v28, %v3594_v25  ;;  %v3600_v11 = vmul.f32 %v7671_v12, %v3599_v13 }
 0x462   : > { %v5329_v9 = vpop.eup %5328  ;;  %v2960_v20 = vmul.f32 1.442695, %v7692_v61  ;;  %v3507_v39 = vmul.f32 1.442695, %v7695_v35  ;;  %v3897_v17 = vpack.c.bf16 %v3850_v54, %v3849_v16  ;;  %vm2902_vm2 = vcmp.gt.f32.partialorder %v7692_v61, 20.0 }
 0x463   : > { %v5331_v46 = vpop.eup %5330  ;;  %v3197_v37 = vadd.f32 1.0, %v5329_v9  ;;  %v3200_v28 = vmul.f32 -0.5, %v5329_v9  ;;  %v3203_v26 = vand.u32 2147483647, %v5329_v9  ;;  %vm3469_vm9 = vcmp.gt.f32.partialorder %v7695_v35, 20.0 }
 0x464   : > { %3437 = vmatmul.bf16.gmra.mxu1 %v3320_v10  ;;  %v5333_v33 = vpop.eup %5332  ;;  %5336 = vpow2.f32 %v2960_v20  ;;  %v3604_v59 = vadd.f32 1.0, %v5331_v46  ;;  %3974 = vmatmul.bf16.gmra.mxu2 %v3897_v17  ;;  %v3607_v6 = vmul.f32 -0.5, %v5331_v46  ;;  %v3610_v32 = vand.u32 2147483647, %v5331_v46 }
 0x465   : > { %v5335_v51 = vpop.eup %5334  ;;  %5338 = vpow2.f32 %v3507_v39  ;;  %v3190_v18 = vmul.f32 0.6931472, %v5333_v33  ;;  %v3201_v15 = vadd.f32 1.0, %v3200_v28  ;;  %vm3204_vm0 = vcmp.lt.f32.partialorder %v3203_v26, 0.0004427343 }
 0x466   : > { %5340 = vlog2.f32 %v3197_v37  ;;  %v3597_v41 = vmul.f32 0.6931472, %v5335_v51  ;;  %v3608_v45 = vadd.f32 1.0, %v3607_v6  ;;  %vm3611_vm1 = vcmp.lt.f32.partialorder %v3610_v32, 0.0004427343 }
 0x467   : > { %v2863_v43 = vpop.f32.mrf.mxu0  ;;  %v3400_v1 = vpop.f32.mrf.mxu1  ;;  %5342 = vlog2.f32 %v3604_v59  ;;  %v3196_v14 = vsel %vm7728_vm14, %v3193_v0, %v3190_v18  ;;  %v3202_v7 = vmul.f32 %v5329_v9, %v3201_v15 }
 0x468   : > { %v7714_v53 = vadd.f32 %v2863_v43, %v7118_v34  ;;  %v7717_v47 = vadd.f32 %v3400_v1, %v7568_v57  ;;  %v3603_v21 = vsel %vm7736_vm15, %v3600_v11, %v3597_v41  ;;  %v3609_v3 = vmul.f32 %v5331_v46, %v3608_v45 }
 0x469   : > { %v3284_v12 = vsel %vm2900_vm10, %v7644_v42, %v3196_v14  ;;  %v3851_v54 = vsel %vm3467_vm11, %v7647_v31, %v3603_v21 }
 0x46a   : > { %v7720_v29 = vpop.eup %5336  ;;  %v2962_v2 = vmul.f32 1.442695, %v7714_v53  ;;  %v3509_v40 = vmul.f32 1.442695, %v7717_v47  ;;  %vm2903_vm4 = vcmp.gt.f32.partialorder %v7714_v53, 20.0  ;;  %vm3470_vm5 = vcmp.gt.f32.partialorder %v7717_v47, 20.0 }
 0x46b   : > { %v7725_v36 = vpop.eup %5338  ;;  %v3206_v44 = vadd.f32 1.0, %v7720_v29  ;;  %v3209_v16 = vmul.f32 -0.5, %v7720_v29  ;;  %v3212_v46 = vand.u32 2147483647, %v7720_v29 }
 0x46c   : > { %v5341_v5 = vpop.eup %5340  ;;  %5344 = vpow2.f32 %v2962_v2  ;;  %v3613_v55 = vadd.f32 1.0, %v7725_v36  ;;  %v3616_v31 = vmul.f32 -0.5, %v7725_v36  ;;  %v3619_v6 = vand.u32 2147483647, %v7725_v36 }
 0x46d   : > { %v5343_v27 = vpop.eup %5342  ;;  %5346 = vpow2.f32 %v3509_v40  ;;  %v3199_v8 = vmul.f32 0.6931472, %v5341_v5  ;;  %v3210_v60 = vadd.f32 1.0, %v3209_v16  ;;  %vm7767_vm3 = vcmp.lt.f32.partialorder %v3212_v46, 0.0004427343 }
 0x46e   : > { %v3606_v48 = vmul.f32 0.6931472, %v5343_v27  ;;  %5348 = vlog2.f32 %v3206_v44  ;;  %v3617_v18 = vadd.f32 1.0, %v3616_v31  ;;  %vm7787_vm6 = vcmp.lt.f32.partialorder %v3619_v6, 0.0004427343 }
 0x46f   : > { %v2866_v38 = vpop.f32.mrf.mxu0  ;;  %v3403_v63 = vpop.f32.mrf.mxu1  ;;  %v3205_v19 = vsel %vm3204_vm0, %v3202_v7, %v3199_v8  ;;  %5350 = vlog2.f32 %v3613_v55  ;;  %v3211_v0 = vmul.f32 %v7720_v29, %v3210_v60 }
 0x470   : > { %v7747_v56 = vadd.f32 %v2866_v38, %v7118_v34  ;;  %v7750_v49 = vadd.f32 %v3403_v63, %v7568_v57  ;;  %v3285_v58 = vsel %vm2901_vm12, %v7659_v24, %v3205_v19  ;;  %v3612_v25 = vsel %vm3611_vm1, %v3609_v3, %v3606_v48 }
 0x471   : > { %v3321_v10 = vpack.c.bf16 %v3285_v58, %v3284_v12  ;;  %v3852_v42 = vsel %vm3468_vm13, %v7662_v4, %v3612_v25  ;;  %v3618_v30 = vmul.f32 %v7725_v36, %v3617_v18 }
 0x472   : > { %v5345_v9 = vpop.eup %5344  ;;  %v2964_v20 = vmul.f32 1.442695, %v7747_v56  ;;  %v3511_v39 = vmul.f32 1.442695, %v7750_v49  ;;  %v3898_v24 = vpack.c.bf16 %v3852_v42, %v3851_v54  ;;  %vm2904_vm10 = vcmp.gt.f32.partialorder %v7747_v56, 20.0 }
 0x473   : > { %v5347_v52 = vpop.eup %5346  ;;  %v3215_v17 = vadd.f32 1.0, %v5345_v9  ;;  %v3218_v4 = vmul.f32 -0.5, %v5345_v9  ;;  %v3221_v15 = vand.u32 2147483647, %v5345_v9  ;;  %vm3471_vm12 = vcmp.gt.f32.partialorder %v7750_v49, 20.0 }
 0x474   : > { %3442 = vmatmul.bf16.gmra.mxu1 %v3321_v10  ;;  %5352 = vpow2.f32 %v2964_v20  ;;  %v3622_v37 = vadd.f32 1.0, %v5347_v52  ;;  %v5349_v33 = vpop.eup %5348  ;;  %3979 = vmatmul.bf16.gmra.mxu2 %v3898_v24  ;;  %v3625_v59 = vmul.f32 -0.5, %v5347_v52  ;;  %v3628_v26 = vand.u32 2147483647, %v5347_v52 }
 0x475   : > { %5354 = vpow2.f32 %v3511_v39  ;;  %v5351_v43 = vpop.eup %5350  ;;  %v3208_v22 = vmul.f32 0.6931472, %v5349_v33  ;;  %v3219_v13 = vadd.f32 1.0, %v3218_v4  ;;  %vm3222_vm7 = vcmp.lt.f32.partialorder %v3221_v15, 0.0004427343 }
 0x476   : > { %5356 = vlog2.f32 %v3215_v17  ;;  %v3626_v45 = vadd.f32 1.0, %v3625_v59  ;;  %v3615_v32 = vmul.f32 0.6931472, %v5351_v43  ;;  %vm3629_vm8 = vcmp.lt.f32.partialorder %v3628_v26, 0.0004427343 }
 0x477   : > { %v2868_v51 = vpop.f32.mrf.mxu0  ;;  %v3405_v28 = vpop.f32.mrf.mxu1  ;;  %5358 = vlog2.f32 %v3622_v37  ;;  %v3214_v11 = vsel %vm7767_vm3, %v3211_v0, %v3208_v22  ;;  %v3220_v7 = vmul.f32 %v5345_v9, %v3219_v13 }
 0x478   : > { %v7773_v1 = vadd.f32 %v2868_v51, %v7118_v34  ;;  %v7776_v23 = vadd.f32 %v3405_v28, %v7568_v57  ;;  %v3627_v48 = vmul.f32 %v5347_v52, %v3626_v45  ;;  %v3286_v63 = vsel %vm2902_vm2, %v7692_v61, %v3214_v11 }
 0x479   : > { %v3621_v36 = vsel %vm7787_vm6, %v3618_v30, %v3615_v32 }
 0x47a   : > { %v7779_v41 = vpop.eup %5352  ;;  %v2966_v2 = vmul.f32 1.442695, %v7773_v1  ;;  %v3513_v40 = vmul.f32 1.442695, %v7776_v23  ;;  %v3853_v20 = vsel %vm3469_vm9, %v7695_v35, %v3621_v36  ;;  %vm2905_vm13 = vcmp.gt.f32.partialorder %v7773_v1, 20.0 }
 0x47b   : > { %v7784_v62 = vpop.eup %5354  ;;  %v3224_v5 = vadd.f32 1.0, %v7779_v41  ;;  %v3230_v52 = vand.u32 2147483647, %v7779_v41  ;;  %vm3472_vm0 = vcmp.gt.f32.partialorder %v7776_v23, 20.0 }
 0x47c   : > { %v5357_v14 = vpop.eup %5356  ;;  %5360 = vpow2.f32 %v2966_v2  ;;  %v3631_v29 = vadd.f32 1.0, %v7784_v62  ;;  %v3634_v17 = vmul.f32 -0.5, %v7784_v62  ;;  %v3637_v51 = vand.u32 2147483647, %v7784_v62 }
 0x47d   : > { %v5359_v27 = vpop.eup %5358  ;;  %5362 = vpow2.f32 %v3513_v40  ;;  %v3217_v8 = vmul.f32 0.6931472, %v5357_v14  ;;  %vm7821_vm11 = vcmp.lt.f32.partialorder %v3230_v52, 0.0004427343 }
 0x47e   : > { %v3624_v21 = vmul.f32 0.6931472, %v5359_v27  ;;  %5364 = vlog2.f32 %v3224_v5  ;;  %v3635_v43 = vadd.f32 1.0, %v3634_v17  ;;  %vm7841_vm14 = vcmp.lt.f32.partialorder %v3637_v51, 0.0004427343 }
 0x47f   : > { %v2871_v3 = vpop.f32.mrf.mxu0  ;;  %v3408_v55 = vpop.f32.mrf.mxu1  ;;  %v3223_v38 = vsel %vm3222_vm7, %v3220_v7, %v3217_v8  ;;  %5366 = vlog2.f32 %v3631_v29 }
 0x480   : > { %v7802_v19 = vadd.f32 %v2871_v3, %v7118_v34  ;;  %v7805_v12 = vadd.f32 %v3408_v55, %v7568_v57  ;;  %v3287_v58 = vsel %vm2903_vm4, %v7714_v53, %v3223_v38  ;;  %v3630_v25 = vsel %vm3629_vm8, %v3627_v48, %v3624_v21 }
 0x481   : > { %v3322_v10 = vpack.c.bf16 %v3287_v58, %v3286_v63  ;;  %v3854_v61 = vsel %vm3470_vm5, %v7717_v47, %v3630_v25  ;;  %v3227_v53 = vmul.f32 -0.5, %v7779_v41  ;;  %v3636_v11 = vmul.f32 %v7784_v62, %v3635_v43 }
 0x482   : > { %v5361_v54 = vpop.eup %5360  ;;  %v2968_v42 = vmul.f32 1.442695, %v7802_v19  ;;  %v3515_v9 = vmul.f32 1.442695, %v7805_v12  ;;  %v3899_v16 = vpack.c.bf16 %v3854_v61, %v3853_v20  ;;  %vm2906_vm3 = vcmp.gt.f32.partialorder %v7802_v19, 20.0 }
 0x483   : > { %v5363_v39 = vpop.eup %5362  ;;  %v3233_v24 = vadd.f32 1.0, %v5361_v54  ;;  %v3236_v37 = vmul.f32 -0.5, %v5361_v54  ;;  %v3228_v60 = vadd.f32 1.0, %v3227_v53  ;;  %v3239_v6 = vand.u32 2147483647, %v5361_v54 }
 0x484   : > { %3447 = vmatmul.bf16.gmra.mxu1 %v3322_v10  ;;  %v5365_v46 = vpop.eup %5364  ;;  %5368 = vpow2.f32 %v2968_v42  ;;  %v3640_v47 = vadd.f32 1.0, %v5363_v39  ;;  %3984 = vmatmul.bf16.gmra.mxu2 %v3899_v16  ;;  %v3643_v33 = vmul.f32 -0.5, %v5363_v39  ;;  %v3646_v32 = vand.u32 2147483647, %v5363_v39 }
 0x485   : > { %v5367_v31 = vpop.eup %5366  ;;  %5370 = vpow2.f32 %v3515_v9  ;;  %v3226_v22 = vmul.f32 0.6931472, %v5365_v46  ;;  %v3237_v18 = vadd.f32 1.0, %v3236_v37  ;;  %v3229_v0 = vmul.f32 %v7779_v41, %v3228_v60 }
 0x486   : > { %5372 = vlog2.f32 %v3233_v24  ;;  %v3633_v13 = vmul.f32 0.6931472, %v5367_v31  ;;  %vm7846_vm15 = vcmp.lt.f32.partialorder %v3239_v6, 0.0004427343  ;;  %vm3647_vm1 = vcmp.lt.f32.partialorder %v3646_v32, 0.0004427343 }
 0x487   : > { %v2873_v35 = vpop.f32.mrf.mxu0  ;;  %v3410_v4 = vpop.f32.mrf.mxu1  ;;  %5374 = vlog2.f32 %v3640_v47  ;;  %v3232_v41 = vsel %vm7821_vm11, %v3229_v0, %v3226_v22  ;;  %v3238_v8 = vmul.f32 %v5361_v54, %v3237_v18  ;;  %vm3473_vm5 = vcmp.gt.f32.partialorder %v7805_v12, 20.0 }
 0x488   : > { %v7827_v28 = vadd.f32 %v2873_v35, %v7118_v34  ;;  %v7830_v50 = vadd.f32 %v3410_v4, %v7568_v57  ;;  %v3644_v34 = vadd.f32 1.0, %v3643_v33  ;;  %v3639_v7 = vsel %vm7841_vm14, %v3636_v11, %v3633_v13 }
 0x489   : > { %v3288_v38 = vsel %vm2904_vm10, %v7747_v56, %v3232_v41  ;;  %v3855_v25 = vsel %vm3471_vm12, %v7750_v49, %v3639_v7 }
 0x48a   : > { %v7833_v15 = vpop.eup %5368  ;;  %v2970_v26 = vmul.f32 1.442695, %v7827_v28  ;;  %v3517_v2 = vmul.f32 1.442695, %v7830_v50  ;;  %v3645_v48 = vmul.f32 %v5363_v39, %v3644_v34  ;;  %vm2907_vm7 = vcmp.gt.f32.partialorder %v7827_v28, 20.0 }
 0x48b   : > { %v7838_v40 = vpop.eup %5370  ;;  %v3242_v44 = vadd.f32 1.0, %v7833_v15  ;;  %v3245_v61 = vmul.f32 -0.5, %v7833_v15  ;;  %v3248_v24 = vand.u32 2147483647, %v7833_v15  ;;  %vm3474_vm8 = vcmp.gt.f32.partialorder %v7830_v50, 20.0 }
 0x48c   : > { %v5373_v5 = vpop.eup %5372  ;;  %5376 = vpow2.f32 %v2970_v26  ;;  %v3649_v30 = vadd.f32 1.0, %v7838_v40  ;;  %v3652_v56 = vmul.f32 -0.5, %v7838_v40  ;;  %v3655_v37 = vand.u32 2147483647, %v7838_v40 }
 0x48d   : > { %v5375_v29 = vpop.eup %5374  ;;  %5378 = vpow2.f32 %v3517_v2  ;;  %v3235_v27 = vmul.f32 0.6931472, %v5373_v5  ;;  %v3246_v49 = vadd.f32 1.0, %v3245_v61  ;;  %vm7882_vm2 = vcmp.lt.f32.partialorder %v3248_v24, 0.0004427343 }
 0x48e   : > { %v3642_v21 = vmul.f32 0.6931472, %v5375_v29  ;;  %5380 = vlog2.f32 %v3242_v44  ;;  %v3653_v46 = vadd.f32 1.0, %v3652_v56  ;;  %vm7890_vm4 = vcmp.lt.f32.partialorder %v3655_v37, 0.0004427343 }
 0x48f   : > { %v3413_v3 = vpop.f32.mrf.mxu1  ;;  %v3241_v62 = vsel %vm7846_vm15, %v3238_v8, %v3235_v27  ;;  %5382 = vlog2.f32 %v3649_v30  ;;  %v3247_v4 = vmul.f32 %v7833_v15, %v3246_v49 }
 0x490   : > { %v7860_v55 = vadd.f32 %v3413_v3, %v7568_v57  ;;  %v3289_v63 = vsel %vm2905_vm13, %v7773_v1, %v3241_v62  ;;  %v3648_v36 = vsel %vm3647_vm1, %v3645_v48, %v3642_v21  ;;  %v3654_v22 = vmul.f32 %v7838_v40, %v3653_v46 }
 0x491   : > { %v3323_v58 = vpack.c.bf16 %v3289_v63, %v3288_v38  ;;  %v3856_v10 = vsel %vm3472_vm0, %v7776_v23, %v3648_v36 }
 0x492   : > { %v5377_v54 = vpop.eup %5376  ;;  %v3519_v42 = vmul.f32 1.442695, %v7860_v55  ;;  %v3900_v9 = vpack.c.bf16 %v3856_v10, %v3855_v25  ;;  %vm3475_vm13 = vcmp.gt.f32.partialorder %v7860_v55, 20.0 }
 0x493   : > { %v5379_v20 = vpop.eup %5378  ;;  %v3251_v39 = vadd.f32 1.0, %v5377_v54  ;;  %v3254_v1 = vmul.f32 -0.5, %v5377_v54  ;;  %v3257_v60 = vand.u32 2147483647, %v5377_v54 }
 0x494   : > { %3452 = vmatmul.bf16.gmra.mxu1 %v3323_v58  ;;  %v5381_v16 = vpop.eup %5380  ;;  %5384 = vpow2.f32 %v3519_v42  ;;  %v3658_v53 = vadd.f32 1.0, %v5379_v20  ;;  %3989 = vmatmul.bf16.gmra.mxu2 %v3900_v9  ;;  %v3661_v23 = vmul.f32 -0.5, %v5379_v20  ;;  %v3664_v18 = vand.u32 2147483647, %v5379_v20 }
 0x495   : > { %v5383_v52 = vpop.eup %5382  ;;  %5386 = vlog2.f32 %v3251_v39  ;;  %v3244_v47 = vmul.f32 0.6931472, %v5381_v16  ;;  %v3255_v31 = vadd.f32 1.0, %v3254_v1  ;;  %vm3258_vm6 = vcmp.lt.f32.partialorder %v3257_v60, 0.0004427343 }
 0x496   : > { %5388 = vlog2.f32 %v3658_v53  ;;  %v3651_v35 = vmul.f32 0.6931472, %v5383_v52  ;;  %v3662_v59 = vadd.f32 1.0, %v3661_v23  ;;  %vm3665_vm9 = vcmp.lt.f32.partialorder %v3664_v18, 0.0004427343 }
 0x497   : > { %v3415_v17 = vpop.f32.mrf.mxu1  ;;  %v3250_v26 = vsel %vm7882_vm2, %v3247_v4, %v3244_v47  ;;  %v3256_v2 = vmul.f32 %v5377_v54, %v3255_v31 }
 0x498   : > { %v7878_v33 = vadd.f32 %v3415_v17, %v7568_v57  ;;  %v3657_v45 = vsel %vm7890_vm4, %v3654_v22, %v3651_v35  ;;  %v3663_v44 = vmul.f32 %v5379_v20, %v3662_v59  ;;  %v3290_v11 = vsel %vm2906_vm3, %v7802_v19, %v3250_v26 }
 0x499   : > { %v3857_v41 = vsel %vm3473_vm5, %v7805_v12, %v3657_v45 }
 0x49a   : > { %v5385_v51 = vpop.eup %5384  ;;  %v3521_v6 = vmul.f32 1.442695, %v7878_v33  ;;  %vm3476_vm12 = vcmp.gt.f32.partialorder %v7878_v33, 20.0 }
 0x49b   : > { %v5387_v13 = vpop.eup %5386  ;;  %v3667_v32 = vadd.f32 1.0, %v5385_v51  ;;  %v3670_v62 = vmul.f32 -0.5, %v5385_v51  ;;  %v3673_v36 = vand.u32 2147483647, %v5385_v51 }
 0x49c   : > { %v5389_v34 = vpop.eup %5388  ;;  %5390 = vpow2.f32 %v3521_v6  ;;  %v3253_v0 = vmul.f32 0.6931472, %v5387_v13 }
 0x49d   : > { %v3660_v40 = vmul.f32 0.6931472, %v5389_v34  ;;  %5392 = vlog2.f32 %v3667_v32  ;;  %v3671_v63 = vadd.f32 1.0, %v3670_v62  ;;  %vm3674_vm10 = vcmp.lt.f32.partialorder %v3673_v36, 0.0004427343 }
 0x49e   : > { %v3259_v5 = vsel %vm3258_vm6, %v3256_v2, %v3253_v0 }
 0x49f   : > { %v3418_v14 = vpop.f32.mrf.mxu1  ;;  %v3291_v30 = vsel %vm2907_vm7, %v7827_v28, %v3259_v5  ;;  %v3666_v29 = vsel %vm3665_vm9, %v3663_v44, %v3660_v40  ;;  %v3672_v9 = vmul.f32 %v5385_v51, %v3671_v63 }
 0x4a0   : > { %v7905_v27 = vadd.f32 %v3418_v14, %v7568_v57  ;;  %v3324_v8 = vpack.c.bf16 %v3291_v30, %v3290_v11  ;;  %v3858_v7 = vsel %vm3474_vm8, %v7830_v50, %v3666_v29 }
 0x4a1   : > { %v3901_v21 = vpack.c.bf16 %v3858_v7, %v3857_v41 }
 0x4a2   : > { %v5391_v48 = vpop.eup %5390  ;;  %v3523_v3 = vmul.f32 1.442695, %v7905_v27  ;;  %vm3477_vm1 = vcmp.gt.f32.partialorder %v7905_v27, 20.0 }
 0x4a3   : > { %v3676_v38 = vadd.f32 1.0, %v5391_v48  ;;  %v3679_v19 = vmul.f32 -0.5, %v5391_v48  ;;  %v5393_v28 = vpop.eup %5392  ;;  %v3682_v10 = vand.u32 2147483647, %v5391_v48 }
 0x4a4   : > { %3457 = vmatmul.bf16.gmra.mxu1 %v3324_v8  ;;  %5394 = vpow2.f32 %v3523_v3  ;;  %3994 = vmatmul.bf16.gmra.mxu2 %v3901_v21  ;;  %v3669_v50 = vmul.f32 0.6931472, %v5393_v28 }
 0x4a5   : > { %5396 = vlog2.f32 %v3676_v38  ;;  %v3680_v25 = vadd.f32 1.0, %v3679_v19  ;;  %vm3683_vm11 = vcmp.lt.f32.partialorder %v3682_v10, 0.0004427343 }
 0x4a6   : > { %v3675_v1 = vsel %vm3674_vm10, %v3672_v9, %v3669_v50  ;;  %v5599_v9 = vld [vmem:[%s8163_s3] sm:$0xff]  ;;  %vm4210_vm10 = vcmask 72704  }
 0x4a7   : > { %v3420_v12 = vpop.f32.mrf.mxu1  ;;  %v3681_v20 = vmul.f32 %v5391_v48, %v3680_v25  ;;  %v3859_v23 = vsel %vm3475_vm13, %v7860_v55, %v3675_v1 }
 0x4a8   : > { %v3421_v58 = vadd.f32 %v3420_v12, %v7568_v57 }
 0x4aa   : > { %v5395_v61 = vpop.eup %5394  ;;  %v3525_v54 = vmul.f32 1.442695, %v3421_v58  ;;  %vm3478_vm0 = vcmp.gt.f32.partialorder %v3421_v58, 20.0 }
 0x4ab   : > { %v5397_v42 = vpop.eup %5396  ;;  %v3685_v39 = vadd.f32 1.0, %v5395_v61  ;;  %v3688_v47 = vmul.f32 -0.5, %v5395_v61 }
 0x4ac   : > { %5398 = vpow2.f32 %v3525_v54  ;;  %v3678_v56 = vmul.f32 0.6931472, %v5397_v42 }
 0x4ad   : > { %5400 = vlog2.f32 %v3685_v39  ;;  %v3689_v60 = vadd.f32 1.0, %v3688_v47 }
 0x4ae   : > { %v3684_v16 = vsel %vm3683_vm11, %v3681_v20, %v3678_v56  ;;  %v7934_v56 = vperm.slane %v5599_v9, 6 }
 0x4af   : > { %v3423_v53 = vpop.f32.mrf.mxu1  ;;  %v3860_v52 = vsel %vm3476_vm12, %v7878_v33, %v3684_v16  ;;  %v3691_v33 = vand.u32 2147483647, %v5395_v61  ;;  %v3690_v13 = vmul.f32 %v5395_v61, %v3689_v60 }
 0x4b0   : > { %v7914_v49 = vadd.f32 %v3423_v53, %v7568_v57  ;;  %v3902_v24 = vpack.c.bf16 %v3860_v52, %v3859_v23 }
 0x4b1   : > { %vm3692_vm14 = vcmp.lt.f32.partialorder %v3691_v33, 0.0004427343 }
 0x4b2   : > { %v5399_v46 = vpop.eup %5398  ;;  %v3527_v17 = vmul.f32 1.442695, %v7914_v49  ;;  %vm3479_vm5 = vcmp.gt.f32.partialorder %v7914_v49, 20.0 }
 0x4b3   : > { %v3694_v31 = vadd.f32 1.0, %v5399_v46  ;;  %v3697_v37 = vmul.f32 -0.5, %v5399_v46  ;;  %v5401_v35 = vpop.eup %5400  ;;  %v3700_v55 = vand.u32 2147483647, %v5399_v46 }
 0x4b4   : > { %5402 = vpow2.f32 %v3527_v17  ;;  %3999 = vmatmul.bf16.gmra.mxu2 %v3902_v24  ;;  %v3687_v6 = vmul.f32 0.6931472, %v5401_v35 }
 0x4b5   : > { %5404 = vlog2.f32 %v3694_v31  ;;  %v3698_v51 = vadd.f32 1.0, %v3697_v37  ;;  %vm3701_vm15 = vcmp.lt.f32.partialorder %v3700_v55, 0.0004427343 }
 0x4b6   : > { %v3693_v34 = vsel %vm3692_vm14, %v3690_v13, %v3687_v6 }
 0x4b7   : > { %v3425_v4 = vpop.f32.mrf.mxu1  ;;  %v3699_v2 = vmul.f32 %v5399_v46, %v3698_v51  ;;  %v3861_v44 = vsel %vm3477_vm1, %v7905_v27, %v3693_v34 }
 0x4b8   : > { %v3426_v59 = vadd.f32 %v3425_v4, %v7568_v57 }
 0x4ba   : > { %v5403_v43 = vpop.eup %5402  ;;  %v3529_v22 = vmul.f32 1.442695, %v3426_v59  ;;  %vm3480_vm4 = vcmp.gt.f32.partialorder %v3426_v59, 20.0 }
 0x4bb   : > { %v5405_v18 = vpop.eup %5404  ;;  %v3703_v15 = vadd.f32 1.0, %v5403_v43  ;;  %v3706_v30 = vmul.f32 -0.5, %v5403_v43  ;;  %v3709_v48 = vand.u32 2147483647, %v5403_v43 }
 0x4bc   : > { %5406 = vpow2.f32 %v3529_v22  ;;  %v3696_v26 = vmul.f32 0.6931472, %v5405_v18 }
 0x4bd   : > { %5408 = vlog2.f32 %v3703_v15  ;;  %v3707_v21 = vadd.f32 1.0, %v3706_v30  ;;  %vm3710_vm2 = vcmp.lt.f32.partialorder %v3709_v48, 0.0004427343 }
 0x4be   : > { %v3702_v0 = vsel %vm3701_vm15, %v3699_v2, %v3696_v26 }
 0x4bf   : > { %v3428_v45 = vpop.f32.mrf.mxu1  ;;  %v3862_v32 = vsel %vm3478_vm0, %v3421_v58, %v3702_v0  ;;  %v3708_v63 = vmul.f32 %v5403_v43, %v3707_v21 }
 0x4c0   : > { %v7921_v40 = vadd.f32 %v3428_v45, %v7568_v57  ;;  %v3903_v5 = vpack.c.bf16 %v3862_v32, %v3861_v44 }
 0x4c2   : > { %v5407_v14 = vpop.eup %5406  ;;  %v3531_v11 = vmul.f32 1.442695, %v7921_v40  ;;  %vm3481_vm8 = vcmp.gt.f32.partialorder %v7921_v40, 20.0 }
 0x4c3   : > { %v3712_v29 = vadd.f32 1.0, %v5407_v14  ;;  %v3715_v41 = vmul.f32 -0.5, %v5407_v14  ;;  %v5409_v8 = vpop.eup %5408  ;;  %v3718_v38 = vand.u32 2147483647, %v5407_v14 }
 0x4c4   : > { %5410 = vpow2.f32 %v3531_v11  ;;  %4004 = vmatmul.bf16.gmra.mxu2 %v3903_v5  ;;  %v3705_v27 = vmul.f32 0.6931472, %v5409_v8 }
 0x4c5   : > { %5412 = vlog2.f32 %v3712_v29  ;;  %v3716_v62 = vadd.f32 1.0, %v3715_v41  ;;  %vm3719_vm3 = vcmp.lt.f32.partialorder %v3718_v38, 0.0004427343 }
 0x4c6   : > { %v3711_v50 = vsel %vm3710_vm2, %v3708_v63, %v3705_v27 }
 0x4c7   : > { %v3430_v7 = vpop.f32.mrf.mxu1  ;;  %v3717_v58 = vmul.f32 %v5407_v14, %v3716_v62  ;;  %v3863_v42 = vsel %vm3479_vm5, %v7914_v49, %v3711_v50 }
 0x4c8   : > { %v7926_v3 = vadd.f32 %v3430_v7, %v7568_v57 }
 0x4ca   : > { %v5411_v19 = vpop.eup %5410  ;;  %v3533_v28 = vmul.f32 1.442695, %v7926_v3  ;;  %vm3482_vm9 = vcmp.gt.f32.partialorder %v7926_v3, 20.0 }
 0x4cb   : > { %v5413_v12 = vpop.eup %5412  ;;  %v3721_v25 = vadd.f32 1.0, %v5411_v19  ;;  %v3724_v52 = vmul.f32 -0.5, %v5411_v19  ;;  %v3727_v35 = vand.u32 2147483647, %v5411_v19 }
 0x4cc   : > { %5414 = vpow2.f32 %v3533_v28  ;;  %v3714_v36 = vmul.f32 0.6931472, %v5413_v12 }
 0x4cd   : > { %5416 = vlog2.f32 %v3721_v25  ;;  %v3725_v47 = vadd.f32 1.0, %v3724_v52  ;;  %vm7946_vm6 = vcmp.lt.f32.partialorder %v3727_v35, 0.0004427343 }
 0x4ce   : > { %v3720_v10 = vsel %vm3719_vm3, %v3717_v58, %v3714_v36 }
 0x4cf   : > { %v3864_v61 = vsel %vm3480_vm4, %v3426_v59, %v3720_v10  ;;  %v3726_v43 = vmul.f32 %v5411_v19, %v3725_v47 }
 0x4d0   : > { %v3904_v39 = vpack.c.bf16 %v3864_v61, %v3863_v42 }
 0x4d1   : > { %v3433_v54 = vpop.f32.mrf.mxu1 }
 0x4d2   : > { %v7937_v20 = vadd.f32 %v3433_v54, %v7568_v57  ;;  %v5415_v1 = vpop.eup %5414 }
 0x4d3   : > { %v3730_v23 = vadd.f32 1.0, %v5415_v1  ;;  %v3733_v49 = vmul.f32 -0.5, %v5415_v1  ;;  %v5417_v46 = vpop.eup %5416  ;;  %v3736_v59 = vand.u32 2147483647, %v5415_v1 }
 0x4d4   : > { %v3535_v16 = vmul.f32 1.442695, %v7937_v20  ;;  %v3970_v53 = vpop.f32.mrf.mxu2  ;;  %4009 = vmatmul.bf16.gmra.mxu2 %v3904_v39  ;;  %v3723_v60 = vmul.f32 0.6931472, %v5417_v46  ;;  %vm3483_vm13 = vcmp.gt.f32.partialorder %v7937_v20, 20.0 }
 0x4d5   : > { %v3971_v24 = vadd.f32 %v3970_v53, %v7934_v56  ;;  %v3734_v33 = vadd.f32 1.0, %v3733_v49  ;;  %vm3737_vm7 = vcmp.lt.f32.partialorder %v3736_v59, 0.0004427343 }
 0x4d6   : > { %5418 = vpow2.f32 %v3535_v16  ;;  %v3729_v2 = vsel %vm7946_vm6, %v3726_v43, %v3723_v60 }
 0x4d7   : > { %v4050_v17 = vsub.f32 0.0, %v3971_v24  ;;  %5420 = vlog2.f32 %v3730_v23  ;;  %v3735_v34 = vmul.f32 %v5415_v1, %v3734_v33  ;;  %v3865_v14 = vsel %vm3481_vm8, %v7921_v40, %v3729_v2 }
 0x4d9   : > { %v4082_v31 = vmul.f32 1.442695, %v4050_v17  ;;  %v3435_v37 = vpop.f32.mrf.mxu1 }
 0x4da   : > { %v7942_v4 = vadd.f32 %v3435_v37, %v7568_v57 }
 0x4db   : > { %5422 = vpow2.f32 %v4082_v31 }
 0x4dc   : > { %v5419_v51 = vpop.eup %5418  ;;  %v3537_v6 = vmul.f32 1.442695, %v7942_v4  ;;  %v3972_v55 = vpop.f32.mrf.mxu2  ;;  %vm3484_vm14 = vcmp.gt.f32.partialorder %v7942_v4, 20.0 }
 0x4dd   : > { %v5421_v22 = vpop.eup %5420  ;;  %v3973_v18 = vadd.f32 %v3972_v55, %v7934_v56  ;;  %v3739_v26 = vadd.f32 1.0, %v5419_v51  ;;  %v3742_v8 = vmul.f32 -0.5, %v5419_v51 }
 0x4de   : > { %5424 = vpow2.f32 %v3537_v6  ;;  %v3732_v15 = vmul.f32 0.6931472, %v5421_v22 }
 0x4df   : > { %v4051_v0 = vsub.f32 0.0, %v3973_v18  ;;  %5426 = vlog2.f32 %v3739_v26  ;;  %v3743_v40 = vadd.f32 1.0, %v3742_v8 }
 0x4e0   : > { %v3738_v45 = vsel %vm3737_vm7, %v3735_v34, %v3732_v15 }
 0x4e1   : > { %v5423_v32 = vpop.eup %5422  ;;  %v4084_v44 = vmul.f32 1.442695, %v4051_v0  ;;  %v3438_v5 = vpop.f32.mrf.mxu1  ;;  %v3866_v11 = vsel %vm3482_vm9, %v7926_v3, %v3738_v45  ;;  %v3745_v3 = vand.u32 2147483647, %v5419_v51  ;;  %v3744_v10 = vmul.f32 %v5419_v51, %v3743_v40 }
 0x4e2   : > { %v4146_v30 = vadd.f32 1.0, %v5423_v32  ;;  %v7957_v29 = vadd.f32 %v3438_v5, %v7568_v57  ;;  %v3905_v41 = vpack.c.bf16 %v3866_v11, %v3865_v14 }
 0x4e3   : > { %5428 = vpow2.f32 %v4084_v44  ;;  %vm7974_vm11 = vcmp.lt.f32.partialorder %v3745_v3, 0.0004427343 }
 0x4e4   : > { %v5425_v7 = vpop.eup %5424  ;;  %5430 = vrcp.f32 %v4146_v30  ;;  %v3539_v21 = vmul.f32 1.442695, %v7957_v29  ;;  %4014 = vmatmul.bf16.gmra.mxu2 %v3905_v41  ;;  %vm3485_vm1 = vcmp.gt.f32.partialorder %v7957_v29, 20.0 }
 0x4e5   : > { %v3748_v48 = vadd.f32 1.0, %v5425_v7  ;;  %v5427_v62 = vpop.eup %5426  ;;  %v3751_v27 = vmul.f32 -0.5, %v5425_v7  ;;  %v3754_v61 = vand.u32 2147483647, %v5425_v7 }
 0x4e6   : > { %5432 = vpow2.f32 %v3539_v21  ;;  %v3741_v12 = vmul.f32 0.6931472, %v5427_v62 }
 0x4e7   : > { %5434 = vlog2.f32 %v3748_v48  ;;  %v3975_v19 = vpop.f32.mrf.mxu2  ;;  %v3752_v50 = vadd.f32 1.0, %v3751_v27  ;;  %vm3755_vm12 = vcmp.lt.f32.partialorder %v3754_v61, 0.0004427343 }
 0x4e8   : > { %v3976_v58 = vadd.f32 %v3975_v19, %v7934_v56  ;;  %v3747_v16 = vsel %vm7974_vm11, %v3744_v10, %v3741_v12 }
 0x4e9   : > { %v5429_v38 = vpop.eup %5428  ;;  %v3440_v28 = vpop.f32.mrf.mxu1  ;;  %v3753_v24 = vmul.f32 %v5425_v7, %v3752_v50  ;;  %v3867_v47 = vsel %vm3483_vm13, %v7937_v20, %v3747_v16 }
 0x4ea   : > { %v5431_v63 = vpop.eup %5430  ;;  %v4147_v36 = vadd.f32 1.0, %v5429_v38  ;;  %v7969_v25 = vadd.f32 %v3440_v28, %v7568_v57  ;;  %v4052_v42 = vsub.f32 0.0, %v3976_v58 }
 0x4eb   : > { %4211 = vst.msk [vmem:[%s7965_s27] sm:$0xff] %vm4210_vm10, %v5431_v63 }
 0x4ec   : > { %v5433_v54 = vpop.eup %5432  ;;  %5436 = vrcp.f32 %v4147_v36  ;;  %v3541_v9 = vmul.f32 1.442695, %v7969_v25  ;;  %v4086_v52 = vmul.f32 1.442695, %v4052_v42  ;;  %vm3486_vm2 = vcmp.gt.f32.partialorder %v7969_v25, 20.0 }
 0x4ed   : > { %v5435_v1 = vpop.eup %5434  ;;  %v3757_v53 = vadd.f32 1.0, %v5433_v54  ;;  %v3760_v59 = vmul.f32 -0.5, %v5433_v54  ;;  %v3763_v2 = vand.u32 2147483647, %v5433_v54 }
 0x4ee   : > { %5438 = vpow2.f32 %v3541_v9  ;;  %v3750_v23 = vmul.f32 0.6931472, %v5435_v1 }
 0x4ef   : > { %5440 = vlog2.f32 %v3757_v53  ;;  %v3977_v46 = vpop.f32.mrf.mxu2  ;;  %v3761_v26 = vadd.f32 1.0, %v3760_v59  ;;  %vm7996_vm15 = vcmp.lt.f32.partialorder %v3763_v2, 0.0004427343 }
 0x4f0   : > { %5442 = vpow2.f32 %v4086_v52  ;;  %v3756_v49 = vsel %vm3755_vm12, %v3753_v24, %v3750_v23  ;;  %v3978_v35 = vadd.f32 %v3977_v46, %v7934_v56 }
 0x4f1   : > { %v3443_v17 = vpop.f32.mrf.mxu1  ;;  %v3868_v31 = vsel %vm3484_vm14, %v7942_v4, %v3756_v49  ;;  %v3762_v5 = vmul.f32 %v5433_v54, %v3761_v26 }
 0x4f2   : > { %v5437_v37 = vpop.eup %5436  ;;  %v7986_v60 = vadd.f32 %v3443_v17, %v7568_v57  ;;  %v3906_v33 = vpack.c.bf16 %v3868_v31, %v3867_v47  ;;  %v4053_v6 = vsub.f32 0.0, %v3978_v35 }
 0x4f3   : > { %4212 = vst.msk [vmem:[%s7965_s27 + $0x8] sm:$0xff] %vm4210_vm10, %v5437_v37 }
 0x4f4   : > { %v5439_v51 = vpop.eup %5438  ;;  %v3543_v55 = vmul.f32 1.442695, %v7986_v60  ;;  %v4088_v20 = vmul.f32 1.442695, %v4053_v6  ;;  %4019 = vmatmul.bf16.gmra.mxu2 %v3906_v33  ;;  %vm3487_vm5 = vcmp.gt.f32.partialorder %v7986_v60, 20.0 }
 0x4f5   : > { %v5441_v43 = vpop.eup %5440  ;;  %v3766_v22 = vadd.f32 1.0, %v5439_v51  ;;  %v3769_v4 = vmul.f32 -0.5, %v5439_v51  ;;  %v3772_v14 = vand.u32 2147483647, %v5439_v51 }
 0x4f6   : > { %v5443_v18 = vpop.eup %5442  ;;  %5444 = vpow2.f32 %v3543_v55  ;;  %v3759_v0 = vmul.f32 0.6931472, %v5441_v43 }
 0x4f7   : > { %v4148_v13 = vadd.f32 1.0, %v5443_v18  ;;  %5446 = vlog2.f32 %v3766_v22  ;;  %v3980_v15 = vpop.f32.mrf.mxu2  ;;  %v3770_v44 = vadd.f32 1.0, %v3769_v4  ;;  %vm3773_vm0 = vcmp.lt.f32.partialorder %v3772_v14, 0.0004427343 }
 0x4f8   : > { %5448 = vpow2.f32 %v4088_v20  ;;  %v3981_v45 = vadd.f32 %v3980_v15, %v7934_v56  ;;  %v3765_v21 = vsel %vm7996_vm15, %v3762_v5, %v3759_v0 }
 0x4f9   : > { %5450 = vrcp.f32 %v4148_v13  ;;  %v3445_v34 = vpop.f32.mrf.mxu1  ;;  %v3771_v3 = vmul.f32 %v5439_v51, %v3770_v44  ;;  %v3869_v36 = vsel %vm3485_vm1, %v7957_v29, %v3765_v21 }
 0x4fa   : > { %v7993_v32 = vadd.f32 %v3445_v34, %v7568_v57  ;;  %v4054_v30 = vsub.f32 0.0, %v3981_v45 }
 0x4fc   : > { %v5445_v11 = vpop.eup %5444  ;;  %v3545_v41 = vmul.f32 1.442695, %v7993_v32  ;;  %v4090_v27 = vmul.f32 1.442695, %v4054_v30  ;;  %vm3488_vm6 = vcmp.gt.f32.partialorder %v7993_v32, 20.0 }
 0x4fd   : > { %v5447_v7 = vpop.eup %5446  ;;  %v3775_v48 = vadd.f32 1.0, %v5445_v11  ;;  %v3778_v54 = vmul.f32 -0.5, %v5445_v11  ;;  %v3781_v49 = vand.u32 2147483647, %v5445_v11 }
 0x4fe   : > { %v5449_v62 = vpop.eup %5448  ;;  %5452 = vpow2.f32 %v3545_v41  ;;  %v3768_v40 = vmul.f32 0.6931472, %v5447_v7 }
 0x4ff   : > { %v5451_v38 = vpop.eup %5450  ;;  %v4149_v19 = vadd.f32 1.0, %v5449_v62  ;;  %5454 = vlog2.f32 %v3775_v48  ;;  %v3982_v12 = vpop.f32.mrf.mxu2  ;;  %v3779_v24 = vadd.f32 1.0, %v3778_v54  ;;  %vm8020_vm3 = vcmp.lt.f32.partialorder %v3781_v49, 0.0004427343 }
 0x500   : > { %4213 = vst.msk [vmem:[%s7965_s27 + $0x10] sm:$0xff] %vm4210_vm10, %v5451_v38  ;;  %5456 = vpow2.f32 %v4090_v27  ;;  %v3774_v28 = vsel %vm3773_vm0, %v3771_v3, %v3768_v40  ;;  %v3983_v50 = vadd.f32 %v3982_v12, %v7934_v56 }
 0x501   : > { %5458 = vrcp.f32 %v4149_v19  ;;  %v3448_v63 = vpop.f32.mrf.mxu1  ;;  %v3870_v58 = vsel %vm3486_vm2, %v7969_v25, %v3774_v28  ;;  %v3780_v33 = vmul.f32 %v5445_v11, %v3779_v24 }
 0x502   : > { %v8010_v10 = vadd.f32 %v3448_v63, %v7568_v57  ;;  %v3907_v61 = vpack.c.bf16 %v3870_v58, %v3869_v36  ;;  %v4055_v9 = vsub.f32 0.0, %v3983_v50 }
 0x504   : > { %v5453_v42 = vpop.eup %5452  ;;  %v3547_v39 = vmul.f32 1.442695, %v8010_v10  ;;  %v4092_v52 = vmul.f32 1.442695, %v4055_v9  ;;  %4024 = vmatmul.bf16.gmra.mxu2 %v3907_v61  ;;  %vm3489_vm9 = vcmp.gt.f32.partialorder %v8010_v10, 20.0 }
 0x505   : > { %v5455_v1 = vpop.eup %5454  ;;  %v3784_v16 = vadd.f32 1.0, %v5453_v42  ;;  %v3787_v29 = vmul.f32 -0.5, %v5453_v42  ;;  %v3790_v59 = vand.u32 2147483647, %v5453_v42 }
 0x506   : > { %v5457_v53 = vpop.eup %5456  ;;  %5460 = vpow2.f32 %v3547_v39  ;;  %v3777_v47 = vmul.f32 0.6931472, %v5455_v1 }
 0x507   : > { %v5459_v25 = vpop.eup %5458  ;;  %v4150_v23 = vadd.f32 1.0, %v5457_v53  ;;  %5462 = vlog2.f32 %v3784_v16  ;;  %v3985_v46 = vpop.f32.mrf.mxu2  ;;  %v3788_v35 = vadd.f32 1.0, %v3787_v29  ;;  %vm3791_vm4 = vcmp.lt.f32.partialorder %v3790_v59, 0.0004427343 }
 0x508   : > { %4214 = vst.msk [vmem:[%s7965_s27 + $0x18] sm:$0xff] %vm4210_vm10, %v5459_v25  ;;  %5464 = vpow2.f32 %v4092_v52  ;;  %v3986_v31 = vadd.f32 %v3985_v46, %v7934_v56  ;;  %v3783_v18 = vsel %vm8020_vm3, %v3780_v33, %v3777_v47 }
 0x509   : > { %5466 = vrcp.f32 %v4150_v23  ;;  %v3450_v17 = vpop.f32.mrf.mxu1  ;;  %v3789_v2 = vmul.f32 %v5453_v42, %v3788_v35  ;;  %v3871_v5 = vsel %vm3487_vm5, %v7986_v60, %v3783_v18 }
 0x50a   : > { %v8017_v37 = vadd.f32 %v3450_v17, %v7568_v57  ;;  %v4056_v6 = vsub.f32 0.0, %v3986_v31 }
 0x50c   : > { %v5461_v51 = vpop.eup %5460  ;;  %v3549_v55 = vmul.f32 1.442695, %v8017_v37  ;;  %v4094_v13 = vmul.f32 1.442695, %v4056_v6  ;;  %vm3490_vm11 = vcmp.gt.f32.partialorder %v8017_v37, 20.0 }
 0x50d   : > { %v5463_v22 = vpop.eup %5462  ;;  %v3793_v20 = vadd.f32 1.0, %v5461_v51  ;;  %v3796_v8 = vmul.f32 -0.5, %v5461_v51  ;;  %v3799_v28 = vand.u32 2147483647, %v5461_v51 }
 0x50e   : > { %v5465_v4 = vpop.eup %5464  ;;  %5468 = vpow2.f32 %v3549_v55  ;;  %v3786_v26 = vmul.f32 0.6931472, %v5463_v22 }
 0x50f   : > { %v5467_v15 = vpop.eup %5466  ;;  %v4151_v34 = vadd.f32 1.0, %v5465_v4  ;;  %5470 = vlog2.f32 %v3793_v20  ;;  %v3987_v45 = vpop.f32.mrf.mxu2  ;;  %v3797_v19 = vadd.f32 1.0, %v3796_v8  ;;  %vm8044_vm7 = vcmp.lt.f32.partialorder %v3799_v28, 0.0004427343 }
 0x510   : > { %4215 = vst.msk [vmem:[%s7965_s27 + $0x20] sm:$0xff] %vm4210_vm10, %v5467_v15  ;;  %5472 = vpow2.f32 %v4094_v13  ;;  %v3792_v0 = vsel %vm3791_vm4, %v3789_v2, %v3786_v26  ;;  %v3988_v11 = vadd.f32 %v3987_v45, %v7934_v56 }
 0x511   : > { %5474 = vrcp.f32 %v4151_v34  ;;  %v3453_v44 = vpop.f32.mrf.mxu1  ;;  %v3872_v14 = vsel %vm3488_vm6, %v7993_v32, %v3792_v0  ;;  %v3798_v54 = vmul.f32 %v5461_v51, %v3797_v19 }
 0x512   : > { %v8034_v30 = vadd.f32 %v3453_v44, %v7568_v57  ;;  %v3908_v41 = vpack.c.bf16 %v3872_v14, %v3871_v5  ;;  %v4057_v21 = vsub.f32 0.0, %v3988_v11 }
 0x514   : > { %v5469_v7 = vpop.eup %5468  ;;  %v3551_v48 = vmul.f32 1.442695, %v8034_v30  ;;  %v4096_v3 = vmul.f32 1.442695, %v4057_v21  ;;  %4029 = vmatmul.bf16.gmra.mxu2 %v3908_v41  ;;  %vm3491_vm14 = vcmp.gt.f32.partialorder %v8034_v30, 20.0 }
 0x515   : > { %v5471_v62 = vpop.eup %5470  ;;  %v3802_v27 = vadd.f32 1.0, %v5469_v7  ;;  %v3805_v60 = vmul.f32 -0.5, %v5469_v7  ;;  %v3808_v42 = vand.u32 2147483647, %v5469_v7 }
 0x516   : > { %v5473_v40 = vpop.eup %5472  ;;  %5476 = vpow2.f32 %v3551_v48  ;;  %v3795_v36 = vmul.f32 0.6931472, %v5471_v62 }
 0x517   : > { %v5475_v32 = vpop.eup %5474  ;;  %v4152_v38 = vadd.f32 1.0, %v5473_v40  ;;  %5478 = vlog2.f32 %v3802_v27  ;;  %v3990_v12 = vpop.f32.mrf.mxu2  ;;  %v3806_v61 = vadd.f32 1.0, %v3805_v60  ;;  %vm3809_vm8 = vcmp.lt.f32.partialorder %v3808_v42, 0.0004427343 }
 0x518   : > { %4216 = vst.msk [vmem:[%s7965_s27 + $0x28] sm:$0xff] %vm4210_vm10, %v5475_v32  ;;  %5480 = vpow2.f32 %v4096_v3  ;;  %v3991_v58 = vadd.f32 %v3990_v12, %v7934_v56  ;;  %v3801_v52 = vsel %vm8044_vm7, %v3798_v54, %v3795_v36 }
 0x519   : > { %5482 = vrcp.f32 %v4152_v38  ;;  %v3455_v63 = vpop.f32.mrf.mxu1  ;;  %v3807_v49 = vmul.f32 %v5469_v7, %v3806_v61  ;;  %v3873_v33 = vsel %vm3489_vm9, %v8010_v10, %v3801_v52 }
 0x51a   : > { %v8041_v50 = vadd.f32 %v3455_v63, %v7568_v57  ;;  %v4058_v39 = vsub.f32 0.0, %v3991_v58 }
 0x51c   : > { %v5477_v9 = vpop.eup %5476  ;;  %v3553_v1 = vmul.f32 1.442695, %v8041_v50  ;;  %v4098_v23 = vmul.f32 1.442695, %v4058_v39  ;;  %vm3492_vm15 = vcmp.gt.f32.partialorder %v8041_v50, 20.0 }
 0x51d   : > { %v5479_v53 = vpop.eup %5478  ;;  %v3811_v29 = vadd.f32 1.0, %v5477_v9  ;;  %v3814_v43 = vmul.f32 -0.5, %v5477_v9  ;;  %v3817_v0 = vand.u32 2147483647, %v5477_v9 }
 0x51e   : > { %v5481_v25 = vpop.eup %5480  ;;  %5484 = vpow2.f32 %v3553_v1  ;;  %v3804_v24 = vmul.f32 0.6931472, %v5479_v53 }
 0x51f   : > { %v5483_v46 = vpop.eup %5482  ;;  %v4153_v17 = vadd.f32 1.0, %v5481_v25  ;;  %5486 = vlog2.f32 %v3811_v29  ;;  %v3992_v31 = vpop.f32.mrf.mxu2  ;;  %v3815_v34 = vadd.f32 1.0, %v3814_v43  ;;  %vm8068_vm12 = vcmp.lt.f32.partialorder %v3817_v0, 0.0004427343 }
 0x520   : > { %4217 = vst.msk [vmem:[%s7965_s27 + $0x30] sm:$0xff] %vm4210_vm10, %v5483_v46  ;;  %5488 = vpow2.f32 %v4098_v23  ;;  %v3810_v47 = vsel %vm3809_vm8, %v3807_v49, %v3804_v24  ;;  %v3993_v51 = vadd.f32 %v3992_v31, %v7934_v56 }
 0x521   : > { %5490 = vrcp.f32 %v4153_v17  ;;  %v3458_v35 = vpop.f32.mrf.mxu1  ;;  %v3874_v59 = vsel %vm3490_vm11, %v8017_v37, %v3810_v47  ;;  %v3816_v8 = vmul.f32 %v5477_v9, %v3815_v34 }
 0x522   : > { %v8058_v6 = vadd.f32 %v3458_v35, %v7568_v57  ;;  %v3909_v55 = vpack.c.bf16 %v3874_v59, %v3873_v33  ;;  %v4059_v18 = vsub.f32 0.0, %v3993_v51 }
 0x524   : > { %v5485_v22 = vpop.eup %5484  ;;  %v3555_v20 = vmul.f32 1.442695, %v8058_v6  ;;  %v4100_v2 = vmul.f32 1.442695, %v4059_v18  ;;  %4034 = vmatmul.bf16.gmra.mxu2 %v3909_v55  ;;  %vm3493_vm2 = vcmp.gt.f32.partialorder %v8058_v6, 20.0 }
 0x525   : > { %v5487_v4 = vpop.eup %5486  ;;  %v3820_v13 = vadd.f32 1.0, %v5485_v22  ;;  %v3823_v10 = vmul.f32 -0.5, %v5485_v22  ;;  %v3826_v7 = vand.u32 2147483647, %v5485_v22 }
 0x526   : > { %v5489_v26 = vpop.eup %5488  ;;  %5492 = vpow2.f32 %v3555_v20  ;;  %v3813_v5 = vmul.f32 0.6931472, %v5487_v4 }
 0x527   : > { %v5491_v37 = vpop.eup %5490  ;;  %v4154_v15 = vadd.f32 1.0, %v5489_v26  ;;  %5494 = vlog2.f32 %v3820_v13  ;;  %v3995_v45 = vpop.f32.mrf.mxu2  ;;  %v3824_v41 = vadd.f32 1.0, %v3823_v10  ;;  %vm3827_vm13 = vcmp.lt.f32.partialorder %v3826_v7, 0.0004427343 }
 0x528   : > { %4218 = vst.msk [vmem:[%s7965_s27 + $0x38] sm:$0xff] %vm4210_vm10, %v5491_v37  ;;  %5496 = vpow2.f32 %v4100_v2  ;;  %v3996_v14 = vadd.f32 %v3995_v45, %v7934_v56  ;;  %v3819_v3 = vsel %vm8068_vm12, %v3816_v8, %v3813_v5 }
 0x529   : > { %5498 = vrcp.f32 %v4154_v15  ;;  %v3460_v44 = vpop.f32.mrf.mxu1  ;;  %v3825_v19 = vmul.f32 %v5485_v22, %v3824_v41  ;;  %v3875_v58 = vsel %vm3491_vm14, %v8034_v30, %v3819_v3 }
 0x52a   : > { %v8065_v11 = vadd.f32 %v3460_v44, %v7568_v57  ;;  %v4060_v48 = vsub.f32 0.0, %v3996_v14 }
 0x52c   : > { %v5493_v21 = vpop.eup %5492  ;;  %v3557_v62 = vmul.f32 1.442695, %v8065_v11  ;;  %v4102_v57 = vmul.f32 1.442695, %v4060_v48  ;;  %vm3494_vm3 = vcmp.gt.f32.partialorder %v8065_v11, 20.0 }
 0x52d   : > { %v5495_v40 = vpop.eup %5494  ;;  %v3829_v60 = vadd.f32 1.0, %v5493_v21  ;;  %v3832_v1 = vmul.f32 -0.5, %v5493_v21  ;;  %v3835_v49 = vand.u32 2147483647, %v5493_v21 }
 0x52e   : > { %v5497_v32 = vpop.eup %5496  ;;  %5500 = vpow2.f32 %v3557_v62  ;;  %v3822_v38 = vmul.f32 0.6931472, %v5495_v40 }
 0x52f   : > { %v5499_v28 = vpop.eup %5498  ;;  %v4155_v12 = vadd.f32 1.0, %v5497_v32  ;;  %5502 = vlog2.f32 %v3829_v60  ;;  %v3997_v36 = vpop.f32.mrf.mxu2  ;;  %v3833_v30 = vadd.f32 1.0, %v3832_v1  ;;  %vm8084_vm0 = vcmp.lt.f32.partialorder %v3835_v49, 0.0004427343 }
 0x530   : > { %4219 = vst.msk [vmem:[%s7965_s27 + $0x40] sm:$0xff] %vm4210_vm10, %v5499_v28  ;;  %5504 = vpow2.f32 %v4102_v57  ;;  %v3828_v63 = vsel %vm3827_vm13, %v3825_v19, %v3822_v38  ;;  %v3998_v54 = vadd.f32 %v3997_v36, %v7934_v56 }
 0x531   : > { %5506 = vrcp.f32 %v4155_v12  ;;  %v3876_v61 = vsel %vm3492_vm15, %v8041_v50, %v3828_v63  ;;  %v3834_v33 = vmul.f32 %v5493_v21, %v3833_v30 }
 0x532   : > { %v3910_v42 = vpack.c.bf16 %v3876_v61, %v3875_v58  ;;  %v4061_v39 = vsub.f32 0.0, %v3998_v54 }
 0x534   : > { %v5501_v9 = vpop.eup %5500  ;;  %v4104_v29 = vmul.f32 1.442695, %v4061_v39  ;;  %4039 = vmatmul.bf16.gmra.mxu2 %v3910_v42 }
 0x535   : > { %v5503_v16 = vpop.eup %5502  ;;  %v3838_v53 = vadd.f32 1.0, %v5501_v9  ;;  %v3841_v25 = vmul.f32 -0.5, %v5501_v9  ;;  %v3844_v31 = vand.u32 2147483647, %v5501_v9 }
 0x536   : > { %v5505_v52 = vpop.eup %5504  ;;  %v3831_v17 = vmul.f32 0.6931472, %v5503_v16 }
 0x537   : > { %v5507_v23 = vpop.eup %5506  ;;  %v4156_v24 = vadd.f32 1.0, %v5505_v52  ;;  %5508 = vlog2.f32 %v3838_v53  ;;  %v4000_v50 = vpop.f32.mrf.mxu2  ;;  %v3842_v47 = vadd.f32 1.0, %v3841_v25  ;;  %vm3845_vm1 = vcmp.lt.f32.partialorder %v3844_v31, 0.0004427343 }
 0x538   : > { %4220 = vst.msk [vmem:[%s7965_s27 + $0x48] sm:$0xff] %vm4210_vm10, %v5507_v23  ;;  %5510 = vpow2.f32 %v4104_v29  ;;  %v4001_v46 = vadd.f32 %v4000_v50, %v7934_v56  ;;  %v3837_v22 = vsel %vm8084_vm0, %v3834_v33, %v3831_v17 }
 0x539   : > { %5512 = vrcp.f32 %v4156_v24  ;;  %v3843_v20 = vmul.f32 %v5501_v9, %v3842_v47  ;;  %v3877_v10 = vsel %vm3493_vm2, %v8058_v6, %v3837_v22 }
 0x53a   : > { %v4062_v35 = vsub.f32 0.0, %v4001_v46 }
 0x53c   : > { %v4106_v43 = vmul.f32 1.442695, %v4062_v35 }
 0x53d   : > { %v5509_v59 = vpop.eup %5508 }
 0x53e   : > { %v5511_v55 = vpop.eup %5510  ;;  %v3840_v18 = vmul.f32 0.6931472, %v5509_v59  ;;  %5514 = vpow2.f32 %v4106_v43 }
 0x53f   : > { %v5513_v4 = vpop.eup %5512  ;;  %v4157_v13 = vadd.f32 1.0, %v5511_v55  ;;  %v4002_v2 = vpop.f32.mrf.mxu2 }
 0x540   : > { %4221 = vst.msk [vmem:[%s7965_s27 + $0x50] sm:$0xff] %vm4210_vm10, %v5513_v4  ;;  %v3846_v26 = vsel %vm3845_vm1, %v3843_v20, %v3840_v18  ;;  %v4003_v15 = vadd.f32 %v4002_v2, %v7934_v56 }
 0x541   : > { %5516 = vrcp.f32 %v4157_v13  ;;  %v3878_v37 = vsel %vm3494_vm3, %v8065_v11, %v3846_v26 }
 0x542   : > { %v3911_v34 = vpack.c.bf16 %v3878_v37, %v3877_v10  ;;  %v4063_v0 = vsub.f32 0.0, %v4003_v15 }
 0x544   : > { %v5515_v45 = vpop.eup %5514  ;;  %v4108_v44 = vmul.f32 1.442695, %v4063_v0  ;;  %4044 = vmatmul.bf16.gmra.mxu2 %v3911_v34 }
 0x545   : > { %v4158_v14 = vadd.f32 1.0, %v5515_v45 }
 0x546   : > { %5518 = vpow2.f32 %v4108_v44 }
 0x547   : > { %v5517_v5 = vpop.eup %5516  ;;  %5520 = vrcp.f32 %v4158_v14  ;;  %v4005_v41 = vpop.f32.mrf.mxu2 }
 0x548   : > { %4222 = vst.msk [vmem:[%s7965_s27 + $0x58] sm:$0xff] %vm4210_vm10, %v5517_v5  ;;  %v4006_v8 = vadd.f32 %v4005_v41, %v7934_v56 }
 0x54a   : > { %v4064_v6 = vsub.f32 0.0, %v4006_v8 }
 0x54c   : > { %v5519_v11 = vpop.eup %5518  ;;  %v4110_v7 = vmul.f32 1.442695, %v4064_v6 }
 0x54d   : > { %v5521_v21 = vpop.eup %5520  ;;  %v4159_v48 = vadd.f32 1.0, %v5519_v11 }
 0x54e   : > { %4223 = vst.msk [vmem:[%s7965_s27 + $0x60] sm:$0xff] %vm4210_vm10, %v5521_v21  ;;  %5522 = vpow2.f32 %v4110_v7 }
 0x54f   : > { %5524 = vrcp.f32 %v4159_v48  ;;  %v4007_v62 = vpop.f32.mrf.mxu2 }
 0x550   : > { %v4008_v27 = vadd.f32 %v4007_v62, %v7934_v56 }
 0x552   : > { %v4065_v40 = vsub.f32 0.0, %v4008_v27 }
 0x554   : > { %v5523_v3 = vpop.eup %5522  ;;  %v4112_v60 = vmul.f32 1.442695, %v4065_v40 }
 0x555   : > { %v5525_v32 = vpop.eup %5524  ;;  %v4160_v57 = vadd.f32 1.0, %v5523_v3 }
 0x556   : > { %4224 = vst.msk [vmem:[%s7965_s27 + $0x68] sm:$0xff] %vm4210_vm10, %v5525_v32  ;;  %5526 = vpow2.f32 %v4112_v60 }
 0x557   : > { %5528 = vrcp.f32 %v4160_v57  ;;  %v4010_v38 = vpop.f32.mrf.mxu2 }
 0x558   : > { %v4011_v19 = vadd.f32 %v4010_v38, %v7934_v56 }
 0x55a   : > { %v4066_v28 = vsub.f32 0.0, %v4011_v19 }
 0x55c   : > { %v5527_v12 = vpop.eup %5526  ;;  %v4114_v63 = vmul.f32 1.442695, %v4066_v28 }
 0x55d   : > { %v5529_v36 = vpop.eup %5528  ;;  %v4161_v58 = vadd.f32 1.0, %v5527_v12 }
 0x55e   : > { %4225 = vst.msk [vmem:[%s7965_s27 + $0x70] sm:$0xff] %vm4210_vm10, %v5529_v36  ;;  %5530 = vpow2.f32 %v4114_v63 }
 0x55f   : > { %5532 = vrcp.f32 %v4161_v58  ;;  %v4012_v61 = vpop.f32.mrf.mxu2 }
 0x560   : > { %v4013_v54 = vadd.f32 %v4012_v61, %v7934_v56 }
 0x562   : > { %v4067_v42 = vsub.f32 0.0, %v4013_v54 }
 0x564   : > { %v5531_v9 = vpop.eup %5530  ;;  %v4116_v39 = vmul.f32 1.442695, %v4067_v42 }
 0x565   : > { %v5533_v1 = vpop.eup %5532  ;;  %v4162_v16 = vadd.f32 1.0, %v5531_v9 }
 0x566   : > { %4226 = vst.msk [vmem:[%s7965_s27 + $0x78] sm:$0xff] %vm4210_vm10, %v5533_v1  ;;  %5534 = vpow2.f32 %v4116_v39 }
 0x567   : > { %5536 = vrcp.f32 %v4162_v16  ;;  %v4015_v53 = vpop.f32.mrf.mxu2 }
 0x568   : > { %v4016_v52 = vadd.f32 %v4015_v53, %v7934_v56 }
 0x56a   : > { %v4068_v29 = vsub.f32 0.0, %v4016_v52 }
 0x56c   : > { %v5535_v25 = vpop.eup %5534  ;;  %v4118_v23 = vmul.f32 1.442695, %v4068_v29 }
 0x56d   : > { %v5537_v24 = vpop.eup %5536  ;;  %v4163_v30 = vadd.f32 1.0, %v5535_v25 }
 0x56e   : > { %4227 = vst.msk [vmem:[%s7965_s27 + $0x80] sm:$0xff] %vm4210_vm10, %v5537_v24  ;;  %5538 = vpow2.f32 %v4118_v23 }
 0x56f   : > { %5540 = vrcp.f32 %v4163_v30  ;;  %v4017_v50 = vpop.f32.mrf.mxu2 }
 0x570   : > { %v4018_v49 = vadd.f32 %v4017_v50, %v7934_v56 }
 0x572   : > { %v4069_v46 = vsub.f32 0.0, %v4018_v49 }
 0x574   : > { %v5539_v17 = vpop.eup %5538  ;;  %v4120_v47 = vmul.f32 1.442695, %v4069_v46 }
 0x575   : > { %v5541_v31 = vpop.eup %5540  ;;  %v4164_v35 = vadd.f32 1.0, %v5539_v17 }
 0x576   : > { %4228 = vst.msk [vmem:[%s7965_s27 + $0x88] sm:$0xff] %vm4210_vm10, %v5541_v31  ;;  %5542 = vpow2.f32 %v4120_v47 }
 0x577   : > { %5544 = vrcp.f32 %v4164_v35  ;;  %v4020_v33 = vpop.f32.mrf.mxu2 }
 0x578   : > { %v4021_v59 = vadd.f32 %v4020_v33, %v7934_v56 }
 0x57a   : > { %v4070_v51 = vsub.f32 0.0, %v4021_v59 }
 0x57c   : > { %v5543_v55 = vpop.eup %5542  ;;  %v4122_v43 = vmul.f32 1.442695, %v4070_v51 }
 0x57d   : > { %v5545_v22 = vpop.eup %5544  ;;  %v4165_v18 = vadd.f32 1.0, %v5543_v55 }
 0x57e   : > { %4229 = vst.msk [vmem:[%s7965_s27 + $0x90] sm:$0xff] %vm4210_vm10, %v5545_v22  ;;  %5546 = vpow2.f32 %v4122_v43 }
 0x57f   : > { %5548 = vrcp.f32 %v4165_v18  ;;  %v4022_v20 = vpop.f32.mrf.mxu2 }
 0x580   : > { %v4023_v4 = vadd.f32 %v4022_v20, %v7934_v56 }
 0x582   : > { %v4071_v13 = vsub.f32 0.0, %v4023_v4 }
 0x584   : > { %v5547_v26 = vpop.eup %5546  ;;  %v4124_v2 = vmul.f32 1.442695, %v4071_v13 }
 0x585   : > { %v5549_v10 = vpop.eup %5548  ;;  %v4166_v37 = vadd.f32 1.0, %v5547_v26 }
 0x586   : > { %4230 = vst.msk [vmem:[%s7965_s27 + $0x98] sm:$0xff] %vm4210_vm10, %v5549_v10  ;;  %5550 = vpow2.f32 %v4124_v2 }
 0x587   : > { %5552 = vrcp.f32 %v4166_v37  ;;  %v4025_v15 = vpop.f32.mrf.mxu2 }
 0x588   : > { %v4026_v34 = vadd.f32 %v4025_v15, %v7934_v56 }
 0x58a   : > { %v4072_v0 = vsub.f32 0.0, %v4026_v34 }
 0x58c   : > { %v5551_v45 = vpop.eup %5550  ;;  %v4126_v44 = vmul.f32 1.442695, %v4072_v0 }
 0x58d   : > { %v5553_v5 = vpop.eup %5552  ;;  %v4167_v14 = vadd.f32 1.0, %v5551_v45 }
 0x58e   : > { %4231 = vst.msk [vmem:[%s7965_s27 + $0xa0] sm:$0xff] %vm4210_vm10, %v5553_v5  ;;  %5554 = vpow2.f32 %v4126_v44 }
 0x58f   : > { %5556 = vrcp.f32 %v4167_v14  ;;  %v4027_v41 = vpop.f32.mrf.mxu2 }
 0x590   : > { %v4028_v8 = vadd.f32 %v4027_v41, %v7934_v56 }
 0x592   : > { %v4073_v6 = vsub.f32 0.0, %v4028_v8 }
 0x594   : > { %v5555_v11 = vpop.eup %5554  ;;  %v4128_v7 = vmul.f32 1.442695, %v4073_v6 }
 0x595   : > { %v5557_v21 = vpop.eup %5556  ;;  %v4168_v48 = vadd.f32 1.0, %v5555_v11 }
 0x596   : > { %4232 = vst.msk [vmem:[%s7965_s27 + $0xa8] sm:$0xff] %vm4210_vm10, %v5557_v21  ;;  %5558 = vpow2.f32 %v4128_v7 }
 0x597   : > { %5560 = vrcp.f32 %v4168_v48  ;;  %v4030_v62 = vpop.f32.mrf.mxu2 }
 0x598   : > { %v4031_v27 = vadd.f32 %v4030_v62, %v7934_v56 }
 0x59a   : > { %v4074_v40 = vsub.f32 0.0, %v4031_v27 }
 0x59c   : > { %v5559_v3 = vpop.eup %5558  ;;  %v4130_v60 = vmul.f32 1.442695, %v4074_v40 }
 0x59d   : > { %v5561_v32 = vpop.eup %5560  ;;  %v4169_v57 = vadd.f32 1.0, %v5559_v3 }
 0x59e   : > { %4233 = vst.msk [vmem:[%s7965_s27 + $0xb0] sm:$0xff] %vm4210_vm10, %v5561_v32  ;;  %5562 = vpow2.f32 %v4130_v60 }
 0x59f   : > { %5564 = vrcp.f32 %v4169_v57  ;;  %v4032_v38 = vpop.f32.mrf.mxu2 }
 0x5a0   : > { %v4033_v19 = vadd.f32 %v4032_v38, %v7934_v56 }
 0x5a2   : > { %v4075_v28 = vsub.f32 0.0, %v4033_v19 }
 0x5a4   : > { %v5563_v12 = vpop.eup %5562  ;;  %v4132_v63 = vmul.f32 1.442695, %v4075_v28 }
 0x5a5   : > { %v5565_v36 = vpop.eup %5564  ;;  %v4170_v58 = vadd.f32 1.0, %v5563_v12 }
 0x5a6   : > { %4234 = vst.msk [vmem:[%s7965_s27 + $0xb8] sm:$0xff] %vm4210_vm10, %v5565_v36  ;;  %5566 = vpow2.f32 %v4132_v63 }
 0x5a7   : > { %5568 = vrcp.f32 %v4170_v58  ;;  %v4035_v61 = vpop.f32.mrf.mxu2 }
 0x5a8   : > { %v4036_v54 = vadd.f32 %v4035_v61, %v7934_v56 }
 0x5aa   : > { %v4076_v42 = vsub.f32 0.0, %v4036_v54 }
 0x5ac   : > { %v5567_v9 = vpop.eup %5566  ;;  %v4134_v39 = vmul.f32 1.442695, %v4076_v42 }
 0x5ad   : > { %v5569_v1 = vpop.eup %5568  ;;  %v4171_v16 = vadd.f32 1.0, %v5567_v9 }
 0x5ae   : > { %4235 = vst.msk [vmem:[%s7965_s27 + $0xc0] sm:$0xff] %vm4210_vm10, %v5569_v1  ;;  %5570 = vpow2.f32 %v4134_v39 }
 0x5af   : > { %5572 = vrcp.f32 %v4171_v16  ;;  %v4037_v53 = vpop.f32.mrf.mxu2 }
 0x5b0   : > { %v4038_v52 = vadd.f32 %v4037_v53, %v7934_v56 }
 0x5b2   : > { %v4077_v29 = vsub.f32 0.0, %v4038_v52 }
 0x5b4   : > { %v5571_v25 = vpop.eup %5570  ;;  %v4136_v23 = vmul.f32 1.442695, %v4077_v29 }
 0x5b5   : > { %v5573_v24 = vpop.eup %5572  ;;  %v4172_v30 = vadd.f32 1.0, %v5571_v25 }
 0x5b6   : > { %4236 = vst.msk [vmem:[%s7965_s27 + $0xc8] sm:$0xff] %vm4210_vm10, %v5573_v24  ;;  %5574 = vpow2.f32 %v4136_v23 }
 0x5b7   : > { %5576 = vrcp.f32 %v4172_v30  ;;  %v4040_v50 = vpop.f32.mrf.mxu2 }
 0x5b8   : > { %v4041_v49 = vadd.f32 %v4040_v50, %v7934_v56 }
 0x5ba   : > { %v4078_v46 = vsub.f32 0.0, %v4041_v49 }
 0x5bc   : > { %v5575_v17 = vpop.eup %5574  ;;  %v4138_v47 = vmul.f32 1.442695, %v4078_v46 }
 0x5bd   : > { %v5577_v31 = vpop.eup %5576  ;;  %v4173_v35 = vadd.f32 1.0, %v5575_v17 }
 0x5be   : > { %4237 = vst.msk [vmem:[%s7965_s27 + $0xd0] sm:$0xff] %vm4210_vm10, %v5577_v31  ;;  %5578 = vpow2.f32 %v4138_v47 }
 0x5bf   : > { %5580 = vrcp.f32 %v4173_v35  ;;  %v4042_v33 = vpop.f32.mrf.mxu2 }
 0x5c0   : > { %v4043_v59 = vadd.f32 %v4042_v33, %v7934_v56 }
 0x5c2   : > { %v4079_v51 = vsub.f32 0.0, %v4043_v59 }
 0x5c4   : > { %v5579_v55 = vpop.eup %5578  ;;  %v4140_v43 = vmul.f32 1.442695, %v4079_v51 }
 0x5c5   : > { %v5581_v22 = vpop.eup %5580  ;;  %v4174_v18 = vadd.f32 1.0, %v5579_v55 }
 0x5c6   : > { %4238 = vst.msk [vmem:[%s7965_s27 + $0xd8] sm:$0xff] %vm4210_vm10, %v5581_v22  ;;  %5582 = vpow2.f32 %v4140_v43 }
 0x5c7   : > { %5584 = vrcp.f32 %v4174_v18  ;;  %v4045_v20 = vpop.f32.mrf.mxu2 }
 0x5c8   : > { %v4046_v4 = vadd.f32 %v4045_v20, %v7934_v56 }
 0x5ca   : > { %v4080_v13 = vsub.f32 0.0, %v4046_v4 }
 0x5cc   : > { %v5583_v26 = vpop.eup %5582  ;;  %v4142_v2 = vmul.f32 1.442695, %v4080_v13 }
 0x5cd   : > { %v5585_v10 = vpop.eup %5584  ;;  %v4175_v37 = vadd.f32 1.0, %v5583_v26 }
 0x5ce   : > { %4239 = vst.msk [vmem:[%s7965_s27 + $0xe0] sm:$0xff] %vm4210_vm10, %v5585_v10  ;;  %5586 = vpow2.f32 %v4142_v2 }
 0x5cf   : > { %5588 = vrcp.f32 %v4175_v37  ;;  %v4047_v15 = vpop.f32.mrf.mxu2 }
 0x5d0   : > { %v4048_v34 = vadd.f32 %v4047_v15, %v7934_v56 }
 0x5d2   : > { %v4081_v0 = vsub.f32 0.0, %v4048_v34 }
 0x5d4   : > { %v5587_v45 = vpop.eup %5586  ;;  %v4144_v44 = vmul.f32 1.442695, %v4081_v0 }
 0x5d5   : > { %v5589_v5 = vpop.eup %5588  ;;  %v4176_v14 = vadd.f32 1.0, %v5587_v45 }
 0x5d6   : > { %4240 = vst.msk [vmem:[%s7965_s27 + $0xe8] sm:$0xff] %vm4210_vm10, %v5589_v5  ;;  %5590 = vpow2.f32 %v4144_v44 }
 0x5d7   : > { %5592 = vrcp.f32 %v4176_v14 }
 0x5dc   : > { %v5591_v41 = vpop.eup %5590 }
 0x5dd   : > { %v5593_v8 = vpop.eup %5592  ;;  %v4177_v6 = vadd.f32 1.0, %v5591_v41 }
 0x5de   : > { %4241 = vst.msk [vmem:[%s7965_s27 + $0xf0] sm:$0xff] %vm4210_vm10, %v5593_v8 }
 0x5df   : > { %5594 = vrcp.f32 %v4177_v6 }
 0x5e5   : > { %v5595_v11 = vpop.eup %5594 }
 0x5e6   : > { %4242 = vst.msk [vmem:[%s7965_s27 + $0xf8] sm:$0xff] %vm4210_vm10, %v5595_v11 }
 0x5e7 PF: > { %s14_s15 = sadd.s32 1, %s5606_s15  }
 0x5e8   : > { %p11_p4 = scmp.ge.s32.totalorder %s14_s15, 4  }
 0x5ea   :  { %13 = sbr.rel (!%p11_p4) target bundleno = 1 (0x1), region = 71 }

</bundles_post_ra>
